<compile_context>
chip_gen: v5e
topology: v5e:2x2
jax: 0.10.0
libtpu: 0.0.40
codegen_flags: <defaults>
</compile_context>

<pallas_src>
import jax
import jax.numpy as jnp
from jax.experimental import pallas as pl
from jax.experimental.pallas import tpu as pltpu


def _round_up(x, m):
    return (x + m - 1) // m * m


# ---------------------------------------------------------------------------
# Fused (conv3x3 + BN + ReLU) x 2 kernel — one image per grid step
# ---------------------------------------------------------------------------

def _fused_conv_block_kernel(x_ref, w1_ref, s1_ref, t1_ref, w2_ref, s2_ref,
                             t2_ref, o_ref, xpad_ref, hpad_ref):
    """x_ref:   (1, H, W, Cin)        f32   (unpadded image block)
       w1_ref:  (9*Cin_p, Cp)         bf16  (taps folded into K)
       s1_ref, t1_ref: (1, Cp)        f32   (BN scale / folded bias+BN shift)
       w2_ref:  (9*Cp, Cp)            bf16
       s2_ref, t2_ref: (1, Cp)        f32
       o_ref:   (1, H*W, Cp)          f32
       xpad_ref: (H+2, W+2, Cin_p)    bf16 scratch (halo + channel padded)
       hpad_ref: (H+2, W+2, Cp)       bf16 scratch (VMEM-resident intermediate)
    """
    _, H, W, Cin = x_ref.shape
    Cp = o_ref.shape[-1]

    # Stage the image into a zero halo-padded, channel-padded VMEM scratch.
    # (Replaces the old jnp.pad HBM read+write per conv.)
    xpad_ref[...] = jnp.zeros_like(xpad_ref)
    xpad_ref[pl.ds(1, H), pl.ds(1, W), pl.ds(0, Cin)] = (
        x_ref[0].astype(jnp.bfloat16))
    hpad_ref[...] = jnp.zeros_like(hpad_ref)

    def conv3x3(pad_ref, w_flat):
        xp = pad_ref[...]                      # (H+2, W+2, C) in VMEM
        c = xp.shape[-1]                       # multiple of 128 -> aligned concat
        cols = jnp.concatenate(
            [xp[dh:dh + H, dw:dw + W, :].reshape(H * W, c)
             for dh in range(3) for dw in range(3)],
            axis=-1)                           # (H*W, 9*C) im2col, lane-aligned
        return jnp.dot(cols, w_flat, preferred_element_type=jnp.float32)

    # --- conv1 + BN + ReLU -> bf16 intermediate in halo-padded scratch -------
    acc1 = conv3x3(xpad_ref, w1_ref[...])
    h = jnp.maximum(acc1 * s1_ref[...] + t1_ref[...], 0.0)
    hpad_ref[pl.ds(1, H), pl.ds(1, W), :] = (
        h.reshape(H, W, Cp).astype(jnp.bfloat16))

    # --- conv2 + BN + ReLU -> output -----------------------------------------
    acc2 = conv3x3(hpad_ref, w2_ref[...])
    y = jnp.maximum(acc2 * s2_ref[...] + t2_ref[...], 0.0)
    o_ref[0] = y.astype(o_ref.dtype)


# ---------------------------------------------------------------------------
# Parameter folding: conv bias + inference-mode BN -> (flat weight, scale, shift)
# ---------------------------------------------------------------------------

def fold_conv_bn(p, cin_pad, cout_pad, eps=1e-5):
    """Returns (w_flat bf16 (9*cin_pad, cout_pad), scale f32 (1, cout_pad),
    shift f32 (1, cout_pad)).  Scale is applied in the kernel epilogue on the
    f32 accumulator (better precision than folding into bf16 weights)."""
    s = p["gamma"] * jax.lax.rsqrt(p["var"] + eps)       # per-out-channel scale
    shift = (p["b"] - p["mean"]) * s + p["beta"]
    w = p["w"]                                           # (3, 3, cin, cout) HWIO
    kh, kw, cin, cout = w.shape
    w = jnp.pad(w, ((0, 0), (0, 0), (0, cin_pad - cin), (0, cout_pad - cout)))
    w_flat = w.reshape(kh * kw * cin_pad, cout_pad).astype(jnp.bfloat16)
    scale = jnp.pad(s, (0, cout_pad - cout)).reshape(1, cout_pad).astype(jnp.float32)
    shift = jnp.pad(shift, (0, cout_pad - cout)).reshape(1, cout_pad).astype(jnp.float32)
    return w_flat, scale, shift


def conv_block_forward(params, x):
    """conv_block: (conv3x3 + BN + ReLU) x 2.  x: (N,H,W,ch_in) -> (N,H,W,ch_out)."""
    N, H, W, Cin = x.shape
    ch_out = params["conv1"]["b"].shape[0]
    cin_p = _round_up(Cin, 128)        # channel pad happens in VMEM, not HBM
    cp = _round_up(ch_out, 128)        # lane-dense output channels

    w1, s1, t1 = fold_conv_bn(params["conv1"], cin_pad=cin_p, cout_pad=cp)
    w2, s2, t2 = fold_conv_bn(params["conv2"], cin_pad=cp, cout_pad=cp)

    out = pl.pallas_call(
        _fused_conv_block_kernel,
        out_shape=jax.ShapeDtypeStruct((N, H * W, cp), jnp.float32),
        grid=(N,),
        in_specs=[
            pl.BlockSpec((1, H, W, Cin), lambda n: (n, 0, 0, 0)),
            pl.BlockSpec((9 * cin_p, cp), lambda n: (0, 0)),
            pl.BlockSpec((1, cp), lambda n: (0, 0)),
            pl.BlockSpec((1, cp), lambda n: (0, 0)),
            pl.BlockSpec((9 * cp, cp), lambda n: (0, 0)),
            pl.BlockSpec((1, cp), lambda n: (0, 0)),
            pl.BlockSpec((1, cp), lambda n: (0, 0)),
        ],
        out_specs=pl.BlockSpec((1, H * W, cp), lambda n: (n, 0, 0)),
        scratch_shapes=[
            pltpu.VMEM((H + 2, W + 2, cin_p), jnp.bfloat16),   # padded input
            pltpu.VMEM((H + 2, W + 2, cp), jnp.bfloat16),      # fused intermediate
        ],
        compiler_params=pltpu.CompilerParams(
            dimension_semantics=("parallel",),      # 2-way batch split on v7x
            vmem_limit_bytes=32 * 1024 * 1024),     # ~2 MiB actually used here
    )(x, w1, s1, t1, w2, s2, t2)

    out = out.reshape(N, H, W, cp)     # row-major metadata only
    # Padded channels are exactly zero; slice once for the module's interface.
    # (A padded-channel consumer could skip this copy entirely.)
    return out[..., :ch_out]


# ---------------------------------------------------------------------------
# Pure-JAX reference (f32) for a correctness check
# ---------------------------------------------------------------------------

def reference_forward(params, x, eps=1e-5):
    def cba(x, p):
        y = jax.lax.conv_general_dilated(
            x, p["w"], window_strides=(1, 1), padding="SAME",
            dimension_numbers=("NHWC", "HWIO", "NHWC"))
        y = y + p["b"]
        s = p["gamma"] / jnp.sqrt(p["var"] + eps)
        y = (y - p["mean"]) * s + p["beta"]
        return jnp.maximum(y, 0.0)
    return cba(cba(x, params["conv1"]), params["conv2"])


# ---------------------------------------------------------------------------
# Deterministic parameter initialization
# ---------------------------------------------------------------------------

def init_conv_block_params(key, ch_in, ch_out):
    def conv_bn(k, cin, cout):
        kw_, kb, kg, kbe, km, kv = jax.random.split(k, 6)
        fan_in = cin * 9
        w = jax.random.normal(kw_, (3, 3, cin, cout), jnp.float32)
        w = w / jnp.sqrt(jnp.float32(fan_in))
        return {
            "w": w,
            "b": 0.01 * jax.random.normal(kb, (cout,), jnp.float32),
            "gamma": 1.0 + 0.1 * jax.random.normal(kg, (cout,), jnp.float32),
            "beta": 0.1 * jax.random.normal(kbe, (cout,), jnp.float32),
            "mean": 0.1 * jax.random.normal(km, (cout,), jnp.float32),
            "var": jnp.abs(1.0 + 0.1 * jax.random.normal(kv, (cout,), jnp.float32)),
        }
    k1, k2 = jax.random.split(key)
    return {"conv1": conv_bn(k1, ch_in, ch_out),
            "conv2": conv_bn(k2, ch_out, ch_out)}


# ---------------------------------------------------------------------------

if __name__ == "__main__":
    key = jax.random.PRNGKey(0)
    N, H, W, ch_in, ch_out = 2, 16, 16, 16, 32

    pkey, xkey = jax.random.split(key)
    params = init_conv_block_params(pkey, ch_in, ch_out)
    x = jax.random.normal(xkey, (N, H, W, ch_in), jnp.float32)   # NHWC

    fwd = jax.jit(conv_block_forward)
    out = jax.block_until_ready(fwd(params, x))

    assert out.shape == (N, H, W, ch_out), out.shape
    assert bool(jnp.all(jnp.isfinite(out)))

    # Correctness check vs. pure-JAX f32 reference (kernel uses bf16 matmuls).
    ref = reference_forward(params, x)
    max_err = float(jnp.max(jnp.abs(out - ref)))
    assert max_err < 0.1, f"max abs error vs reference: {max_err}"

    print("KERNEL_OK")
</pallas_src>

<mosaic_0001>
module attributes {stable_mosaic.version = 11 : i64} {
  func.func @_fused_conv_block_kernel(%arg0: i32, %arg1: memref<1x16x16x16xf32, #tpu.memory_space<vmem>>, %arg2: memref<1152x128xbf16, #tpu.memory_space<vmem>>, %arg3: memref<1x128xf32, #tpu.memory_space<vmem>>, %arg4: memref<1x128xf32, #tpu.memory_space<vmem>>, %arg5: memref<1152x128xbf16, #tpu.memory_space<vmem>>, %arg6: memref<1x128xf32, #tpu.memory_space<vmem>>, %arg7: memref<1x128xf32, #tpu.memory_space<vmem>>, %arg8: memref<1x256x128xf32, #tpu.memory_space<vmem>>, %arg9: memref<18x18x128xbf16, #tpu.memory_space<vmem>>, %arg10: memref<18x18x128xbf16, #tpu.memory_space<vmem>>) attributes {dimension_semantics = [#tpu.dimension_semantics<parallel>], iteration_bounds = array<i64: 2>, scalar_prefetch = 0 : i64, scratch_operands = 2 : i64, tpu.core_type = #tpu.core_type<tc>, window_params = [{transform_indices = @transform_0, window_bounds = array<i64: 1, 16, 16, 16>}, {pipeline_mode = #tpu.pipeline_mode<synchronous>, transform_indices = @transform_1, window_bounds = array<i64: 1152, 128>}, {pipeline_mode = #tpu.pipeline_mode<synchronous>, transform_indices = @transform_2, window_bounds = array<i64: 1, 128>}, {pipeline_mode = #tpu.pipeline_mode<synchronous>, transform_indices = @transform_3, window_bounds = array<i64: 1, 128>}, {pipeline_mode = #tpu.pipeline_mode<synchronous>, transform_indices = @transform_4, window_bounds = array<i64: 1152, 128>}, {pipeline_mode = #tpu.pipeline_mode<synchronous>, transform_indices = @transform_5, window_bounds = array<i64: 1, 128>}, {pipeline_mode = #tpu.pipeline_mode<synchronous>, transform_indices = @transform_6, window_bounds = array<i64: 1, 128>}, {transform_indices = @transform_7, window_bounds = array<i64: 1, 256, 128>}]} {
    %cst = arith.constant 0.000000e+00 : bf16
    %0 = vector.broadcast %cst : bf16 to vector<18x18x128xbf16>
    %c0 = arith.constant 0 : index
    %c0_0 = arith.constant 0 : index
    %c0_1 = arith.constant 0 : index
    %1 = vector.load %arg9[%c0, %c0_0, %c0_1] : memref<18x18x128xbf16, #tpu.memory_space<vmem>>, vector<18x18x128xbf16>
    tpu.vector_store %arg9[%c0, %c0_0, %c0_1], %0 {strides = array<i32>} : memref<18x18x128xbf16, #tpu.memory_space<vmem>>, vector<18x18x128xbf16>,
    %c0_2 = arith.constant 0 : index
    %c0_3 = arith.constant 0 : index
    %c0_4 = arith.constant 0 : index
    %c0_5 = arith.constant 0 : index
    %2 = vector.load %arg1[%c0_2, %c0_3, %c0_4, %c0_5] : memref<1x16x16x16xf32, #tpu.memory_space<vmem>>, vector<1x16x16x16xf32>
    %3 = vector.shape_cast %2 : vector<1x16x16x16xf32> to vector<16x16x16xf32>
    %4 = arith.truncf %3 : vector<16x16x16xf32> to vector<16x16x16xbf16>
    %c1 = arith.constant 1 : index
    %c1_6 = arith.constant 1 : index
    %c0_7 = arith.constant 0 : index
    %5 = vector.load %arg9[%c1, %c1_6, %c0_7] : memref<18x18x128xbf16, #tpu.memory_space<vmem>>, vector<16x16x16xbf16>
    tpu.vector_store %arg9[%c1, %c1_6, %c0_7], %4 {strides = array<i32>} : memref<18x18x128xbf16, #tpu.memory_space<vmem>>, vector<16x16x16xbf16>,
    %cst_8 = arith.constant 0.000000e+00 : bf16
    %6 = vector.broadcast %cst_8 : bf16 to vector<18x18x128xbf16>
    %c0_9 = arith.constant 0 : index
    %c0_10 = arith.constant 0 : index
    %c0_11 = arith.constant 0 : index
    %7 = vector.load %arg10[%c0_9, %c0_10, %c0_11] : memref<18x18x128xbf16, #tpu.memory_space<vmem>>, vector<18x18x128xbf16>
    tpu.vector_store %arg10[%c0_9, %c0_10, %c0_11], %6 {strides = array<i32>} : memref<18x18x128xbf16, #tpu.memory_space<vmem>>, vector<18x18x128xbf16>,
    %c0_12 = arith.constant 0 : index
    %c0_13 = arith.constant 0 : index
    %8 = vector.load %arg2[%c0_12, %c0_13] : memref<1152x128xbf16, #tpu.memory_space<vmem>>, vector<1152x128xbf16>
    %c0_14 = arith.constant 0 : index
    %c0_15 = arith.constant 0 : index
    %c0_16 = arith.constant 0 : index
    %9 = vector.load %arg9[%c0_14, %c0_15, %c0_16] : memref<18x18x128xbf16, #tpu.memory_space<vmem>>, vector<18x18x128xbf16>
    %10 = vector.extract_strided_slice %9 {offsets = [0, 0, 0], sizes = [16, 16, 128], strides = [1, 1, 1]} : vector<18x18x128xbf16> to vector<16x16x128xbf16>
    %11 = vector.shape_cast %10 : vector<16x16x128xbf16> to vector<256x128xbf16>
    %12 = vector.extract_strided_slice %9 {offsets = [0, 1, 0], sizes = [16, 16, 128], strides = [1, 1, 1]} : vector<18x18x128xbf16> to vector<16x16x128xbf16>
    %13 = vector.shape_cast %12 : vector<16x16x128xbf16> to vector<256x128xbf16>
    %14 = vector.extract_strided_slice %9 {offsets = [0, 2, 0], sizes = [16, 16, 128], strides = [1, 1, 1]} : vector<18x18x128xbf16> to vector<16x16x128xbf16>
    %15 = vector.shape_cast %14 : vector<16x16x128xbf16> to vector<256x128xbf16>
    %16 = vector.extract_strided_slice %9 {offsets = [1, 0, 0], sizes = [16, 16, 128], strides = [1, 1, 1]} : vector<18x18x128xbf16> to vector<16x16x128xbf16>
    %17 = vector.shape_cast %16 : vector<16x16x128xbf16> to vector<256x128xbf16>
    %18 = vector.extract_strided_slice %9 {offsets = [1, 1, 0], sizes = [16, 16, 128], strides = [1, 1, 1]} : vector<18x18x128xbf16> to vector<16x16x128xbf16>
    %19 = vector.shape_cast %18 : vector<16x16x128xbf16> to vector<256x128xbf16>
    %20 = vector.extract_strided_slice %9 {offsets = [1, 2, 0], sizes = [16, 16, 128], strides = [1, 1, 1]} : vector<18x18x128xbf16> to vector<16x16x128xbf16>
    %21 = vector.shape_cast %20 : vector<16x16x128xbf16> to vector<256x128xbf16>
    %22 = vector.extract_strided_slice %9 {offsets = [2, 0, 0], sizes = [16, 16, 128], strides = [1, 1, 1]} : vector<18x18x128xbf16> to vector<16x16x128xbf16>
    %23 = vector.shape_cast %22 : vector<16x16x128xbf16> to vector<256x128xbf16>
    %24 = vector.extract_strided_slice %9 {offsets = [2, 1, 0], sizes = [16, 16, 128], strides = [1, 1, 1]} : vector<18x18x128xbf16> to vector<16x16x128xbf16>
    %25 = vector.shape_cast %24 : vector<16x16x128xbf16> to vector<256x128xbf16>
    %26 = vector.extract_strided_slice %9 {offsets = [2, 2, 0], sizes = [16, 16, 128], strides = [1, 1, 1]} : vector<18x18x128xbf16> to vector<16x16x128xbf16>
    %27 = vector.shape_cast %26 : vector<16x16x128xbf16> to vector<256x128xbf16>
    %28 = tpu.concatenate %11, %13, %15, %17, %19, %21, %23, %25, %27 in 1 : vector<256x128xbf16>, vector<256x128xbf16>, vector<256x128xbf16>, vector<256x128xbf16>, vector<256x128xbf16>, vector<256x128xbf16>, vector<256x128xbf16>, vector<256x128xbf16>, vector<256x128xbf16> -> vector<256x1152xbf16>
    %cst_17 = arith.constant dense<0.000000e+00> : vector<256x128xf32>
    %29 = tpu.matmul %28, %8, %cst_17 {dimension_numbers = #tpu.dot_dimension_numbers<[1], [0], [0], [1], [0, 0, 1, 1], [], []>} : vector<256x1152xbf16>, vector<1152x128xbf16>, vector<256x128xf32> -> vector<256x128xf32>
    %c0_18 = arith.constant 0 : index
    %c0_19 = arith.constant 0 : index
    %30 = vector.load %arg3[%c0_18, %c0_19] : memref<1x128xf32, #tpu.memory_space<vmem>>, vector<1x128xf32>
    %31 = vector.broadcast %30 : vector<1x128xf32> to vector<256x128xf32>
    %32 = arith.mulf %29, %31 : vector<256x128xf32>
    %c0_20 = arith.constant 0 : index
    %c0_21 = arith.constant 0 : index
    %33 = vector.load %arg4[%c0_20, %c0_21] : memref<1x128xf32, #tpu.memory_space<vmem>>, vector<1x128xf32>
    %34 = vector.broadcast %33 : vector<1x128xf32> to vector<256x128xf32>
    %35 = arith.addf %32, %34 : vector<256x128xf32>
    %cst_22 = arith.constant 0.000000e+00 : f32
    %36 = vector.broadcast %cst_22 : f32 to vector<256x128xf32>
    %37 = arith.maximumf %35, %36 : vector<256x128xf32>
    %38 = vector.shape_cast %37 : vector<256x128xf32> to vector<16x16x128xf32>
    %39 = arith.truncf %38 : vector<16x16x128xf32> to vector<16x16x128xbf16>
    %c1_23 = arith.constant 1 : index
    %c1_24 = arith.constant 1 : index
    %c0_25 = arith.constant 0 : index
    %40 = vector.load %arg10[%c1_23, %c1_24, %c0_25] : memref<18x18x128xbf16, #tpu.memory_space<vmem>>, vector<16x16x128xbf16>
    tpu.vector_store %arg10[%c1_23, %c1_24, %c0_25], %39 {strides = array<i32>} : memref<18x18x128xbf16, #tpu.memory_space<vmem>>, vector<16x16x128xbf16>,
    %c0_26 = arith.constant 0 : index
    %c0_27 = arith.constant 0 : index
    %41 = vector.load %arg5[%c0_26, %c0_27] : memref<1152x128xbf16, #tpu.memory_space<vmem>>, vector<1152x128xbf16>
    %c0_28 = arith.constant 0 : index
    %c0_29 = arith.constant 0 : index
    %c0_30 = arith.constant 0 : index
    %42 = vector.load %arg10[%c0_28, %c0_29, %c0_30] : memref<18x18x128xbf16, #tpu.memory_space<vmem>>, vector<18x18x128xbf16>
    %43 = vector.extract_strided_slice %42 {offsets = [0, 0, 0], sizes = [16, 16, 128], strides = [1, 1, 1]} : vector<18x18x128xbf16> to vector<16x16x128xbf16>
    %44 = vector.shape_cast %43 : vector<16x16x128xbf16> to vector<256x128xbf16>
    %45 = vector.extract_strided_slice %42 {offsets = [0, 1, 0], sizes = [16, 16, 128], strides = [1, 1, 1]} : vector<18x18x128xbf16> to vector<16x16x128xbf16>
    %46 = vector.shape_cast %45 : vector<16x16x128xbf16> to vector<256x128xbf16>
    %47 = vector.extract_strided_slice %42 {offsets = [0, 2, 0], sizes = [16, 16, 128], strides = [1, 1, 1]} : vector<18x18x128xbf16> to vector<16x16x128xbf16>
    %48 = vector.shape_cast %47 : vector<16x16x128xbf16> to vector<256x128xbf16>
    %49 = vector.extract_strided_slice %42 {offsets = [1, 0, 0], sizes = [16, 16, 128], strides = [1, 1, 1]} : vector<18x18x128xbf16> to vector<16x16x128xbf16>
    %50 = vector.shape_cast %49 : vector<16x16x128xbf16> to vector<256x128xbf16>
    %51 = vector.extract_strided_slice %42 {offsets = [1, 1, 0], sizes = [16, 16, 128], strides = [1, 1, 1]} : vector<18x18x128xbf16> to vector<16x16x128xbf16>
    %52 = vector.shape_cast %51 : vector<16x16x128xbf16> to vector<256x128xbf16>
    %53 = vector.extract_strided_slice %42 {offsets = [1, 2, 0], sizes = [16, 16, 128], strides = [1, 1, 1]} : vector<18x18x128xbf16> to vector<16x16x128xbf16>
    %54 = vector.shape_cast %53 : vector<16x16x128xbf16> to vector<256x128xbf16>
    %55 = vector.extract_strided_slice %42 {offsets = [2, 0, 0], sizes = [16, 16, 128], strides = [1, 1, 1]} : vector<18x18x128xbf16> to vector<16x16x128xbf16>
    %56 = vector.shape_cast %55 : vector<16x16x128xbf16> to vector<256x128xbf16>
    %57 = vector.extract_strided_slice %42 {offsets = [2, 1, 0], sizes = [16, 16, 128], strides = [1, 1, 1]} : vector<18x18x128xbf16> to vector<16x16x128xbf16>
    %58 = vector.shape_cast %57 : vector<16x16x128xbf16> to vector<256x128xbf16>
    %59 = vector.extract_strided_slice %42 {offsets = [2, 2, 0], sizes = [16, 16, 128], strides = [1, 1, 1]} : vector<18x18x128xbf16> to vector<16x16x128xbf16>
    %60 = vector.shape_cast %59 : vector<16x16x128xbf16> to vector<256x128xbf16>
    %61 = tpu.concatenate %44, %46, %48, %50, %52, %54, %56, %58, %60 in 1 : vector<256x128xbf16>, vector<256x128xbf16>, vector<256x128xbf16>, vector<256x128xbf16>, vector<256x128xbf16>, vector<256x128xbf16>, vector<256x128xbf16>, vector<256x128xbf16>, vector<256x128xbf16> -> vector<256x1152xbf16>
    %cst_31 = arith.constant dense<0.000000e+00> : vector<256x128xf32>
    %62 = tpu.matmul %61, %41, %cst_31 {dimension_numbers = #tpu.dot_dimension_numbers<[1], [0], [0], [1], [0, 0, 1, 1], [], []>} : vector<256x1152xbf16>, vector<1152x128xbf16>, vector<256x128xf32> -> vector<256x128xf32>
    %c0_32 = arith.constant 0 : index
    %c0_33 = arith.constant 0 : index
    %63 = vector.load %arg6[%c0_32, %c0_33] : memref<1x128xf32, #tpu.memory_space<vmem>>, vector<1x128xf32>
    %64 = vector.broadcast %63 : vector<1x128xf32> to vector<256x128xf32>
    %65 = arith.mulf %62, %64 : vector<256x128xf32>
    %c0_34 = arith.constant 0 : index
    %c0_35 = arith.constant 0 : index
    %66 = vector.load %arg7[%c0_34, %c0_35] : memref<1x128xf32, #tpu.memory_space<vmem>>, vector<1x128xf32>
    %67 = vector.broadcast %66 : vector<1x128xf32> to vector<256x128xf32>
    %68 = arith.addf %65, %67 : vector<256x128xf32>
    %cst_36 = arith.constant 0.000000e+00 : f32
    %69 = vector.broadcast %cst_36 : f32 to vector<256x128xf32>
    %70 = arith.maximumf %68, %69 : vector<256x128xf32>
    %c0_37 = arith.constant 0 : index
    %c0_38 = arith.constant 0 : index
    %c0_39 = arith.constant 0 : index
    %71 = vector.load %arg8[%c0_37, %c0_38, %c0_39] : memref<1x256x128xf32, #tpu.memory_space<vmem>>, vector<1x256x128xf32>
    %72 = vector.shape_cast %71 : vector<1x256x128xf32> to vector<256x128xf32>
    %73 = vector.shape_cast %70 : vector<256x128xf32> to vector<1x256x128xf32>
    tpu.vector_store %arg8[%c0_37, %c0_38, %c0_39], %73 {strides = array<i32>} : memref<1x256x128xf32, #tpu.memory_space<vmem>>, vector<1x256x128xf32>,
    return
  }
  func.func @transform_0(%arg0: i32) -> (i32, i32, i32, i32) {
    %c0_i32 = arith.constant 0 : i32
    %c0_i32_0 = arith.constant 0 : i32
    %c0_i32_1 = arith.constant 0 : i32
    %c0_i32_2 = arith.constant 0 : i32
    return %arg0, %c0_i32, %c0_i32_0, %c0_i32_1 : i32, i32, i32, i32
  }
  func.func @transform_1(%arg0: i32) -> (i32, i32) {
    %c0_i32 = arith.constant 0 : i32
    %c0_i32_0 = arith.constant 0 : i32
    %c0_i32_1 = arith.constant 0 : i32
    return %c0_i32, %c0_i32_0 : i32, i32
  }
  func.func @transform_2(%arg0: i32) -> (i32, i32) {
    %c0_i32 = arith.constant 0 : i32
    %c0_i32_0 = arith.constant 0 : i32
    %c0_i32_1 = arith.constant 0 : i32
    return %c0_i32, %c0_i32_0 : i32, i32
  }
  func.func @transform_3(%arg0: i32) -> (i32, i32) {
    %c0_i32 = arith.constant 0 : i32
    %c0_i32_0 = arith.constant 0 : i32
    %c0_i32_1 = arith.constant 0 : i32
    return %c0_i32, %c0_i32_0 : i32, i32
  }
  func.func @transform_4(%arg0: i32) -> (i32, i32) {
    %c0_i32 = arith.constant 0 : i32
    %c0_i32_0 = arith.constant 0 : i32
    %c0_i32_1 = arith.constant 0 : i32
    return %c0_i32, %c0_i32_0 : i32, i32
  }
  func.func @transform_5(%arg0: i32) -> (i32, i32) {
    %c0_i32 = arith.constant 0 : i32
    %c0_i32_0 = arith.constant 0 : i32
    %c0_i32_1 = arith.constant 0 : i32
    return %c0_i32, %c0_i32_0 : i32, i32
  }
  func.func @transform_6(%arg0: i32) -> (i32, i32) {
    %c0_i32 = arith.constant 0 : i32
    %c0_i32_0 = arith.constant 0 : i32
    %c0_i32_1 = arith.constant 0 : i32
    return %c0_i32, %c0_i32_0 : i32, i32
  }
  func.func @transform_7(%arg0: i32) -> (i32, i32, i32) {
    %c0_i32 = arith.constant 0 : i32
    %c0_i32_0 = arith.constant 0 : i32
    %c0_i32_1 = arith.constant 0 : i32
    return %arg0, %c0_i32, %c0_i32_0 : i32, i32, i32
  }
}

</mosaic_0001>

<bundles_post_ra>
// kernel: conv_block_forward.1
= control target key start
LH: loop header
LB: loop body
LE: loop exit
PB: predicated region body
PF: predicated region fallthrough
CT: control target
= control target key end

     0   :  { %12 = vsyncpa [#allocation5], 0  ;;  %s10449_s0 = inlined_call_operand.vmem [shape: f32[2,16,16,16], index: 0, kind: input, shape index: {}]   ;;  %s10450_s1 = inlined_call_operand.vmem [shape: bf16[1152,128], index: 1, kind: input, shape index: {}]   ;;  %s10451_s2 = inlined_call_operand.vmem [shape: f32[1,128], index: 2, kind: input, shape index: {}]   ;;  %s10452_s3 = inlined_call_operand.vmem [shape: f32[1,128], index: 3, kind: input, shape index: {}]   ;;  %s10453_s4 = inlined_call_operand.vmem [shape: bf16[1152,128], index: 4, kind: input, shape index: {}]   ;;  %s10454_s5 = inlined_call_operand.vmem [shape: f32[1,128], index: 5, kind: input, shape index: {}]   ;;  %s10455_s6 = inlined_call_operand.vmem [shape: f32[1,128], index: 6, kind: input, shape index: {}]   ;;  %s10456_s7 = inlined_call_operand.hbm [shape: f32[2,256,128], index: 7, kind: output, shape index: {}]  }
   0x1   :  { %14 = vsyncpa [#allocation5 + $0x1], 0  ;;  %s7385_s24 = smov 0   ;;  %s7387_s25 = smov 0  }
   0x2   :  { %s7389_s26 = smov 0   ;;  %s7391_s27 = smov 0  }
   0x3 LB: > { %s7406_s28 = sadd.s32 4294967295, %s7340_s27   ;;  %s6203_s29 = sadd.s32 4294967294, %s7340_s27   ;;  %s7340_s27 = sphi %s7391_s27, %s10705_s27   ;;  %s7336_s26 = sphi %s7389_s26, %s10704_s26   ;;  %s7332_s25 = sphi %s7387_s25, %s10703_s25   ;;  %s7328_s24 = sphi %s7385_s24, %s10702_s24  }
   0x4   : > { %s7410_s30 = sadd.s32 1, %s7340_s27   ;;  %s179_s8 = sadd.s32 1, %s7336_s26 }
   0x5   : > { %s176_s9 = ssub.s32 %s7340_s27, %s7410_s30  ;;  %p189_p0 = scmp.ne.s32.totalorder %s7336_s26, %s7332_s25 }
   0x6   : > { %p177_p1 = scmp.eq.s32.totalorder %s176_s9, 0  ;;  %p190_p2 = scmp.eq.s32.totalorder %s7406_s28, 1 }
   0x7   : > { %p195_p3 = scmp.ne.s32.totalorder %s7332_s25, %s7328_s24  ;;  %p196_p4 = scmp.eq.s32.totalorder %s6203_s29, 1 }
   0x8   : > { %s7421_s10 = scalar_select %p177_p1, %s7336_s26, %s179_s8  }
   0x9   : > { %p7423_p5 = por %p190_p2, %p189_p0  ;;  %p7427_p6 = por %p196_p4, %p195_p3 }
   0xa   : > { %p6206_p7 = scmp.ge.s32.totalorder %s7340_s27, 1  ;;  %p240_p8 = scmp.lt.s32.totalorder %s7340_s27, 3 }
   0xc   : > { %p241_p9 = pnand %p6206_p7, %p240_p8 }
   0xe   : > { %244 = sbr.rel (%p241_p9) target bundleno = 1584 (0x630), region = 48 }
  0x13   : > { %v6979_v0 = vld [vmem:[%s10450_s1 + $0x38] sm:$0xff]  ;;  %v7342_v2 = vmov 0   ;;  %v6978_v3 = vld [vmem:[%s10450_s1 + $0x30] sm:$0xff]  ;;  %v6977_v5 = vld [vmem:[%s10450_s1 + $0x28] sm:$0xff]  ;;  %p272_p10 = scmp.lt.s32.totalorder %s7406_s28, 1  ;;  %vm720_vm6 = vcmask 125952  }
  0x14   : > { %v6987_v1 = vld [vmem:[%s10450_s1 + $0x78] sm:$0xff]  ;;  %278 = vst [vmem:[#allocation2] sm:$0xf] %v7342_v2  ;;  %2356 = vmatpush.bf16.msra.mxu0 %v6979_v0  ;;  %7153 = vmatpush.bf16.msra.mxu2 %v6979_v0  ;;  %v6986_v4 = vld [vmem:[%s10450_s1 + $0x70] sm:$0xff]  ;;  %v6985_v6 = vld [vmem:[%s10450_s1 + $0x68] sm:$0xff]  ;;  %vm728_vm7 = vcmask 122880  }
  0x15   : > { %279 = vst [vmem:[#allocation2 + $0x4] sm:$0xf] %v7342_v2  ;;  %2445 = vmatpush.bf16.msra.mxu1 %v6987_v1  ;;  %7161 = vmatpush.bf16.msra.mxu3 %v6987_v1  ;;  %v6976_v7 = vld [vmem:[%s10450_s1 + $0x20] sm:$0xff]  ;;  %v6975_v9 = vld [vmem:[%s10450_s1 + $0x18] sm:$0xff]  ;;  %v6974_v11 = vld [vmem:[%s10450_s1 + $0x10] sm:$0xff]  ;;  %s273_s15 = scalar_select %p272_p10, %s7406_s28, 1 }
  0x16   : > { %280 = vst [vmem:[#allocation2 + $0x8] sm:$0x1] %v7342_v2  ;;  %v6984_v8 = vld [vmem:[%s10450_s1 + $0x60] sm:$0xff]  ;;  %v6983_v10 = vld [vmem:[%s10450_s1 + $0x58] sm:$0xff]  ;;  %v6982_v12 = vld [vmem:[%s10450_s1 + $0x50] sm:$0xff]  ;;  %vm1525_vm11 = vcmask 1042432  }
  0x17   : > { %281 = vst [vmem:[#allocation2 + $0xc] sm:$0xf] %v7342_v2  ;;  %v6973_v13 = vld [vmem:[%s10450_s1 + $0x8] sm:$0xff]  ;;  %v6972_v15 = vld [vmem:[%s10450_s1] sm:$0xff]  ;;  %s6971_s16 = sshll.u32 %s273_s15, 8  ;;  %v6995_v27 = vld [vmem:[%s10450_s1 + $0xb8] sm:$0xff] }
  0x18   : > { %282 = vst [vmem:[#allocation2 + $0x10] sm:$0xf] %v7342_v2  ;;  %2357 = vmatpush.bf16.msra.mxu0 %v6978_v3  ;;  %7154 = vmatpush.bf16.msra.mxu2 %v6978_v3  ;;  %v6981_v14 = vld [vmem:[%s10450_s1 + $0x48] sm:$0xff]  ;;  %s7562_s19 = scalar_lea.vmem %s10449_s0, %s6971_s16  ;;  %v6980_v26 = vld [vmem:[%s10450_s1 + $0x40] sm:$0xff]  ;;  %vm1090_vm0 = vsmask.f32 3328 }
  0x19   : > { %283 = vst [vmem:[#allocation2 + $0x14] sm:$0x1] %v7342_v2  ;;  %2446 = vmatpush.bf16.msra.mxu1 %v6986_v4  ;;  %7162 = vmatpush.bf16.msra.mxu3 %v6986_v4  ;;  %v346_v17 = vld [vmem:[%s7562_s19 + $0x70] sm:$0xff]  ;;  %v347_v18 = vld [vmem:[%s7562_s19 + $0x78] sm:$0xff]  ;;  %v332_v29 = vld [vmem:[%s7562_s19] sm:$0xff]  ;;  %vm1526_vm12 = vcmask 1046532  }
  0x1a   : > { %284 = vst [vmem:[#allocation2 + $0x18] sm:$0xf] %v7342_v2  ;;  %v7572_v19 = vpack.c.bf16 %v346_v17, %v346_v17  ;;  %v7584_v30 = vpack.c.bf16 %v347_v18, %v347_v18  ;;  %vm1091_vm1 = vsmask.f32 7440  ;;  %v333_v37 = vld [vmem:[%s7562_s19 + $0x8] sm:$0xff]  ;;  %v348_v38 = vld [vmem:[%s7562_s19 + $0x80] sm:$0xff]  ;;  %v7600_v44 = vpack.c.bf16 %v332_v29, %v332_v29  ;;  %vm8129_vm13 = vmor %vm1525_vm11, %vm1526_vm12 }
  0x1b   : > { %285 = vst [vmem:[#allocation2 + $0x1c] sm:$0xf] %v7342_v2  ;;  %v1036_v20 = vld [vmem:[#allocation2] sm:$0xf]  ;;  %vm396_vm2 = vsmask.f32 256  ;;  %vm7596_vm4 = vmor %vm1090_vm0, %vm1091_vm1  ;;  %v7604_v48 = vpack.c.bf16 %v333_v37, %v333_v37  ;;  %v7606_v49 = vpack.c.bf16 %v348_v38, %v348_v38 }
  0x1c   : > { %286 = vst [vmem:[#allocation2 + $0x20] sm:$0x1] %v7342_v2  ;;  %2358 = vmatpush.bf16.msra.mxu0 %v6977_v5  ;;  %7155 = vmatpush.bf16.msra.mxu2 %v6977_v5  ;;  %v7044_v16 = vld [vmem:[#allocation2] sm:$0xff]  ;;  %v1094_v22 = vshrl.u32 %v1036_v20, 16  ;;  %v1097_v23 = vshll.u32 %v1036_v20, 16  ;;  %v519_v35 = vshrl.u32 %v7572_v19, 16  ;;  %vm7657_vm10 = vmand %vm728_vm7, %vm396_vm2 }
  0x1d   : > { %287 = vst [vmem:[#allocation2 + $0x24] sm:$0xf] %v7342_v2  ;;  %2447 = vmatpush.bf16.msra.mxu1 %v6985_v6  ;;  %7163 = vmatpush.bf16.msra.mxu3 %v6985_v6  ;;  %v1037_v21 = vld [vmem:[#allocation2 + $0x4] sm:$0xf]  ;;  %v1038_v28 = vld [vmem:[#allocation2 + $0x8] sm:$0x1] }
  0x1e   : > { %288 = vst [vmem:[#allocation2 + $0x28] sm:$0xf] %v7342_v2  ;;  %v1103_v24 = vshll.u32 %v1037_v21, 16  ;;  %v1107_v25 = vshrl.u32 %v1037_v21, 16  ;;  %v1096_v31 = vrot.slane %v1094_v22, 4  ;;  %v1099_v32 = vrot.slane %v1097_v23, 5 }
  0x1f   : > { %289 = vst [vmem:[#allocation2 + $0x2c] sm:$0x1] %v7342_v2  ;;  %v1113_v36 = vshll.u32 %v1038_v28, 16  ;;  %vm397_vm3 = vsmask.f32 4368  ;;  %v527_v41 = vshrl.u32 %v7584_v30, 16 }
  0x20   : > { %290 = vst [vmem:[#allocation2 + $0x30] sm:$0xf] %v7342_v2  ;;  %2359 = vmatpush.bf16.msra.mxu0 %v6976_v7  ;;  %7156 = vmatpush.bf16.msra.mxu2 %v6976_v7  ;;  %v1105_v33 = vrot.slane %v1103_v24, 5  ;;  %v1109_v34 = vrot.slane %v1107_v25, 4  ;;  %v1100_v39 = vor.u32 %v1099_v32, %v1096_v31  ;;  %v349_v45 = vld [vmem:[%s7562_s19 + $0x88] sm:$0xff]  ;;  %v521_v50 = vrot.slane %v519_v35, 7  ;;  %vm7627_vm8 = vmor %vm396_vm2, %vm397_vm3 }
  0x21   : > { %291 = vst [vmem:[#allocation2 + $0x34] sm:$0xf] %v7342_v2  ;;  %2448 = vmatpush.bf16.msra.mxu1 %v6984_v8  ;;  %7164 = vmatpush.bf16.msra.mxu3 %v6984_v8  ;;  %v1115_v43 = vrot.slane %v1113_v36, 5  ;;  %vm721_vm5 = vsmask.f32 7938  ;;  %v522_v51 = vshll.u32 %v7572_v19, 16  ;;  %v7615_v54 = vpack.c.bf16 %v349_v45, %v349_v45 }
  0x22   : > { %292 = vst [vmem:[#allocation2 + $0x38] sm:$0x1] %v7342_v2  ;;  %v1110_v40 = vor.u32 %v1109_v34, %v1105_v33  ;;  %v1101_v46 = vrot.slane %v1100_v39, 4  ;;  %v529_v55 = vrot.slane %v527_v41, 7  ;;  %v530_v56 = vshll.u32 %v7584_v30, 16  ;;  %v7003_v3 = vld [vmem:[%s10450_s1 + $0xf8] sm:$0xff]  ;;  %vm7647_vm9 = vmand %vm720_vm6, %vm721_vm5 }
  0x23   : > { %293 = vst [vmem:[#allocation2 + $0x3c] sm:$0xf] %v7342_v2  ;;  %v400_v59 = vshrl.u32 %v7600_v44, 16  ;;  %v408_v60 = vshrl.u32 %v7604_v48, 16  ;;  %v536_v61 = vshrl.u32 %v7606_v49, 16  ;;  %v525_v62 = vrot.slane %v521_v50, 4 }
  0x24   : > { %294 = vst [vmem:[#allocation2 + $0x40] sm:$0xf] %v7342_v2  ;;  %2360 = vmatpush.bf16.msra.mxu0 %v6975_v9  ;;  %7157 = vmatpush.bf16.msra.mxu2 %v6975_v9  ;;  %v1111_v47 = vrot.slane %v1110_v40, 4  ;;  %v1106_v52 = vsel %vm7596_vm4, %v1101_v46, %v1105_v33  ;;  %v534_v63 = vrot.slane %v529_v55, 4  ;;  %v7011_v4 = vld [vmem:[%s10450_s1 + $0x138] sm:$0xff]  ;;  %v403_v5 = vshll.u32 %v7600_v44, 16 }
  0x25   : > { %295 = vst [vmem:[#allocation2 + $0x44] sm:$0x1] %v7342_v2  ;;  %2449 = vmatpush.bf16.msra.mxu1 %v6983_v10  ;;  %7165 = vmatpush.bf16.msra.mxu3 %v6983_v10  ;;  %v1772_v57 = vunpack.c.l.b16 %v1106_v52  ;;  %v544_v6 = vshrl.u32 %v7615_v54, 16  ;;  %v524_v7 = vor.u32 %v522_v51, %v521_v50  ;;  %v532_v8 = vor.u32 %v530_v56, %v529_v55  ;;  %v351_v19 = vld [vmem:[%s7562_s19 + $0x98] sm:$0xff]  ;;  %v6994_v28 = vld [vmem:[%s10450_s1 + $0xb0] sm:$0xff]  ;;  %s269_s20 = sand.u32 1, %s7332_s25  }
  0x26   : > { %296 = vst [vmem:[#allocation2 + $0x48] sm:$0xf] %v7342_v2  ;;  %v1116_v53 = vsel %vm7596_vm4, %v1111_v47, %v1115_v43  ;;  %v411_v10 = vshll.u32 %v7604_v48, 16  ;;  %v538_v17 = vrot.slane %v536_v61, 7  ;;  %v539_v22 = vshll.u32 %v7606_v49, 16  ;;  %s6207_s23 = sshll.u32 %s269_s20, 8 }
  0x27   : > { %297 = vst [vmem:[#allocation2 + $0x4c] sm:$0xf] %v7342_v2  ;;  %v1773_v58 = vunpack.c.l.b16 %v1116_v53  ;;  %v383_v25 = vpack.c.bf16 %v351_v19, %v351_v19  ;;  %v533_v30 = vsel %vm7627_vm8, %v525_v62, %v532_v8  ;;  %v723_v37 = vld [vmem:[#allocation2 + $0xc] sm:$0xf]  ;;  %v730_v56 = vld [vmem:[#allocation2 + $0x14] sm:$0x1] }
  0x28   : > { %298 = vst [vmem:[#allocation2 + $0x50] sm:$0x1] %v7342_v2  ;;  %2361 = vmatpush.bf16.msra.mxu0 %v6974_v11  ;;  %7158 = vmatpush.bf16.msra.mxu2 %v6974_v11  ;;  %v334_v11 = vld [vmem:[%s7562_s19 + $0x10] sm:$0xff]  ;;  %v541_v40 = vor.u32 %v539_v22, %v538_v17  ;;  %v542_v41 = vrot.slane %v538_v17, 4  ;;  %v336_v19 = vld [vmem:[%s7562_s19 + $0x20] sm:$0xff]  ;;  %vm3614_vm14 = vcmask 1043456  }
  0x29   : > { %299 = vst [vmem:[#allocation2 + $0x54] sm:$0xf] %v7342_v2  ;;  %2450 = vmatpush.bf16.msra.mxu1 %v6982_v12  ;;  %7166 = vmatpush.bf16.msra.mxu3 %v6982_v12  ;;  %v1804_v0 = vpack.c.b16 %v1773_v58, %v1772_v57  ;;  %v335_v12 = vld [vmem:[%s7562_s19 + $0x18] sm:$0xff]  ;;  %v366_v18 = vpack.c.bf16 %v334_v11, %v334_v11  ;;  %v561_v33 = vshrl.u32 %v383_v25, 16  ;;  %v564_v51 = vshll.u32 %v383_v25, 16  ;;  %v7002_v11 = vld [vmem:[%s10450_s1 + $0xf0] sm:$0xff]  ;;  %vm8747_vm15 = vmand %vm3614_vm14, %vm721_vm5 }
  0x2a   : > { %300 = vst [vmem:[#allocation2 + $0x58] sm:$0xf] %v7342_v2  ;;  %v367_v23 = vpack.c.bf16 %v335_v12, %v335_v12  ;;  %v7010_v12 = vld [vmem:[%s10450_s1 + $0x130] sm:$0xff]  ;;  %vm3620_vm0 = vcmask 1040384   ;;  %s10275_s29 = scalar_lea.vmem [#allocation4], %s6207_s23  ;;  %s7152_s8 = sshll.u32 %s7406_s28, 8 }
  0x2b   : > { %301 = vst [vmem:[#allocation2 + $0x5c] sm:$0x1] %v7342_v2  ;;  %v417_v29 = vshrl.u32 %v366_v18, 16  ;;  %v420_v46 = vshll.u32 %v366_v18, 16  ;;  %v563_v50 = vrot.slane %v561_v33, 7  ;;  %v7730_v33 = vpack.c.bf16 %v336_v19, %v336_v19  ;;  %vm8760_vm1 = vmand %vm3620_vm0, %vm396_vm2  ;;  %s6138_s14 = sshll.u32 %s10275_s29, 4  ;;  %s6139_s14 = int_to_ptr.vmem [resolvable:$true] %s6138_s14 }
  0x2c   : > { %302 = vst [vmem:[#allocation2 + $0x60] sm:$0xf] %v7342_v2  ;;  %2362 = vmatpush.bf16.msra.mxu0 %v6973_v13  ;;  %7159 = vmatpush.bf16.msra.mxu2 %v6973_v13  ;;  %v350_v13 = vld [vmem:[%s7562_s19 + $0x90] sm:$0xff]  ;;  %v425_v31 = vshrl.u32 %v367_v23, 16  ;;  %v428_v47 = vshll.u32 %v367_v23, 16  ;;  %s6126_s28 = scalar_lea.sflag [#allocation5], %s269_s20 }
  0x2d   : > { %303 = vst [vmem:[#allocation2 + $0x64] sm:$0xf] %v7342_v2  ;;  %2451 = vmatpush.bf16.msra.mxu1 %v6981_v14  ;;  %7167 = vmatpush.bf16.msra.mxu3 %v6981_v14  ;;  %v382_v24 = vpack.c.bf16 %v350_v13, %v350_v13  ;;  %v419_v45 = vrot.slane %v417_v29, 7  ;;  %v568_v8 = vrot.slane %v563_v50, 4  ;;  %s7298_s22 = scalar_lea.hbm %s10456_s7, 512 }
  0x2e   : > { %304 = vst [vmem:[#allocation2 + $0x68] sm:$0x1] %v7342_v2  ;;  %v427_v48 = vrot.slane %v425_v31, 7 }
  0x2f   : > { %305 = vst [vmem:[#allocation2 + $0x6c] sm:$0xf] %v7342_v2  ;;  %v553_v32 = vshrl.u32 %v382_v24, 16  ;;  %v423_v61 = vrot.slane %v419_v45, 4 }
  0x30   : > { %306 = vst [vmem:[#allocation2 + $0x70] sm:$0xf] %v7342_v2  ;;  %2363 = vmatpush.bf16.msra.mxu0 %v6972_v15  ;;  %7160 = vmatpush.bf16.msra.mxu2 %v6972_v15  ;;  %v402_v15 = vrot.slane %v400_v59, 7  ;;  %v430_v62 = vor.u32 %v428_v47, %v427_v48 }
  0x31   : > { %307 = vst [vmem:[#allocation2 + $0x74] sm:$0x1] %v7342_v2  ;;  %2452 = vmatpush.bf16.msra.mxu1 %v6980_v26  ;;  %7168 = vmatpush.bf16.msra.mxu3 %v6980_v26  ;;  %v546_v26 = vrot.slane %v544_v6, 7  ;;  %v555_v49 = vrot.slane %v553_v32, 7 }
  0x32   : > { %308 = vst [vmem:[#allocation2 + $0x78] sm:$0xf] %v7342_v2  ;;  %v405_v36 = vor.u32 %v403_v5, %v402_v15  ;;  %v406_v38 = vrot.slane %v402_v15, 4  ;;  %v432_v5 = vrot.slane %v427_v48, 4 }
  0x33   : > { %309 = vst [vmem:[#allocation2 + $0x7c] sm:$0xf] %v7342_v2  ;;  %2364 = vmatmul.bf16.vlgmr.msra.gmra.mxu0 %v7044_v16  ;;  %v775_v9 = vld [vmem:[#allocation2 + $0x60] sm:$0xf]  ;;  %v7651_v16 = vrot.slane %v408_v60, 7  ;;  %v551_v57 = vrot.slane %v546_v26, 4  ;;  %v7689_v60 = vor.u32 %v420_v46, %v419_v45 }
  0x34   : > { %310 = vst [vmem:[#allocation2 + $0x80] sm:$0x1] %v7342_v2  ;;  %2534 = vmatpush.bf16.msrb.mxu2 %v6995_v27  ;;  %2453 = vmatmul.bf16.vlgmr.msra.gmra.mxu1 %v1804_v0  ;;  %v547_v27 = vshll.u32 %v7615_v54, 16  ;;  %v776_v34 = vsel %vm7647_vm9, %v524_v7, %v775_v9  ;;  %v724_v53 = vsel %vm7647_vm9, %v405_v36, %v723_v37  ;;  %v556_v54 = vshll.u32 %v382_v24, 16  ;;  %v737_v9 = vld [vmem:[#allocation2 + $0x20] sm:$0x1] }
  0x35   : > { %311 = vst [vmem:[#allocation2 + $0x84] sm:$0xf] %v7342_v2  ;;  %2623 = vmatpush.bf16.msrb.mxu3 %v7003_v3  ;;  %2712 = vmatpush.bf16.msrb.mxu0 %v7011_v4  ;;  %v779_v21 = vld [vmem:[#allocation2 + $0x68] sm:$0x1]  ;;  %v413_v39 = vor.u32 %v411_v10, %v7651_v16  ;;  %v415_v52 = vrot.slane %v7651_v16, 4  ;;  %v559_v0 = vrot.slane %v555_v49, 4  ;;  %v566_v3 = vor.u32 %v564_v51, %v563_v50 }
  0x36   : > { %312 = vst [vmem:[#allocation2 + $0x88] sm:$0xf] %v7342_v2  ;;  %v780_v35 = vsel %vm7657_vm10, %v534_v63, %v779_v21  ;;  %v782_v43 = vld [vmem:[#allocation2 + $0x6c] sm:$0xf]  ;;  %v549_v44 = vor.u32 %v547_v27, %v546_v26  ;;  %v7691_v63 = vld [vmem:[#allocation2 + $0x18] sm:$0xf]  ;;  %v7696_v6 = vor.u32 %v556_v54, %v555_v49  ;;  %v431_v16 = vsel %vm7627_vm8, %v423_v61, %v430_v62 }
  0x37   : > { %313 = vst [vmem:[#allocation2 + $0x8c] sm:$0x1] %v7342_v2  ;;  %v414_v55 = vsel %vm7627_vm8, %v406_v38, %v413_v39  ;;  %v783_v58 = vsel %vm7647_vm9, %v541_v40, %v782_v43  ;;  %v731_v4 = vsel %vm7657_vm10, %v415_v52, %v730_v56  ;;  %v734_v17 = vsel %vm7647_vm9, %v7689_v60, %v7691_v63  ;;  %v337_v21 = vld [vmem:[%s7562_s19 + $0x28] sm:$0xff] }
  0x38   : > { %314 = vst [vmem:[#allocation2 + $0x90] sm:$0xf] %v7342_v2  ;;  %2535 = vmatpush.bf16.msrb.mxu2 %v6994_v28  ;;  %v786_v59 = vld [vmem:[#allocation2 + $0x74] sm:$0x1]  ;;  %v7717_v18 = vsel %vm7627_vm8, %v559_v0, %v566_v3  ;;  %v738_v27 = vsel %vm7657_vm10, %v432_v5, %v737_v9  ;;  %v352_v28 = vld [vmem:[%s7562_s19 + $0xa0] sm:$0xff]  ;;  %v6993_v38 = vld [vmem:[%s10450_s1 + $0xa8] sm:$0xff]  ;;  %v7735_v39 = vpack.c.bf16 %v337_v21, %v337_v21 }
  0x39   : > { %315 = vst [vmem:[#allocation2 + $0x94] sm:$0xf] %v7342_v2  ;;  %v7698_v7 = vld [vmem:[#allocation2 + $0x78] sm:$0xf]  ;;  %v787_v10 = vsel %vm7657_vm10, %v551_v57, %v786_v59  ;;  %2624 = vmatpush.bf16.msrb.mxu3 %v7002_v11  ;;  %2713 = vmatpush.bf16.msrb.mxu0 %v7010_v12  ;;  %v7737_v46 = vpack.c.bf16 %v352_v28, %v352_v28 }
  0x3a   : > { %316 = vst [vmem:[#allocation2 + $0x98] sm:$0x1] %v7342_v2  ;;  %v790_v26 = vsel %vm7647_vm9, %v7696_v6, %v7698_v7 }
  0x3b   : > { %317 = vst [vmem:[#allocation2 + $0x9c] sm:$0xf] %v7342_v2  ;;  %v793_v13 = vld [vmem:[#allocation2 + $0x80] sm:$0x1] }
  0x3c   : > { %318 = vst [vmem:[#allocation2 + $0xa0] sm:$0xf] %v7342_v2  ;;  %v794_v32 = vsel %vm7657_vm10, %v568_v8, %v793_v13  ;;  %2536 = vmatpush.bf16.msrb.mxu2 %v6993_v38  ;;  %v442_v38 = vshrl.u32 %v7735_v39, 16 }
  0x3d   : > { %319 = vst [vmem:[#allocation2 + $0xa4] sm:$0x1] %v7342_v2 }
  0x3e   : > { %320 = vst [vmem:[#allocation2 + $0xa8] sm:$0xf] %v7342_v2 }
  0x3f   : > { %321 = vst [vmem:[#allocation2 + $0xac] sm:$0xf] %v7342_v2 }
  0x40   : > { %322 = vst [vmem:[#allocation2 + $0xb0] sm:$0x1] %v7342_v2 }
  0x41   : > { %323 = vst [vmem:[#allocation2 + $0xb4] sm:$0xf] %v7342_v2 }
  0x42   : > { %324 = vst [vmem:[#allocation2 + $0xb8] sm:$0xf] %v7342_v2 }
  0x43   : > { %325 = vst [vmem:[#allocation2 + $0xbc] sm:$0x1] %v7342_v2 }
  0x44   : > { %326 = vst [vmem:[#allocation2 + $0xc0] sm:$0xf] %v7342_v2 }
  0x45   : > { %327 = vst [vmem:[#allocation2 + $0xc4] sm:$0xf] %v7342_v2 }
  0x46   : > { %328 = vst [vmem:[#allocation2 + $0xc8] sm:$0x1] %v7342_v2 }
  0x47   : > { %329 = vst [vmem:[#allocation2 + $0xcc] sm:$0xf] %v7342_v2 }
  0x48   : > { %330 = vst [vmem:[#allocation2 + $0xd0] sm:$0xf] %v7342_v2 }
  0x49   : > { %331 = vst [vmem:[#allocation2 + $0xd4] sm:$0x1] %v7342_v2 }
  0x4a   : > { %838 = vst [vmem:[#allocation3] sm:$0xf] %v7342_v2 }
  0x4b   : > { %839 = vst [vmem:[#allocation3 + $0x4] sm:$0xf] %v7342_v2 }
  0x4c   : > { %840 = vst [vmem:[#allocation3 + $0x8] sm:$0x1] %v7342_v2 }
  0x4d   : > { %841 = vst [vmem:[#allocation3 + $0xc] sm:$0xf] %v7342_v2 }
  0x4e   : > { %842 = vst [vmem:[#allocation3 + $0x10] sm:$0xf] %v7342_v2 }
  0x4f   : > { %843 = vst [vmem:[#allocation3 + $0x14] sm:$0x1] %v7342_v2 }
  0x50   : > { %844 = vst [vmem:[#allocation3 + $0x18] sm:$0xf] %v7342_v2 }
  0x51   : > { %845 = vst [vmem:[#allocation3 + $0x1c] sm:$0xf] %v7342_v2 }
  0x52   : > { %846 = vst [vmem:[#allocation3 + $0x20] sm:$0x1] %v7342_v2 }
  0x53   : > { %847 = vst [vmem:[#allocation3 + $0x24] sm:$0xf] %v7342_v2 }
  0x54   : > { %848 = vst [vmem:[#allocation3 + $0x28] sm:$0xf] %v7342_v2 }
  0x55   : > { %849 = vst [vmem:[#allocation3 + $0x2c] sm:$0x1] %v7342_v2 }
  0x56   : > { %850 = vst [vmem:[#allocation3 + $0x30] sm:$0xf] %v7342_v2 }
  0x57   : > { %851 = vst [vmem:[#allocation3 + $0x34] sm:$0xf] %v7342_v2 }
  0x58   : > { %852 = vst [vmem:[#allocation3 + $0x38] sm:$0x1] %v7342_v2 }
  0x59   : > { %853 = vst [vmem:[#allocation3 + $0x3c] sm:$0xf] %v7342_v2 }
  0x5a   : > { %854 = vst [vmem:[#allocation3 + $0x40] sm:$0xf] %v7342_v2 }
  0x5b   : > { %855 = vst [vmem:[#allocation3 + $0x44] sm:$0x1] %v7342_v2 }
  0x5c   : > { %856 = vst [vmem:[#allocation3 + $0x48] sm:$0xf] %v7342_v2 }
  0x5d   : > { %857 = vst [vmem:[#allocation3 + $0x4c] sm:$0xf] %v7342_v2 }
  0x5e   : > { %858 = vst [vmem:[#allocation3 + $0x50] sm:$0x1] %v7342_v2 }
  0x5f   : > { %859 = vst [vmem:[#allocation3 + $0x54] sm:$0xf] %v7342_v2 }
  0x60   : > { %860 = vst [vmem:[#allocation3 + $0x58] sm:$0xf] %v7342_v2 }
  0x61   : > { %861 = vst [vmem:[#allocation3 + $0x5c] sm:$0x1] %v7342_v2 }
  0x62   : > { %862 = vst [vmem:[#allocation3 + $0x60] sm:$0xf] %v7342_v2 }
  0x63   : > { %863 = vst [vmem:[#allocation3 + $0x64] sm:$0xf] %v7342_v2 }
  0x64   : > { %864 = vst [vmem:[#allocation3 + $0x68] sm:$0x1] %v7342_v2 }
  0x65   : > { %865 = vst [vmem:[#allocation3 + $0x6c] sm:$0xf] %v7342_v2 }
  0x66   : > { %866 = vst [vmem:[#allocation3 + $0x70] sm:$0xf] %v7342_v2 }
  0x67   : > { %867 = vst [vmem:[#allocation3 + $0x74] sm:$0x1] %v7342_v2 }
  0x68   : > { %868 = vst [vmem:[#allocation3 + $0x78] sm:$0xf] %v7342_v2 }
  0x69   : > { %869 = vst [vmem:[#allocation3 + $0x7c] sm:$0xf] %v7342_v2 }
  0x6a   : > { %870 = vst [vmem:[#allocation3 + $0x80] sm:$0x1] %v7342_v2 }
  0x6b   : > { %871 = vst [vmem:[#allocation3 + $0x84] sm:$0xf] %v7342_v2 }
  0x6c   : > { %872 = vst [vmem:[#allocation3 + $0x88] sm:$0xf] %v7342_v2 }
  0x6d   : > { %873 = vst [vmem:[#allocation3 + $0x8c] sm:$0x1] %v7342_v2 }
  0x6e   : > { %874 = vst [vmem:[#allocation3 + $0x90] sm:$0xf] %v7342_v2 }
  0x6f   : > { %875 = vst [vmem:[#allocation3 + $0x94] sm:$0xf] %v7342_v2 }
  0x70   : > { %876 = vst [vmem:[#allocation3 + $0x98] sm:$0x1] %v7342_v2 }
  0x71   : > { %877 = vst [vmem:[#allocation3 + $0x9c] sm:$0xf] %v7342_v2 }
  0x72   : > { %878 = vst [vmem:[#allocation3 + $0xa0] sm:$0xf] %v7342_v2 }
  0x73   : > { %879 = vst [vmem:[#allocation3 + $0xa4] sm:$0x1] %v7342_v2 }
  0x74   : > { %880 = vst [vmem:[#allocation3 + $0xa8] sm:$0xf] %v7342_v2 }
  0x75   : > { %881 = vst [vmem:[#allocation3 + $0xac] sm:$0xf] %v7342_v2 }
  0x76   : > { %882 = vst [vmem:[#allocation3 + $0xb0] sm:$0x1] %v7342_v2 }
  0x77   : > { %883 = vst [vmem:[#allocation3 + $0xb4] sm:$0xf] %v7342_v2 }
  0x78   : > { %884 = vst [vmem:[#allocation3 + $0xb8] sm:$0xf] %v7342_v2 }
  0x79   : > { %885 = vst [vmem:[#allocation3 + $0xbc] sm:$0x1] %v7342_v2 }
  0x7a   : > { %886 = vst [vmem:[#allocation3 + $0xc0] sm:$0xf] %v7342_v2 }
  0x7b   : > { %887 = vst [vmem:[#allocation3 + $0xc4] sm:$0xf] %v7342_v2 }
  0x7c   : > { %888 = vst [vmem:[#allocation3 + $0xc8] sm:$0x1] %v7342_v2 }
  0x7d   : > { %889 = vst [vmem:[#allocation3 + $0xcc] sm:$0xf] %v7342_v2 }
  0x7e   : > { %890 = vst [vmem:[#allocation3 + $0xd0] sm:$0xf] %v7342_v2 }
  0x7f   : > { %891 = vst [vmem:[#allocation3 + $0xd4] sm:$0x1] %v7342_v2  ;;  %v550_v2 = vsel %vm7627_vm8, %v542_v41, %v549_v44 }
  0x80   : > { %777 = vst [vmem:[#allocation2 + $0x60] sm:$0xf] %v776_v34 }
  0x81   : > { %778 = vst.msk [vmem:[#allocation2 + $0x64] sm:$0xf] %vm720_vm6, %v533_v30 }
  0x82   : > { %781 = vst [vmem:[#allocation2 + $0x68] sm:$0x1] %v780_v35 }
  0x83   : > { %725 = vst [vmem:[#allocation2 + $0xc] sm:$0xf] %v724_v53 }
  0x84   : > { %727 = vst.msk [vmem:[#allocation2 + $0x10] sm:$0xf] %vm720_vm6, %v414_v55 }
  0x85   : > { %784 = vst [vmem:[#allocation2 + $0x6c] sm:$0xf] %v783_v58 }
  0x86   : > { %785 = vst.msk [vmem:[#allocation2 + $0x70] sm:$0xf] %vm720_vm6, %v550_v2 }
  0x87   : > { %v1060_v15 = vld [vmem:[#allocation2 + $0x60] sm:$0xf]  ;;  %732 = vst [vmem:[#allocation2 + $0x14] sm:$0x1] %v731_v4 }
  0x88   : > { %v7052_v22 = vld [vmem:[#allocation2 + $0x60] sm:$0xff]  ;;  %v1286_v24 = vshrl.u32 %v1060_v15, 16  ;;  %v1289_v25 = vshll.u32 %v1060_v15, 16  ;;  %788 = vst [vmem:[#allocation2 + $0x74] sm:$0x1] %v787_v10 }
  0x89   : > { %v1061_v23 = vld [vmem:[#allocation2 + $0x64] sm:$0xf]  ;;  %v1062_v29 = vld [vmem:[#allocation2 + $0x68] sm:$0x1]  ;;  %2404 = vmatmul.bf16.vlgmr.msra.gmra.mxu2 %v7052_v22  ;;  %735 = vst [vmem:[#allocation2 + $0x18] sm:$0xf] %v734_v17 }
  0x8a   : > { %v1295_v30 = vshll.u32 %v1061_v23, 16  ;;  %v1299_v31 = vshrl.u32 %v1061_v23, 16  ;;  %v1288_v34 = vrot.slane %v1286_v24, 4  ;;  %v1291_v35 = vrot.slane %v1289_v25, 5  ;;  %v1039_v37 = vld [vmem:[#allocation2 + $0xc] sm:$0xf] }
  0x8b   : > { %v1305_v36 = vshll.u32 %v1062_v29, 16  ;;  %v7045_v43 = vld [vmem:[#allocation2 + $0xc] sm:$0xff]  ;;  %v1118_v45 = vshrl.u32 %v1039_v37, 16  ;;  %v1121_v49 = vshll.u32 %v1039_v37, 16  ;;  %736 = vst.msk [vmem:[#allocation2 + $0x1c] sm:$0xf] %vm720_vm6, %v431_v16 }
  0x8c   : > { %v1297_v40 = vrot.slane %v1295_v30, 5  ;;  %v1301_v41 = vrot.slane %v1299_v31, 4  ;;  %v1040_v44 = vld [vmem:[#allocation2 + $0x10] sm:$0xf]  ;;  %v1292_v47 = vor.u32 %v1291_v35, %v1288_v34  ;;  %v1063_v51 = vld [vmem:[#allocation2 + $0x6c] sm:$0xf]  ;;  %2369 = vmatmul.bf16.gmra.mxu0 %v7045_v43 }
  0x8d   : > { %v1307_v48 = vrot.slane %v1305_v36, 5  ;;  %v1127_v50 = vshll.u32 %v1040_v44, 16  ;;  %v1120_v53 = vrot.slane %v1118_v45, 4  ;;  %v1131_v54 = vshrl.u32 %v1040_v44, 16  ;;  %v1064_v55 = vld [vmem:[#allocation2 + $0x70] sm:$0xf] }
  0x8e   : > { %v1302_v52 = vor.u32 %v1301_v41, %v1297_v40  ;;  %v1310_v56 = vshrl.u32 %v1063_v51, 16  ;;  %v1293_v2 = vrot.slane %v1292_v47, 4  ;;  %v1041_v57 = vld [vmem:[#allocation2 + $0x14] sm:$0x1]  ;;  %v1123_v58 = vrot.slane %v1121_v49, 5  ;;  %v7053_v28 = vld [vmem:[#allocation2 + $0x6c] sm:$0xff] }
  0x8f   : > { %v1129_v59 = vrot.slane %v1127_v50, 5  ;;  %v1313_v60 = vshll.u32 %v1063_v51, 16  ;;  %v1133_v62 = vrot.slane %v1131_v54, 4  ;;  %v1137_v63 = vshll.u32 %v1041_v57, 16  ;;  %v1065_v5 = vld [vmem:[#allocation2 + $0x74] sm:$0x1] }
  0x90   : > { %v1303_v61 = vrot.slane %v1302_v52, 4  ;;  %v1312_v0 = vrot.slane %v1310_v56, 4  ;;  %v1298_v3 = vsel %vm7596_vm4, %v1293_v2, %v1297_v40  ;;  %v1124_v4 = vor.u32 %v1123_v58, %v1120_v53  ;;  %791 = vst [vmem:[#allocation2 + $0x78] sm:$0xf] %v790_v26  ;;  %v353_v34 = vld [vmem:[%s7562_s19 + $0xa8] sm:$0xff] }
  0x91   : > { %v1315_v6 = vrot.slane %v1313_v60, 5  ;;  %v1319_v7 = vshll.u32 %v1064_v55, 16  ;;  %v1788_v9 = vunpack.c.l.b16 %v1298_v3  ;;  %v1134_v10 = vor.u32 %v1133_v62, %v1129_v59  ;;  %792 = vst.msk [vmem:[#allocation2 + $0x7c] sm:$0xf] %vm720_vm6, %v7717_v18  ;;  %v1042_v36 = vld [vmem:[#allocation2 + $0x18] sm:$0xf] }
  0x92   : > { %v1308_v8 = vsel %vm7596_vm4, %v1303_v61, %v1307_v48  ;;  %v1139_v11 = vrot.slane %v1137_v63, 5  ;;  %v1125_v13 = vrot.slane %v1124_v4, 4  ;;  %v1323_v21 = vshrl.u32 %v1064_v55, 16  ;;  %739 = vst [vmem:[#allocation2 + $0x20] sm:$0x1] %v738_v27  ;;  %v7046_v53 = vld [vmem:[#allocation2 + $0x18] sm:$0xff] }
  0x93   : > { %v1789_v12 = vunpack.c.l.b16 %v1308_v8  ;;  %v1316_v15 = vor.u32 %v1315_v6, %v1312_v0  ;;  %v1321_v17 = vrot.slane %v1319_v7, 5  ;;  %v1135_v19 = vrot.slane %v1134_v10, 4  ;;  %795 = vst [vmem:[#allocation2 + $0x80] sm:$0x1] %v794_v32  ;;  %v7001_v32 = vld [vmem:[%s10450_s1 + $0xe8] sm:$0xff] }
  0x94   : > { %v1329_v22 = vshll.u32 %v1065_v5, 16  ;;  %v434_v16 = vshrl.u32 %v7730_v33, 16  ;;  %v1130_v24 = vsel %vm7596_vm4, %v1125_v13, %v1129_v59  ;;  %v437_v26 = vshll.u32 %v7730_v33, 16  ;;  %v7009_v33 = vld [vmem:[%s10450_s1 + $0x128] sm:$0xff]  ;;  %v1043_v43 = vld [vmem:[#allocation2 + $0x1c] sm:$0xf]  ;;  %2625 = vmatpush.bf16.msrb.mxu3 %v7001_v32 }
  0x95   : > { %v7747_v23 = vpack.c.b16 %v1789_v12, %v1788_v9  ;;  %v1317_v25 = vrot.slane %v1316_v15, 4  ;;  %v1140_v18 = vsel %vm7596_vm4, %v1135_v19, %v1139_v11  ;;  %v1774_v29 = vunpack.c.l.b16 %v1130_v24  ;;  %2714 = vmatpush.bf16.msrb.mxu0 %v7009_v33  ;;  %v6992_v5 = vld [vmem:[%s10450_s1 + $0xa0] sm:$0xff] }
  0x96   : > { %v1325_v30 = vrot.slane %v1323_v21, 4  ;;  %v1331_v31 = vrot.slane %v1329_v22, 5  ;;  %v1775_v27 = vunpack.c.l.b16 %v1140_v18  ;;  %v7764_v37 = vrot.slane %v434_v16, 7  ;;  %2537 = vmatpush.bf16.msrb.mxu2 %v6992_v5 }
  0x97   : > { %10528 = vst [vmem:[#allocation7_spill] sm:$0xff] %v7747_v23  ;;  %2493 = vmatmul.bf16.vlgmr.msra.gmra.mxu3 %v7747_v23  ;;  %v1322_v35 = vsel %vm7596_vm4, %v1317_v25, %v1321_v17  ;;  %v1142_v44 = vshrl.u32 %v1042_v36, 16  ;;  %v1145_v45 = vshll.u32 %v1042_v36, 16  ;;  %v1151_v48 = vshll.u32 %v1043_v43, 16  ;;  %v1066_v50 = vld [vmem:[#allocation2 + $0x78] sm:$0xf] }
  0x98   : > { %v1326_v40 = vor.u32 %v1325_v30, %v1321_v17  ;;  %v1790_v41 = vunpack.c.l.b16 %v1322_v35  ;;  %v7767_v47 = vpack.c.b16 %v1775_v27, %v1774_v29  ;;  %v1155_v49 = vshrl.u32 %v1043_v43, 16  ;;  %v1067_v56 = vld [vmem:[#allocation2 + $0x7c] sm:$0xf]  ;;  %v744_v36 = vld [vmem:[#allocation2 + $0x2c] sm:$0x1] }
  0x99   : > { %v439_v51 = vor.u32 %v437_v26, %v7764_v37  ;;  %v1144_v54 = vrot.slane %v1142_v44, 4  ;;  %v1147_v55 = vrot.slane %v1145_v45, 5  ;;  %v7770_v2 = vpack.c.bf16 %v353_v34, %v353_v34  ;;  %2409 = vmatmul.bf16.gmra.mxu2 %v7053_v28  ;;  %v1044_v57 = vld [vmem:[#allocation2 + $0x20] sm:$0x1]  ;;  %v740_v26 = vld [vmem:[#allocation2 + $0x24] sm:$0xf] }
  0x9a   : > { %v1327_v52 = vrot.slane %v1326_v40, 4  ;;  %2458 = vmatmul.bf16.gmra.mxu1 %v7767_v47  ;;  %v1153_v58 = vrot.slane %v1151_v48, 5  ;;  %v1157_v59 = vrot.slane %v1155_v49, 4  ;;  %v1334_v60 = vshrl.u32 %v1066_v50, 16  ;;  %v1068_v3 = vld [vmem:[#allocation2 + $0x80] sm:$0x1] }
  0x9b   : > { %v1337_v61 = vshll.u32 %v1066_v50, 16  ;;  %v1148_v63 = vor.u32 %v1147_v55, %v1144_v54  ;;  %v1161_v0 = vshll.u32 %v1044_v57, 16  ;;  %v1343_v4 = vshll.u32 %v1067_v56, 16  ;;  %v338_v40 = vld [vmem:[%s7562_s19 + $0x30] sm:$0xff]  ;;  %v800_v55 = vld [vmem:[#allocation2 + $0x8c] sm:$0x1] }
  0x9c   : > { %v1332_v62 = vsel %vm7596_vm4, %v1327_v52, %v1331_v31  ;;  %v1158_v7 = vor.u32 %v1157_v59, %v1153_v58  ;;  %v1336_v8 = vrot.slane %v1334_v60, 4  ;;  %2374 = vmatmul.bf16.gmra.mxu0 %v7046_v53  ;;  %v1347_v13 = vshrl.u32 %v1067_v56, 16  ;;  %v355_v59 = vld [vmem:[%s7562_s19 + $0xb8] sm:$0xff] }
  0x9d   : > { %v1791_v6 = vunpack.c.l.b16 %v1332_v62  ;;  %v1339_v9 = vrot.slane %v1337_v61, 5  ;;  %v1149_v10 = vrot.slane %v1148_v63, 4  ;;  %v1163_v11 = vrot.slane %v1161_v0, 5  ;;  %v7000_v63 = vld [vmem:[%s10450_s1 + $0xe0] sm:$0xff] }
  0x9e   : > { %v1345_v12 = vrot.slane %v1343_v4, 5  ;;  %v1159_v17 = vrot.slane %v1158_v7, 4  ;;  %v1353_v21 = vshll.u32 %v1068_v3, 16  ;;  %v1349_v16 = vrot.slane %v1347_v13, 4  ;;  %v7008_v0 = vld [vmem:[%s10450_s1 + $0x120] sm:$0xff]  ;;  %2626 = vmatpush.bf16.msrb.mxu3 %v7000_v63 }
  0x9f   : > { %v7778_v15 = vpack.c.b16 %v1791_v6, %v1790_v41  ;;  %v1340_v19 = vor.u32 %v1339_v9, %v1336_v8  ;;  %v1154_v22 = vsel %vm7596_vm4, %v1149_v10, %v1153_v58  ;;  %v440_v24 = vrot.slane %v7764_v37, 4  ;;  %v339_v41 = vld [vmem:[%s7562_s19 + $0x38] sm:$0xff]  ;;  %v354_v58 = vld [vmem:[%s7562_s19 + $0xb0] sm:$0xff]  ;;  %v340_v7 = vld [vmem:[%s7562_s19 + $0x40] sm:$0xff]  ;;  %2715 = vmatpush.bf16.msrb.mxu0 %v7008_v0 }
  0xa0   : > { %v444_v25 = vrot.slane %v442_v38, 7  ;;  %v1164_v28 = vsel %vm7596_vm4, %v1159_v17, %v1163_v11  ;;  %v1776_v18 = vunpack.c.l.b16 %v1154_v22  ;;  %v1355_v30 = vrot.slane %v1353_v21, 5  ;;  %v341_v21 = vld [vmem:[%s7562_s19 + $0x48] sm:$0xff] }
  0xa1   : > { %10529 = vst [vmem:[#allocation8_spill] sm:$0xff] %v7778_v15  ;;  %v1341_v29 = vrot.slane %v1340_v19, 4  ;;  %v1777_v31 = vunpack.c.l.b16 %v1164_v28  ;;  %v1350_v34 = vor.u32 %v1349_v16, %v1345_v12  ;;  %v445_v27 = vshll.u32 %v7735_v39, 16 }
  0xa2   : > { %v449_v35 = vrot.slane %v444_v25, 4  ;;  %v741_v33 = vsel %vm7647_vm9, %v439_v51, %v740_v26  ;;  %v570_v37 = vshrl.u32 %v7737_v46, 16  ;;  %v573_v38 = vshll.u32 %v7737_v46, 16  ;;  %v796_v51 = vld [vmem:[#allocation2 + $0x84] sm:$0xf]  ;;  %v7054_v46 = vld [vmem:[#allocation2 + $0x78] sm:$0xff] }
  0xa3   : > { %v1346_v32 = vsel %vm7596_vm4, %v1341_v29, %v1345_v12  ;;  %v7794_v43 = vpack.c.b16 %v1777_v31, %v1776_v18  ;;  %v1351_v44 = vrot.slane %v1350_v34, 4  ;;  %v447_v39 = vor.u32 %v445_v27, %v444_v25  ;;  %742 = vst [vmem:[#allocation2 + $0x24] sm:$0xf] %v741_v33  ;;  %v747_v25 = vld [vmem:[#allocation2 + $0x30] sm:$0xf]  ;;  %v6991_v26 = vld [vmem:[%s10450_s1 + $0x98] sm:$0xff] }
  0xa4   : > { %v1792_v45 = vunpack.c.l.b16 %v1346_v32  ;;  %v572_v48 = vrot.slane %v570_v37, 7  ;;  %v578_v49 = vshrl.u32 %v7770_v2, 16  ;;  %v581_v50 = vshll.u32 %v7770_v2, 16  ;;  %2538 = vmatpush.bf16.msrb.mxu2 %v6991_v26  ;;  %v807_v26 = vld [vmem:[#allocation2 + $0x98] sm:$0x1] }
  0xa5   : > { %v745_v52 = vsel %vm7657_vm10, %v449_v35, %v744_v36  ;;  %v1356_v53 = vsel %vm7596_vm4, %v1351_v44, %v1355_v30  ;;  %v448_v54 = vsel %vm7627_vm8, %v440_v24, %v447_v39  ;;  %v370_v56 = vpack.c.bf16 %v338_v40, %v338_v40 }
  0xa6   : > { %746 = vst [vmem:[#allocation2 + $0x2c] sm:$0x1] %v745_v52  ;;  %v371_v57 = vpack.c.bf16 %v339_v41, %v339_v41  ;;  %v1793_v2 = vunpack.c.l.b16 %v1356_v53  ;;  %v575_v60 = vor.u32 %v573_v38, %v572_v48  ;;  %v576_v61 = vrot.slane %v572_v48, 4 }
  0xa7   : > { %2498 = vmatmul.bf16.gmra.mxu3 %v7778_v15  ;;  %743 = vst.msk [vmem:[#allocation2 + $0x28] sm:$0xf] %vm720_vm6, %v448_v54  ;;  %v580_v62 = vrot.slane %v578_v49, 7  ;;  %v451_v3 = vshrl.u32 %v370_v56, 16  ;;  %v454_v4 = vshll.u32 %v370_v56, 16  ;;  %v386_v17 = vpack.c.bf16 %v354_v58, %v354_v58 }
  0xa8   : > { %v459_v5 = vshrl.u32 %v371_v57, 16  ;;  %v462_v6 = vshll.u32 %v371_v57, 16  ;;  %v7815_v8 = vpack.c.b16 %v1793_v2, %v1792_v45  ;;  %v797_v11 = vsel %vm7647_vm9, %v575_v60, %v796_v51  ;;  %v751_v45 = vld [vmem:[#allocation2 + $0x38] sm:$0x1] }
  0xa9   : > { %v583_v9 = vor.u32 %v581_v50, %v580_v62  ;;  %v585_v10 = vrot.slane %v580_v62, 4  ;;  %798 = vst [vmem:[#allocation2 + $0x84] sm:$0xf] %v797_v11  ;;  %v453_v12 = vrot.slane %v451_v3, 7  ;;  %v7819_v19 = vpack.c.bf16 %v355_v59, %v355_v59  ;;  %2414 = vmatmul.bf16.gmra.mxu2 %v7054_v46  ;;  %v803_v3 = vld [vmem:[#allocation2 + $0x90] sm:$0xf] }
  0xaa   : > { %10530 = vst [vmem:[#allocation9_spill] sm:$0xff] %v7815_v8  ;;  %v461_v13 = vrot.slane %v459_v5, 7  ;;  %2463 = vmatmul.bf16.gmra.mxu1 %v7794_v43  ;;  %v1045_v16 = vld [vmem:[#allocation2 + $0x24] sm:$0xf]  ;;  %v7830_v28 = vpack.c.bf16 %v340_v7, %v340_v7  ;;  %v587_v36 = vshrl.u32 %v386_v17, 16  ;;  %v7835_v32 = vpack.c.bf16 %v341_v21, %v341_v21 }
  0xab   : > { %v584_v22 = vsel %vm7627_vm8, %v576_v61, %v583_v9  ;;  %v801_v24 = vsel %vm7657_vm10, %v585_v10, %v800_v55  ;;  %v1166_v18 = vshrl.u32 %v1045_v16, 16  ;;  %v1169_v29 = vshll.u32 %v1045_v16, 16 }
  0xac   : > { %799 = vst.msk [vmem:[#allocation2 + $0x88] sm:$0xf] %vm720_vm6, %v584_v22  ;;  %v456_v30 = vor.u32 %v454_v4, %v453_v12  ;;  %v457_v31 = vrot.slane %v453_v12, 4  ;;  %v464_v27 = vor.u32 %v462_v6, %v461_v13  ;;  %v466_v35 = vrot.slane %v461_v13, 4 }
  0xad   : > { %v7833_v34 = vld [vmem:[#allocation2 + $0x2c] sm:$0x1]  ;;  %802 = vst [vmem:[#allocation2 + $0x8c] sm:$0x1] %v801_v24  ;;  %v1168_v38 = vrot.slane %v1166_v18, 4  ;;  %v1171_v40 = vrot.slane %v1169_v29, 5 }
  0xae   : > { %v7047_v33 = vld [vmem:[#allocation2 + $0x24] sm:$0xff]  ;;  %v1185_v41 = vshll.u32 %v7833_v34, 16  ;;  %v748_v44 = vsel %vm7647_vm9, %v456_v30, %v747_v25  ;;  %v465_v49 = vsel %vm7627_vm8, %v457_v31, %v464_v27  ;;  %v589_v50 = vrot.slane %v587_v36, 7  ;;  %v6999_v36 = vld [vmem:[%s10450_s1 + $0xd8] sm:$0xff] }
  0xaf   : > { %v7837_v37 = vld [vmem:[#allocation2 + $0x28] sm:$0xf]  ;;  %749 = vst [vmem:[#allocation2 + $0x30] sm:$0xf] %v748_v44  ;;  %2379 = vmatmul.bf16.gmra.mxu0 %v7047_v33  ;;  %v1172_v51 = vor.u32 %v1171_v40, %v1168_v38  ;;  %v590_v46 = vshll.u32 %v386_v17, 16  ;;  %v595_v53 = vshrl.u32 %v7819_v19, 16  ;;  %v752_v4 = vsel %vm7657_vm10, %v466_v35, %v751_v45  ;;  %2627 = vmatpush.bf16.msrb.mxu3 %v6999_v36 }
  0xb0   : > { %v1175_v39 = vshll.u32 %v7837_v37, 16  ;;  %v1179_v48 = vshrl.u32 %v7837_v37, 16  ;;  %v1187_v52 = vrot.slane %v1185_v41, 5  ;;  %750 = vst.msk [vmem:[#allocation2 + $0x34] sm:$0xf] %vm720_vm6, %v465_v49  ;;  %v593_v57 = vrot.slane %v589_v50, 4 }
  0xb1   : > { %v1069_v56 = vld [vmem:[#allocation2 + $0x84] sm:$0xf]  ;;  %v598_v58 = vshll.u32 %v7819_v19, 16  ;;  %v1173_v59 = vrot.slane %v1172_v51, 4  ;;  %v592_v61 = vor.u32 %v590_v46, %v589_v50  ;;  %v597_v0 = vrot.slane %v595_v53, 7  ;;  %v7007_v44 = vld [vmem:[%s10450_s1 + $0x118] sm:$0xff] }
  0xb2   : > { %v1177_v54 = vrot.slane %v1175_v39, 5  ;;  %v1181_v55 = vrot.slane %v1179_v48, 4  ;;  %v1358_v2 = vshrl.u32 %v1069_v56, 16  ;;  %v1361_v60 = vshll.u32 %v1069_v56, 16  ;;  %753 = vst [vmem:[#allocation2 + $0x38] sm:$0x1] %v752_v4  ;;  %2716 = vmatpush.bf16.msrb.mxu0 %v7007_v44 }
  0xb3   : > { %v1070_v63 = vld [vmem:[#allocation2 + $0x88] sm:$0xf]  ;;  %v468_v5 = vshrl.u32 %v7830_v28, 16  ;;  %v600_v16 = vor.u32 %v598_v58, %v597_v0  ;;  %v602_v24 = vrot.slane %v597_v0, 4  ;;  %v804_v27 = vsel %vm7647_vm9, %v592_v61, %v803_v3 }
  0xb4   : > { %v1182_v62 = vor.u32 %v1181_v55, %v1177_v54  ;;  %v1178_v6 = vsel %vm7596_vm4, %v1173_v59, %v1177_v54  ;;  %v1071_v7 = vld [vmem:[#allocation2 + $0x8c] sm:$0x1]  ;;  %v1360_v9 = vrot.slane %v1358_v2, 4  ;;  %v1363_v10 = vrot.slane %v1361_v60, 5  ;;  %v7055_v18 = vld [vmem:[#allocation2 + $0x84] sm:$0xff]  ;;  %v6990_v59 = vld [vmem:[%s10450_s1 + $0x90] sm:$0xff] }
  0xb5   : > { %v1367_v11 = vshll.u32 %v1070_v63, 16  ;;  %v1778_v13 = vunpack.c.l.b16 %v1178_v6  ;;  %v1371_v17 = vshrl.u32 %v1070_v63, 16  ;;  %v1377_v19 = vshll.u32 %v1071_v7, 16  ;;  %805 = vst [vmem:[#allocation2 + $0x90] sm:$0xf] %v804_v27  ;;  %v356_v54 = vld [vmem:[%s7562_s19 + $0xc0] sm:$0xff]  ;;  %2539 = vmatpush.bf16.msrb.mxu2 %v6990_v59 }
  0xb6   : > { %v1183_v12 = vrot.slane %v1182_v62, 4  ;;  %v1364_v21 = vor.u32 %v1363_v10, %v1360_v9  ;;  %v7854_v25 = vld [vmem:[#allocation2 + $0x30] sm:$0xf]  ;;  %v601_v40 = vsel %vm7627_vm8, %v593_v57, %v600_v16  ;;  %v808_v53 = vsel %vm7657_vm10, %v602_v24, %v807_v26  ;;  %v343_v59 = vld [vmem:[%s7562_s19 + $0x58] sm:$0xff] }
  0xb7   : > { %v1369_v22 = vrot.slane %v1367_v11, 5  ;;  %2503 = vmatmul.bf16.gmra.mxu3 %v7815_v8  ;;  %v1373_v30 = vrot.slane %v1371_v17, 4  ;;  %v1379_v31 = vrot.slane %v1377_v19, 5  ;;  %v7861_v35 = vld [vmem:[#allocation2 + $0x34] sm:$0xf]  ;;  %v1190_v41 = vshrl.u32 %v7854_v25, 16 }
  0xb8   : > { %v1188_v29 = vsel %vm7596_vm4, %v1183_v12, %v1187_v52  ;;  %v1365_v38 = vrot.slane %v1364_v21, 4  ;;  %806 = vst.msk [vmem:[#allocation2 + $0x94] sm:$0xf] %vm720_vm6, %v601_v40  ;;  %v1193_v39 = vshll.u32 %v7854_v25, 16  ;;  %v1199_v48 = vshll.u32 %v7861_v35, 16  ;;  %v7880_v52 = vld [vmem:[#allocation2 + $0x30] sm:$0xff] }
  0xb9   : > { %v1779_v33 = vunpack.c.l.b16 %v1188_v29  ;;  %v1374_v45 = vor.u32 %v1373_v30, %v1369_v22  ;;  %v1203_v49 = vshrl.u32 %v7861_v35, 16  ;;  %v1192_v46 = vrot.slane %v1190_v41, 4  ;;  %2419 = vmatmul.bf16.gmra.mxu2 %v7055_v18  ;;  %809 = vst [vmem:[#allocation2 + $0x98] sm:$0x1] %v808_v53  ;;  %v7889_v2 = vld [vmem:[#allocation2 + $0x38] sm:$0x1] }
  0xba   : > { %v1370_v51 = vsel %vm7596_vm4, %v1365_v38, %v1369_v22  ;;  %v1195_v57 = vrot.slane %v1193_v39, 5  ;;  %v1201_v58 = vrot.slane %v1199_v48, 5  ;;  %v470_v61 = vrot.slane %v468_v5, 7  ;;  %v754_v30 = vld [vmem:[#allocation2 + $0x3c] sm:$0xf]  ;;  %v357_v40 = vld [vmem:[%s7562_s19 + $0xc8] sm:$0xff] }
  0xbb   : > { %v7876_v50 = vpack.c.b16 %v1779_v33, %v1778_v13  ;;  %v1375_v55 = vrot.slane %v1374_v45, 4  ;;  %v1794_v56 = vunpack.c.l.b16 %v1370_v51  ;;  %v1205_v60 = vrot.slane %v1203_v49, 4  ;;  %v758_v48 = vld [vmem:[#allocation2 + $0x44] sm:$0x1] }
  0xbc   : > { %v471_v62 = vshll.u32 %v7830_v28, 16  ;;  %v476_v63 = vshrl.u32 %v7835_v32, 16  ;;  %v1196_v3 = vor.u32 %v1195_v57, %v1192_v46  ;;  %v1209_v4 = vshll.u32 %v7889_v2, 16  ;;  %v1072_v5 = vld [vmem:[#allocation2 + $0x90] sm:$0xf] }
  0xbd   : > { %10531 = vst [vmem:[#allocation10_spill] sm:$0xff] %v7876_v50  ;;  %2468 = vmatmul.bf16.gmra.mxu1 %v7876_v50  ;;  %v1380_v0 = vsel %vm7596_vm4, %v1375_v55, %v1379_v31  ;;  %v479_v6 = vshll.u32 %v7835_v32, 16  ;;  %v1206_v9 = vor.u32 %v1205_v60, %v1201_v58  ;;  %v474_v11 = vrot.slane %v470_v61, 4  ;;  %v358_v60 = vld [vmem:[%s7562_s19 + $0xd0] sm:$0xff] }
  0xbe   : > { %v1795_v7 = vunpack.c.l.b16 %v1380_v0  ;;  %v473_v10 = vor.u32 %v471_v62, %v470_v61  ;;  %v1197_v12 = vrot.slane %v1196_v3, 4  ;;  %v1211_v13 = vrot.slane %v1209_v4, 5 }
  0xbf   : > { %v478_v17 = vrot.slane %v476_v63, 7  ;;  %v388_v28 = vpack.c.bf16 %v356_v54, %v356_v54  ;;  %2384 = vmatmul.bf16.gmra.mxu0 %v7880_v52  ;;  %v1207_v21 = vrot.slane %v1206_v9, 4  ;;  %v1073_v22 = vld [vmem:[#allocation2 + $0x94] sm:$0xf]  ;;  %v1382_v16 = vshrl.u32 %v1072_v5, 16 }
  0xc0   : > { %v7897_v19 = vpack.c.b16 %v1795_v7, %v1794_v56  ;;  %v1385_v24 = vshll.u32 %v1072_v5, 16  ;;  %v1202_v32 = vsel %vm7596_vm4, %v1197_v12, %v1201_v58  ;;  %v1391_v26 = vshll.u32 %v1073_v22, 16  ;;  %v1074_v36 = vld [vmem:[#allocation2 + $0x98] sm:$0x1]  ;;  %v342_v54 = vld [vmem:[%s7562_s19 + $0x50] sm:$0xff] }
  0xc1   : > { %v1395_v18 = vshrl.u32 %v1073_v22, 16  ;;  %v481_v29 = vor.u32 %v479_v6, %v478_v17  ;;  %v1212_v31 = vsel %vm7596_vm4, %v1207_v21, %v1211_v13  ;;  %v1780_v27 = vunpack.c.l.b16 %v1202_v32  ;;  %v7056_v61 = vld [vmem:[#allocation2 + $0x90] sm:$0xff]  ;;  %v359_v32 = vld [vmem:[%s7562_s19 + $0xd8] sm:$0xff] }
  0xc2   : > { %v1384_v33 = vrot.slane %v1382_v16, 4  ;;  %v1387_v38 = vrot.slane %v1385_v24, 5  ;;  %v1781_v41 = vunpack.c.l.b16 %v1212_v31  ;;  %v1393_v44 = vrot.slane %v1391_v26, 5  ;;  %v6998_v9 = vld [vmem:[%s10450_s1 + $0xd0] sm:$0xff]  ;;  %v810_v16 = vld [vmem:[#allocation2 + $0x9c] sm:$0xf] }
  0xc3   : > { %v1397_v45 = vrot.slane %v1395_v18, 4  ;;  %v1401_v39 = vshll.u32 %v1074_v36, 16  ;;  %v482_v51 = vsel %vm7627_vm8, %v474_v11, %v481_v29  ;;  %v483_v46 = vrot.slane %v478_v17, 4  ;;  %v7006_v13 = vld [vmem:[%s10450_s1 + $0x110] sm:$0xff]  ;;  %2628 = vmatpush.bf16.msrb.mxu3 %v6998_v9 }
  0xc4   : > { %v1388_v49 = vor.u32 %v1387_v38, %v1384_v33  ;;  %v755_v53 = vsel %vm7647_vm9, %v473_v10, %v754_v30  ;;  %v7910_v55 = vpack.c.b16 %v1781_v41, %v1780_v27  ;;  %v389_v58 = vpack.c.bf16 %v357_v40, %v357_v40  ;;  %757 = vst.msk [vmem:[#allocation2 + $0x40] sm:$0xf] %vm720_vm6, %v482_v51  ;;  %v814_v30 = vld [vmem:[#allocation2 + $0xa4] sm:$0x1]  ;;  %v6989_v40 = vld [vmem:[%s10450_s1 + $0x88] sm:$0xff] }
  0xc5   : > { %v1398_v56 = vor.u32 %v1397_v45, %v1393_v44  ;;  %v1403_v57 = vrot.slane %v1401_v39, 5  ;;  %756 = vst [vmem:[#allocation2 + $0x3c] sm:$0xf] %v755_v53  ;;  %v604_v63 = vshrl.u32 %v388_v28, 16  ;;  %v607_v0 = vshll.u32 %v388_v28, 16  ;;  %2717 = vmatpush.bf16.msrb.mxu0 %v7006_v13  ;;  %v344_v41 = vld [vmem:[%s7562_s19 + $0x60] sm:$0xff]  ;;  %2540 = vmatpush.bf16.msrb.mxu2 %v6989_v40 }
  0xc6   : > { %10532 = vst [vmem:[#allocation11_spill] sm:$0xff] %v7910_v55  ;;  %v1389_v62 = vrot.slane %v1388_v49, 4  ;;  %v759_v3 = vsel %vm7657_vm10, %v483_v46, %v758_v48  ;;  %v612_v6 = vshrl.u32 %v389_v58, 16  ;;  %v615_v7 = vshll.u32 %v389_v58, 16  ;;  %v761_v51 = vld [vmem:[#allocation2 + $0x48] sm:$0xf] }
  0xc7   : > { %2508 = vmatmul.bf16.gmra.mxu3 %v7897_v19  ;;  %v1399_v4 = vrot.slane %v1398_v56, 4  ;;  %760 = vst [vmem:[#allocation2 + $0x44] sm:$0x1] %v759_v3  ;;  %v374_v10 = vpack.c.bf16 %v342_v54, %v342_v54  ;;  %v606_v12 = vrot.slane %v604_v63, 7  ;;  %v375_v5 = vpack.c.bf16 %v343_v59, %v343_v59  ;;  %v765_v13 = vld [vmem:[#allocation2 + $0x50] sm:$0x1] }
  0xc8   : > { %v1394_v11 = vsel %vm7596_vm4, %v1389_v62, %v1393_v44  ;;  %v7926_v17 = vpack.c.bf16 %v358_v60, %v358_v60  ;;  %v614_v22 = vrot.slane %v612_v6, 7  ;;  %v345_v44 = vld [vmem:[%s7562_s19 + $0x68] sm:$0xff]  ;;  %v391_v46 = vpack.c.bf16 %v359_v32, %v359_v32 }
  0xc9   : > { %v1404_v28 = vsel %vm7596_vm4, %v1399_v4, %v1403_v57  ;;  %v1796_v21 = vunpack.c.l.b16 %v1394_v11  ;;  %v485_v24 = vshrl.u32 %v374_v10, 16  ;;  %v609_v18 = vor.u32 %v607_v0, %v606_v12  ;;  %2424 = vmatmul.bf16.gmra.mxu2 %v7056_v61  ;;  %v817_v40 = vld [vmem:[#allocation2 + $0xa8] sm:$0xf] }
  0xca   : > { %v1797_v26 = vunpack.c.l.b16 %v1404_v28  ;;  %v610_v29 = vrot.slane %v606_v12, 4  ;;  %v488_v31 = vshll.u32 %v374_v10, 16  ;;  %v617_v27 = vor.u32 %v615_v7, %v614_v22 }
  0xcb   : > { %v619_v36 = vrot.slane %v614_v22, 4  ;;  %v487_v33 = vrot.slane %v485_v24, 7  ;;  %v493_v38 = vshrl.u32 %v375_v5, 16  ;;  %v811_v39 = vsel %vm7647_vm9, %v609_v18, %v810_v16  ;;  %v7947_v56 = vld [vmem:[#allocation2 + $0x40] sm:$0xf] }
  0xcc   : > { %v7937_v45 = vpack.c.b16 %v1797_v26, %v1796_v21  ;;  %v7941_v48 = vld [vmem:[#allocation2 + $0x3c] sm:$0xf]  ;;  %v496_v49 = vshll.u32 %v375_v5, 16  ;;  %v618_v54 = vsel %vm7627_vm8, %v610_v29, %v617_v27  ;;  %812 = vst [vmem:[#allocation2 + $0x9c] sm:$0xf] %v811_v39  ;;  %v1223_v62 = vshll.u32 %v7947_v56, 16 }
  0xcd   : > { %2473 = vmatmul.bf16.gmra.mxu1 %v7910_v55  ;;  %v7943_v53 = vld [vmem:[#allocation2 + $0x3c] sm:$0xff]  ;;  %v1214_v57 = vshrl.u32 %v7941_v48, 16  ;;  %v815_v58 = vsel %vm7657_vm10, %v619_v36, %v814_v30  ;;  %v490_v59 = vor.u32 %v488_v31, %v487_v33  ;;  %813 = vst.msk [vmem:[#allocation2 + $0xa0] sm:$0xf] %vm720_vm6, %v618_v54  ;;  %v1217_v61 = vshll.u32 %v7941_v48, 16 }
  0xce   : > { %10533 = vst [vmem:[#allocation12_spill] sm:$0xff] %v7937_v45  ;;  %v7953_v60 = vld [vmem:[#allocation2 + $0x44] sm:$0x1]  ;;  %v7957_v63 = vpack.c.bf16 %v344_v41, %v344_v41  ;;  %v7959_v0 = vpack.c.bf16 %v345_v44, %v345_v44  ;;  %v1227_v4 = vshrl.u32 %v7947_v56, 16  ;;  %v491_v7 = vrot.slane %v487_v33, 4 }
  0xcf   : > { %v1216_v3 = vrot.slane %v1214_v57, 4  ;;  %v1233_v6 = vshll.u32 %v7953_v60, 16  ;;  %816 = vst [vmem:[#allocation2 + $0xa4] sm:$0x1] %v815_v58  ;;  %2389 = vmatmul.bf16.gmra.mxu0 %v7943_v53  ;;  %v1219_v9 = vrot.slane %v1217_v61, 5  ;;  %v1225_v10 = vrot.slane %v1223_v62, 5 }
  0xd0   : > { %v495_v11 = vrot.slane %v493_v38, 7  ;;  %v762_v12 = vsel %vm7647_vm9, %v490_v59, %v761_v51  ;;  %v1229_v5 = vrot.slane %v1227_v4, 4  ;;  %v621_v21 = vshrl.u32 %v7926_v17, 16  ;;  %v821_v62 = vld [vmem:[#allocation2 + $0xb0] sm:$0x1] }
  0xd1   : > { %v1235_v28 = vrot.slane %v1233_v6, 5  ;;  %763 = vst [vmem:[#allocation2 + $0x48] sm:$0xf] %v762_v12  ;;  %v624_v22 = vshll.u32 %v7926_v17, 16  ;;  %v1220_v16 = vor.u32 %v1219_v9, %v1216_v3  ;;  %v629_v26 = vshrl.u32 %v391_v46, 16  ;;  %v6997_v9 = vld [vmem:[%s10450_s1 + $0xc8] sm:$0xff] }
  0xd2   : > { %v498_v24 = vor.u32 %v496_v49, %v495_v11  ;;  %v500_v32 = vrot.slane %v495_v11, 4  ;;  %v1230_v18 = vor.u32 %v1229_v5, %v1225_v10  ;;  %v623_v29 = vrot.slane %v621_v21, 7  ;;  %2629 = vmatpush.bf16.msrb.mxu3 %v6997_v9 }
  0xd3   : > { %v632_v30 = vshll.u32 %v391_v46, 16  ;;  %v502_v31 = vshrl.u32 %v7957_v63, 16  ;;  %v1221_v27 = vrot.slane %v1220_v16, 4  ;;  %v1075_v36 = vld [vmem:[#allocation2 + $0x9c] sm:$0xf]  ;;  %v631_v38 = vrot.slane %v629_v26, 7 }
  0xd4   : > { %v499_v33 = vsel %vm7627_vm8, %v491_v7, %v498_v24  ;;  %v766_v41 = vsel %vm7657_vm10, %v500_v32, %v765_v13  ;;  %v7057_v17 = vld [vmem:[#allocation2 + $0x9c] sm:$0xff]  ;;  %v1231_v44 = vrot.slane %v1230_v18, 4  ;;  %v1406_v49 = vshrl.u32 %v1075_v36, 16 }
  0xd5   : > { %v1076_v39 = vld [vmem:[#allocation2 + $0xa0] sm:$0xf]  ;;  %v1409_v51 = vshll.u32 %v1075_v36, 16  ;;  %v626_v54 = vor.u32 %v624_v22, %v623_v29  ;;  %v1226_v46 = vsel %vm7596_vm4, %v1221_v27, %v1225_v10  ;;  %764 = vst.msk [vmem:[#allocation2 + $0x4c] sm:$0xf] %vm720_vm6, %v499_v33  ;;  %v634_v61 = vor.u32 %v632_v30, %v631_v38  ;;  %v7005_v10 = vld [vmem:[%s10450_s1 + $0x108] sm:$0xff] }
  0xd6   : > { %v1077_v57 = vld [vmem:[#allocation2 + $0xa4] sm:$0x1]  ;;  %v1415_v58 = vshll.u32 %v1076_v39, 16  ;;  %v1419_v59 = vshrl.u32 %v1076_v39, 16  ;;  %v1236_v3 = vsel %vm7596_vm4, %v1231_v44, %v1235_v28  ;;  %v1782_v4 = vunpack.c.l.b16 %v1226_v46  ;;  %767 = vst [vmem:[#allocation2 + $0x50] sm:$0x1] %v766_v41  ;;  %2718 = vmatpush.bf16.msrb.mxu0 %v7005_v10 }
  0xd7   : > { %2513 = vmatmul.bf16.gmra.mxu3 %v7937_v45  ;;  %v1408_v6 = vrot.slane %v1406_v49, 4  ;;  %v1411_v7 = vrot.slane %v1409_v51, 5  ;;  %v1783_v11 = vunpack.c.l.b16 %v1236_v3  ;;  %v1425_v5 = vshll.u32 %v1077_v57, 16  ;;  %v7019_v28 = vld [vmem:[%s10450_s1 + $0x178] sm:$0xff]  ;;  %v360_v36 = vld [vmem:[%s7562_s19 + $0xe0] sm:$0xff]  ;;  %v361_v33 = vld [vmem:[%s7562_s19 + $0xe8] sm:$0xff] }
  0xd8   : > { %v1417_v12 = vrot.slane %v1415_v58, 5  ;;  %v1421_v13 = vrot.slane %v1419_v59, 4  ;;  %v7985_v21 = vld [vmem:[#allocation2 + $0x48] sm:$0xf]  ;;  %v627_v16 = vrot.slane %v623_v29, 4  ;;  %v636_v24 = vrot.slane %v631_v38, 4  ;;  %2801 = vmatpush.bf16.msrb.mxu1 %v7019_v28 }
  0xd9   : > { %v1412_v22 = vor.u32 %v1411_v7, %v1408_v6  ;;  %v818_v32 = vsel %vm7647_vm9, %v626_v54, %v817_v40  ;;  %v7992_v26 = vpack.c.b16 %v1783_v11, %v1782_v4  ;;  %v1427_v30 = vrot.slane %v1425_v5, 5  ;;  %2429 = vmatmul.bf16.gmra.mxu2 %v7057_v17  ;;  %v6988_v44 = vld [vmem:[%s10450_s1 + $0x80] sm:$0xff]  ;;  %v7018_v39 = vld [vmem:[%s10450_s1 + $0x170] sm:$0xff] }
  0xda   : > { %v1422_v18 = vor.u32 %v1421_v13, %v1417_v12  ;;  %819 = vst [vmem:[#allocation2 + $0xa8] sm:$0xf] %v818_v32  ;;  %v1238_v27 = vshrl.u32 %v7985_v21, 16  ;;  %v635_v29 = vsel %vm7627_vm8, %v627_v16, %v634_v61  ;;  %v1241_v38 = vshll.u32 %v7985_v21, 16  ;;  %2541 = vmatpush.bf16.msrb.mxu2 %v6988_v44 }
  0xdb   : > { %10534 = vst [vmem:[#allocation13_spill] sm:$0xff] %v7992_v26  ;;  %v1413_v41 = vrot.slane %v1412_v22, 4  ;;  %v822_v40 = vsel %vm7657_vm10, %v636_v24, %v821_v62  ;;  %v8010_v51 = vrot.slane %v502_v31, 7  ;;  %v505_v54 = vshll.u32 %v7957_v63, 16  ;;  %v768_v22 = vld [vmem:[#allocation2 + $0x54] sm:$0xf] }
  0xdc   : > { %v1423_v17 = vrot.slane %v1422_v18, 4  ;;  %820 = vst.msk [vmem:[#allocation2 + $0xac] sm:$0xf] %vm720_vm6, %v635_v29  ;;  %v1240_v49 = vrot.slane %v1238_v27, 4  ;;  %v8015_v57 = vld [vmem:[#allocation2 + $0x48] sm:$0xff]  ;;  %v1243_v59 = vrot.slane %v1241_v38, 5  ;;  %v392_v61 = vpack.c.bf16 %v360_v36, %v360_v36  ;;  %2802 = vmatpush.bf16.msrb.mxu1 %v7018_v39 }
  0xdd   : > { %2478 = vmatmul.bf16.gmra.mxu1 %v7992_v26  ;;  %v1418_v46 = vsel %vm7596_vm4, %v1413_v41, %v1417_v12  ;;  %v8017_v58 = vld [vmem:[#allocation2 + $0x4c] sm:$0xf]  ;;  %823 = vst [vmem:[#allocation2 + $0xb0] sm:$0x1] %v822_v40  ;;  %v8019_v62 = vpack.c.bf16 %v361_v33, %v361_v33  ;;  %v8023_v4 = vld [vmem:[#allocation2 + $0x50] sm:$0x1]  ;;  %v507_v11 = vor.u32 %v505_v54, %v8010_v51 }
  0xde   : > { %v1428_v3 = vsel %vm7596_vm4, %v1423_v17, %v1427_v30  ;;  %v1798_v31 = vunpack.c.l.b16 %v1418_v46  ;;  %v1247_v63 = vshll.u32 %v8017_v58, 16  ;;  %v1251_v6 = vshrl.u32 %v8017_v58, 16 }
  0xdf   : > { %v1799_v7 = vunpack.c.l.b16 %v1428_v3  ;;  %v1244_v9 = vor.u32 %v1243_v59, %v1240_v49  ;;  %v1257_v10 = vshll.u32 %v8023_v4, 16  ;;  %2394 = vmatmul.bf16.gmra.mxu0 %v8015_v57  ;;  %v508_v5 = vrot.slane %v8010_v51, 4 }
  0xe0   : > { %v1249_v12 = vrot.slane %v1247_v63, 5  ;;  %v1253_v13 = vrot.slane %v1251_v6, 4  ;;  %v510_v28 = vshrl.u32 %v7959_v0, 16  ;;  %v513_v30 = vshll.u32 %v7959_v0, 16 }
  0xe1   : > { %v8032_v16 = vpack.c.b16 %v1799_v7, %v1798_v31  ;;  %v1245_v24 = vrot.slane %v1244_v9, 4  ;;  %v1259_v32 = vrot.slane %v1257_v10, 5  ;;  %v1078_v18 = vld [vmem:[#allocation2 + $0xa8] sm:$0xf]  ;;  %v769_v40 = vsel %vm7647_vm9, %v507_v11, %v768_v22  ;;  %v824_v10 = vld [vmem:[#allocation2 + $0xb4] sm:$0xf] }
  0xe2   : > { %v1254_v27 = vor.u32 %v1253_v13, %v1249_v12  ;;  %v1430_v36 = vshrl.u32 %v1078_v18, 16  ;;  %v1433_v33 = vshll.u32 %v1078_v18, 16  ;;  %v512_v41 = vrot.slane %v510_v28, 7  ;;  %770 = vst [vmem:[#allocation2 + $0x54] sm:$0xf] %v769_v40  ;;  %v6996_v22 = vld [vmem:[%s10450_s1 + $0xc0] sm:$0xff] }
  0xe3   : > { %10535 = vst [vmem:[#allocation14_spill] sm:$0xff] %v8032_v16  ;;  %v1250_v29 = vsel %vm7596_vm4, %v1245_v24, %v1249_v12  ;;  %v8037_v38 = vld [vmem:[#allocation2 + $0xac] sm:$0xf]  ;;  %v638_v44 = vshrl.u32 %v392_v61, 16  ;;  %v641_v39 = vshll.u32 %v392_v61, 16  ;;  %v649_v40 = vshll.u32 %v8019_v62, 16  ;;  %2630 = vmatpush.bf16.msrb.mxu3 %v6996_v22 }
  0xe4   : > { %v1255_v17 = vrot.slane %v1254_v27, 4  ;;  %v1784_v49 = vunpack.c.l.b16 %v1250_v29  ;;  %v1080_v51 = vld [vmem:[#allocation2 + $0xb0] sm:$0x1]  ;;  %v1432_v54 = vrot.slane %v1430_v36, 4  ;;  %v1435_v46 = vrot.slane %v1433_v33, 5  ;;  %v7058_v11 = vld [vmem:[#allocation2 + $0xa8] sm:$0xff] }
  0xe5   : > { %v1439_v0 = vshll.u32 %v8037_v38, 16  ;;  %v1443_v59 = vshrl.u32 %v8037_v38, 16  ;;  %v1449_v3 = vshll.u32 %v1080_v51, 16  ;;  %v515_v31 = vor.u32 %v513_v30, %v512_v41  ;;  %v772_v61 = vld [vmem:[#allocation2 + $0x5c] sm:$0x1]  ;;  %v7017_v24 = vld [vmem:[%s10450_s1 + $0x168] sm:$0xff] }
  0xe6   : > { %v1260_v63 = vsel %vm7596_vm4, %v1255_v17, %v1259_v32  ;;  %v1436_v6 = vor.u32 %v1435_v46, %v1432_v54  ;;  %v517_v7 = vrot.slane %v512_v41, 4  ;;  %v640_v9 = vrot.slane %v638_v44, 7  ;;  %v7004_v36 = vld [vmem:[%s10450_s1 + $0x100] sm:$0xff]  ;;  %2803 = vmatpush.bf16.msrb.mxu1 %v7017_v24  ;;  %v7027_v54 = vld [vmem:[%s10450_s1 + $0x1b8] sm:$0xff] }
  0xe7   : > { %2518 = vmatmul.bf16.gmra.mxu3 %v8032_v16  ;;  %v1785_v12 = vunpack.c.l.b16 %v1260_v63  ;;  %v1441_v13 = vrot.slane %v1439_v0, 5  ;;  %v1445_v28 = vrot.slane %v1443_v59, 4  ;;  %v1451_v18 = vrot.slane %v1449_v3, 5  ;;  %2719 = vmatpush.bf16.msrb.mxu0 %v7004_v36  ;;  %v828_v0 = vld [vmem:[#allocation2 + $0xbc] sm:$0x1] }
  0xe8   : > { %v1437_v32 = vrot.slane %v1436_v6, 4  ;;  %v516_v30 = vsel %vm7627_vm8, %v508_v5, %v515_v31  ;;  %v643_v27 = vor.u32 %v641_v39, %v640_v9  ;;  %v646_v29 = vshrl.u32 %v8019_v62, 16  ;;  %v7016_v5 = vld [vmem:[%s10450_s1 + $0x160] sm:$0xff]  ;;  %v7015_v6 = vld [vmem:[%s10450_s1 + $0x158] sm:$0xff]  ;;  %2890 = vmatpush.bf16.msra.mxu2 %v7027_v54  ;;  %v2365_v54 = vpop.f32.mrf.mxu0 }
  0xe9   : > { %v8057_v33 = vpack.c.b16 %v1785_v12, %v1784_v49  ;;  %v1446_v41 = vor.u32 %v1445_v28, %v1441_v13  ;;  %771 = vst.msk [vmem:[#allocation2 + $0x58] sm:$0xf] %vm720_vm6, %v516_v30  ;;  %v773_v39 = vsel %vm7657_vm10, %v517_v7, %v772_v61  ;;  %2434 = vmatmul.bf16.gmra.mxu2 %v7058_v11  ;;  %v644_v51 = vrot.slane %v640_v9, 4  ;;  %v8075_v46 = vld [vmem:[#allocation2 + $0x54] sm:$0xf] }
  0xea   : > { %v825_v44 = vsel %vm7647_vm9, %v643_v27, %v824_v10  ;;  %v1442_v17 = vsel %vm7596_vm4, %v1437_v32, %v1441_v13  ;;  %v648_v62 = vrot.slane %v646_v29, 7  ;;  %774 = vst [vmem:[#allocation2 + $0x5c] sm:$0x1] %v773_v39  ;;  %v1262_v63 = vshrl.u32 %v8075_v46, 16  ;;  %2804 = vmatpush.bf16.msrb.mxu1 %v7016_v5 }
  0xeb   : > { %10536 = vst [vmem:[#allocation15_spill] sm:$0xff] %v8057_v33  ;;  %v1447_v49 = vrot.slane %v1446_v41, 4  ;;  %v1800_v7 = vunpack.c.l.b16 %v1442_v17  ;;  %v1265_v10 = vshll.u32 %v8075_v46, 16 }
  0xec   : > { %826 = vst [vmem:[#allocation2 + $0xb4] sm:$0xf] %v825_v44  ;;  %v651_v3 = vor.u32 %v649_v40, %v648_v62  ;;  %v653_v31 = vrot.slane %v648_v62, 4  ;;  %v1264_v11 = vrot.slane %v1262_v63, 4 }
  0xed   : > { %2483 = vmatmul.bf16.gmra.mxu1 %v8057_v33  ;;  %v1452_v59 = vsel %vm7596_vm4, %v1447_v49, %v1451_v18  ;;  %v1267_v22 = vrot.slane %v1265_v10, 5  ;;  %v7014_v18 = vld [vmem:[%s10450_s1 + $0x150] sm:$0xff]  ;;  %v7215_v10 = vld [vmem:[#allocation2 + $0x4] sm:$0xf] }
  0xee   : > { %v1801_v9 = vunpack.c.l.b16 %v1452_v59  ;;  %v652_v61 = vsel %vm7627_vm8, %v644_v51, %v651_v3  ;;  %v829_v12 = vsel %vm7657_vm10, %v653_v31, %v828_v0  ;;  %2805 = vmatpush.bf16.msrb.mxu1 %v7015_v6  ;;  %v2454_v0 = vpop.f32.mrf.mxu1 }
  0xef   : > { %827 = vst.msk [vmem:[#allocation2 + $0xb8] sm:$0xf] %vm720_vm6, %v652_v61  ;;  %v1268_v27 = vor.u32 %v1267_v22, %v1264_v11  ;;  %v8110_v31 = vadd.f32 %v2454_v0, %v2365_v54  ;;  %v1530_v61 = vrot.slane %v7215_v10, 5  ;;  %v7035_v11 = vld [vmem:[%s10450_s1 + $0x1f8] sm:$0xff]  ;;  %v7217_v54 = vld [vmem:[#allocation2 + $0x8] sm:$0x1] }
  0xf0   : > { %v8088_v13 = vld [vmem:[#allocation2 + $0x54] sm:$0xff]  ;;  %830 = vst [vmem:[#allocation2 + $0xbc] sm:$0x1] %v829_v12  ;;  %v8098_v30 = vpack.c.b16 %v1801_v9, %v1800_v7  ;;  %2979 = vmatpush.bf16.msra.mxu3 %v7035_v11  ;;  %v1533_v0 = vrot.slane %v7217_v54, 5 }
  0xf1   : > { %v8091_v28 = vld [vmem:[#allocation2 + $0x58] sm:$0xf]  ;;  %2399 = vmatmul.bf16.gmra.mxu0 %v8088_v13  ;;  %v8103_v41 = vld [vmem:[#allocation2 + $0x5c] sm:$0x1]  ;;  %v1269_v39 = vrot.slane %v1268_v27, 4 }
  0xf2   : > { %v1271_v24 = vshll.u32 %v8091_v28, 16  ;;  %v1275_v32 = vshrl.u32 %v8091_v28, 16  ;;  %v1281_v17 = vshll.u32 %v8103_v41, 16  ;;  %2806 = vmatpush.bf16.msrb.mxu1 %v7014_v18  ;;  %v7013_v18 = vld [vmem:[%s10450_s1 + $0x148] sm:$0xff] }
  0xf3   : > { %v8101_v36 = vld [vmem:[#allocation2 + $0xb4] sm:$0xf] }
  0xf4   : > { %v1273_v29 = vrot.slane %v1271_v24, 5  ;;  %v1277_v40 = vrot.slane %v1275_v32, 4  ;;  %v1454_v5 = vshrl.u32 %v8101_v36, 16  ;;  %v1457_v44 = vshll.u32 %v8101_v36, 16 }
  0xf5   : > { %v1283_v3 = vrot.slane %v1281_v17, 5  ;;  %v7216_v17 = vld [vmem:[#allocation2] sm:$0xf] }
  0xf6   : > { %v1278_v49 = vor.u32 %v1277_v40, %v1273_v29  ;;  %v1456_v51 = vrot.slane %v1454_v5, 4  ;;  %v1459_v62 = vrot.slane %v1457_v44, 5  ;;  %v1274_v59 = vsel %vm7596_vm4, %v1269_v39, %v1273_v29  ;;  %v7059_v63 = vld [vmem:[#allocation2 + $0xb4] sm:$0xff]  ;;  %2807 = vmatpush.bf16.msrb.mxu1 %v7013_v18 }
  0xf7   : > { %2523 = vmatmul.bf16.gmra.mxu3 %v8098_v30  ;;  %v8113_v7 = vld [vmem:[#allocation2 + $0xb8] sm:$0xf]  ;;  %v1786_v12 = vunpack.c.l.b16 %v1274_v59  ;;  %v8118_v22 = vld [vmem:[#allocation2 + $0xbc] sm:$0x1]  ;;  %v7012_v59 = vld [vmem:[%s10450_s1 + $0x140] sm:$0xff] }
  0xf8   : > { %v1279_v6 = vrot.slane %v1278_v49, 4  ;;  %v1460_v9 = vor.u32 %v1459_v62, %v1456_v51  ;;  %10537 = vst [vmem:[#allocation16_spill] sm:$0xff] %v8118_v22  ;;  %v1463_v24 = vshll.u32 %v8113_v7, 16  ;;  %v1467_v32 = vshrl.u32 %v8113_v7, 16 }
  0xf9   : > { %v1473_v40 = vshll.u32 %v8118_v22, 16  ;;  %v6210_v49 = vrot.slane %v7216_v17, 9  ;;  %2439 = vmatmul.bf16.gmra.mxu2 %v7059_v63  ;;  %v10538_v51 = vmov 0  ;;  %v1532_v62 = vrot.slane %v1530_v61, 4  ;;  %v7219_v17 = vld [vmem:[#allocation2 + $0xc] sm:$0xf] }
  0xfa   : > { %v1284_v27 = vsel %vm7596_vm4, %v1279_v6, %v1283_v3  ;;  %v1461_v29 = vrot.slane %v1460_v9, 4  ;;  %v1465_v44 = vrot.slane %v1463_v24, 5  ;;  %v1469_v39 = vrot.slane %v1467_v32, 4  ;;  %v7043_v3 = vld [vmem:[%s10450_s1 + $0x238] sm:$0xff]  ;;  %v7218_v6 = vld [vmem:[#allocation2 + $0x10] sm:$0xf]  ;;  %2808 = vmatpush.bf16.msrb.mxu1 %v7012_v59 }
  0xfb   : > { %v1787_v5 = vunpack.c.l.b16 %v1284_v27  ;;  %v10539_v51 = vsel %vm8129_vm13, 4294967295, %v10538_v51  ;;  %v1537_v9 = vrot.slane %v7218_v6, 5  ;;  %v1475_v24 = vrot.slane %v1473_v40, 5  ;;  %3068 = vmatpush.bf16.msra.mxu0 %v7043_v3  ;;  %v7220_v6 = vld [vmem:[#allocation2 + $0x14] sm:$0x1] }
  0xfc   : > { %10540 = vst [vmem:[#allocation17_spill] sm:$0xff] %v10539_v51  ;;  %v1466_v63 = vsel %vm7596_vm4, %v1461_v29, %v1465_v44  ;;  %v1470_v11 = vor.u32 %v1469_v39, %v1465_v44  ;;  %v1531_v18 = vsel %vm8129_vm13, %v6210_v49, %v1530_v61  ;;  %v6211_v54 = vrot.slane %v7219_v17, 9  ;;  %v8150_v44 = vpop.f32.mrf.mxu0  ;;  %v7222_v17 = vld [vmem:[#allocation2 + $0x18] sm:$0xf] }
  0xfd   : > { %v8139_v10 = vpack.c.b16 %v1787_v5, %v1786_v12  ;;  %v1802_v27 = vunpack.c.l.b16 %v1466_v63  ;;  %v1539_v22 = vrot.slane %v1537_v9, 4  ;;  %v1540_v12 = vrot.slane %v7220_v6, 5 }
  0xfe   : > { %v1471_v32 = vrot.slane %v1470_v11, 4  ;;  %v1534_v29 = vsel %vm8129_vm13, %v1532_v62, %v1533_v0  ;;  %v1836_v39 = vunpack.c.l.b16 %v1531_v18  ;;  %v1538_v59 = vsel %vm8129_vm13, %v6211_v54, %v1537_v9  ;;  %v7223_v54 = vld [vmem:[#allocation2 + $0x20] sm:$0x1] }
  0xff   : > { %10541 = vst [vmem:[#allocation18_spill] sm:$0xff] %v8139_v10  ;;  %2488 = vmatmul.bf16.gmra.mxu1 %v8139_v10  ;;  %v1837_v49 = vunpack.c.l.b16 %v1534_v29  ;;  %v1541_v3 = vsel %vm8129_vm13, %v1539_v22, %v1540_v12  ;;  %v1838_v63 = vunpack.c.l.b16 %v1538_v59  ;;  %v6212_v6 = vrot.slane %v7222_v17, 9 }
 0x100   : > { %v1476_v5 = vsel %vm7596_vm4, %v1471_v32, %v1475_v24  ;;  %v1839_v11 = vunpack.c.l.b16 %v1541_v3  ;;  %v7221_v32 = vld [vmem:[#allocation2 + $0x1c] sm:$0xf]  ;;  %v7224_v3 = vld [vmem:[#allocation2 + $0xc] sm:$0xff] }
 0x101   : > { %v1803_v40 = vunpack.c.l.b16 %v1476_v5  ;;  %2720 = vmatmul.bf16.vlgmr.msrb.gmra.mxu0 %v7767_v47  ;;  %v1868_v62 = vpack.c.b16 %v1837_v49, %v1836_v39  ;;  %v1544_v18 = vrot.slane %v7221_v32, 5  ;;  %v1547_v5 = vrot.slane %v7223_v54, 5 }
 0x102   : > { %v1869_v0 = vpack.c.b16 %v1839_v11, %v1838_v63  ;;  %v7034_v63 = vld [vmem:[%s10450_s1 + $0x1f0] sm:$0xff]  ;;  %v1551_v54 = vrot.slane %v7837_v37, 5 }
 0x103   : > { %v8153_v61 = vpack.c.b16 %v1803_v40, %v1802_v27  ;;  %v8160_v27 = vpop.f32.mrf.mxu1  ;;  %v1546_v9 = vrot.slane %v1544_v18, 4  ;;  %v1545_v12 = vsel %vm8129_vm13, %v6212_v6, %v1544_v18  ;;  %v7026_v40 = vld [vmem:[%s10450_s1 + $0x1b0] sm:$0xff]  ;;  %2980 = vmatpush.bf16.msra.mxu3 %v7034_v63 }
 0x104   : > { %2891 = vmatpush.bf16.msra.mxu2 %v7026_v40  ;;  %v1840_v49 = vunpack.c.l.b16 %v1545_v12  ;;  %v1554_v40 = vrot.slane %v7833_v34, 5 }
 0x105   : > { %v1548_v29 = vsel %vm8129_vm13, %v1546_v9, %v1547_v5  ;;  %v7042_v9 = vld [vmem:[%s10450_s1 + $0x230] sm:$0xff] }
 0x106   : > { %v1841_v59 = vunpack.c.l.b16 %v1548_v29  ;;  %3069 = vmatpush.bf16.msra.mxu0 %v7042_v9  ;;  %v1553_v29 = vrot.slane %v1551_v54, 4 }
 0x107   : > { %2528 = vmatmul.bf16.gmra.mxu3 %v8153_v61 }
 0x108   : > { %v8175_v18 = vpack.c.b16 %v1841_v59, %v1840_v49  ;;  %v1555_v63 = vsel %vm8129_vm13, %v1553_v29, %v1554_v40  ;;  %v6214_v40 = vrot.slane %v7854_v25, 9  ;;  %v7025_v25 = vld [vmem:[%s10450_s1 + $0x1a8] sm:$0xff] }
 0x109   : > { %2542 = vmatmul.bf16.vlgmr.msrb.gmra.mxu2 %v1868_v62  ;;  %v2370_v24 = vpop.f32.mrf.mxu0  ;;  %v1843_v9 = vunpack.c.l.b16 %v1555_v63  ;;  %v1561_v63 = vrot.slane %v7889_v2, 5 }
 0x10a   : > { %2892 = vmatpush.bf16.msra.mxu2 %v7025_v25 }
 0x10c   : > { %v2405_v47 = vpop.f32.mrf.mxu2 }
 0x10f   : > { %2809 = vmatmul.bf16.vlgmr.msrb.gmra.mxu1 %v1869_v0 }
 0x111   : > { %2725 = vmatmul.bf16.gmra.mxu0 %v7794_v43  ;;  %v2372_v22 = vpop.f32.mrf.mxu0 }
 0x114   : > { %v2407_v39 = vpop.f32.mrf.mxu2 }
 0x117   : > { %2631 = vmatmul.bf16.vlgmr.msrb.gmra.mxu3 %v7224_v3  ;;  %v2459_v11 = vpop.f32.mrf.mxu1 }
 0x118   : > { %v8173_v62 = vadd.f32 %v2459_v11, %v2370_v24  ;;  %v7225_v24 = vld [vmem:[#allocation2 + $0x24] sm:$0xf] }
 0x119   : > { %2547 = vmatmul.bf16.gmra.mxu2 %v1869_v0  ;;  %v2375_v6 = vpop.f32.mrf.mxu0  ;;  %v6213_v12 = vrot.slane %v7225_v24, 9  ;;  %v8194_v24 = vld [vmem:[#allocation2 + $0x18] sm:$0xff] }
 0x11a   : > { %v2494_v32 = vpop.f32.mrf.mxu3 }
 0x11b   : > { %v8177_v17 = vadd.f32 %v2494_v32, %v2405_v47  ;;  %v1552_v37 = vsel %vm8129_vm13, %v6213_v12, %v1551_v54  ;;  %v1558_v54 = vrot.slane %v7861_v35, 5 }
 0x11c   : > { %v2410_v5 = vpop.f32.mrf.mxu2  ;;  %v1842_v32 = vunpack.c.l.b16 %v1552_v37 }
 0x11d   : > { %v1560_v37 = vrot.slane %v1558_v54, 4  ;;  %v1559_v35 = vsel %vm8129_vm13, %v6214_v40, %v1558_v54 }
 0x11f   : > { %2814 = vmatmul.bf16.gmra.mxu1 %v8175_v18  ;;  %v2461_v49 = vpop.f32.mrf.mxu1 }
 0x120   : > { %v8185_v47 = vadd.f32 %v2461_v49, %v2372_v22 }
 0x121   : > { %2730 = vmatmul.bf16.gmra.mxu0 %v7876_v50  ;;  %v2377_v3 = vpop.f32.mrf.mxu0  ;;  %v8220_v50 = vld [vmem:[#allocation2 + $0x24] sm:$0xff] }
 0x122   : > { %v2496_v0 = vpop.f32.mrf.mxu3  ;;  %10544 = vst [vmem:[#allocation21_spill] sm:$0xff] %v8220_v50 }
 0x123   : > { %v8188_v59 = vadd.f32 %v2496_v0, %v2407_v39  ;;  %v8199_v39 = vpack.c.b16 %v1843_v9, %v1842_v32  ;;  %v1562_v9 = vsel %vm8129_vm13, %v1560_v37, %v1561_v63 }
 0x124   : > { %v2412_v11 = vpop.f32.mrf.mxu2 }
 0x127   : > { %2636 = vmatmul.bf16.gmra.mxu3 %v8194_v24  ;;  %v2464_v34 = vpop.f32.mrf.mxu1 }
 0x128   : > { %v8197_v22 = vadd.f32 %v2464_v34, %v2375_v6 }
 0x129   : > { %2552 = vmatmul.bf16.gmra.mxu2 %v8175_v18 }
 0x12a   : > { %v2499_v49 = vpop.f32.mrf.mxu3 }
 0x12b   : > { %v8201_v0 = vadd.f32 %v2499_v49, %v2410_v5 }
 0x12c   : > { %v2380_v12 = vpop.f32.mrf.mxu0  ;;  %v2415_v29 = vpop.f32.mrf.mxu2 }
 0x12d   : > { %10542 = vst [vmem:[#allocation19_spill] sm:$0xff] %v8201_v0 }
 0x12f   : > { %2819 = vmatmul.bf16.gmra.mxu1 %v8199_v39  ;;  %v2466_v6 = vpop.f32.mrf.mxu1 }
 0x130   : > { %v8208_v34 = vadd.f32 %v2466_v6, %v2377_v3  ;;  %v1844_v3 = vunpack.c.l.b16 %v1559_v35  ;;  %v1845_v6 = vunpack.c.l.b16 %v1562_v9  ;;  %v7041_v35 = vld [vmem:[%s10450_s1 + $0x228] sm:$0xff]  ;;  %v1565_v9 = vrot.slane %v7947_v56, 5 }
 0x131   : > { %2735 = vmatmul.bf16.gmra.mxu0 %v7910_v55 }
 0x132   : > { %v2501_v32 = vpop.f32.mrf.mxu3  ;;  %v8228_v63 = vpack.c.b16 %v1845_v6, %v1844_v3  ;;  %3070 = vmatpush.bf16.msra.mxu0 %v7041_v35  ;;  %v1568_v3 = vrot.slane %v7953_v60, 5 }
 0x133   : > { %v8211_v5 = vadd.f32 %v2501_v32, %v2412_v11  ;;  %v7033_v11 = vld [vmem:[%s10450_s1 + $0x1e8] sm:$0xff] }
 0x134   : > { %v2382_v49 = vpop.f32.mrf.mxu0  ;;  %v2417_v2 = vpop.f32.mrf.mxu2  ;;  %2981 = vmatpush.bf16.msra.mxu3 %v7033_v11  ;;  %v1567_v11 = vrot.slane %v1565_v9, 4 }
 0x135   : > { %10543 = vst [vmem:[#allocation20_spill] sm:$0xff] %v8211_v5 }
 0x136   : > { %v1569_v35 = vsel %vm8129_vm13, %v1567_v11, %v1568_v3  ;;  %v6216_v3 = vrot.slane %v7985_v21, 9  ;;  %v7024_v21 = vld [vmem:[%s10450_s1 + $0x1a0] sm:$0xff] }
 0x137   : > { %2641 = vmatmul.bf16.gmra.mxu3 %v8220_v50  ;;  %v1847_v0 = vunpack.c.l.b16 %v1569_v35  ;;  %2893 = vmatpush.bf16.msra.mxu2 %v7024_v21  ;;  %v1582_v21 = vrot.slane %v8103_v41, 5 }
 0x139   : > { %2557 = vmatmul.bf16.gmra.mxu2 %v8199_v39 }
 0x13a   : > { %v2469_v54 = vpop.f32.mrf.mxu1  ;;  %v2504_v40 = vpop.f32.mrf.mxu3 }
 0x13b   : > { %v8226_v37 = vadd.f32 %v2469_v54, %v2380_v12  ;;  %v8230_v32 = vadd.f32 %v2504_v40, %v2415_v29  ;;  %v6215_v12 = vrot.slane %v7941_v48, 9 }
 0x13c   : > { %v2385_v25 = vpop.f32.mrf.mxu0  ;;  %v2420_v55 = vpop.f32.mrf.mxu2 }
 0x13d   : > { %10545 = vst [vmem:[#allocation22_spill] sm:$0xff] %v8230_v32  ;;  %v1566_v56 = vsel %vm8129_vm13, %v6215_v12, %v1565_v9  ;;  %v1572_v9 = vrot.slane %v8017_v58, 5 }
 0x13e   : > { %v1846_v48 = vunpack.c.l.b16 %v1566_v56 }
 0x13f   : > { %2824 = vmatmul.bf16.gmra.mxu1 %v8228_v63 }
 0x141   : > { %2740 = vmatmul.bf16.gmra.mxu0 %v7992_v26 }
 0x142   : > { %v2471_v29 = vpop.f32.mrf.mxu1  ;;  %v2506_v6 = vpop.f32.mrf.mxu3 }
 0x143   : > { %v8240_v54 = vadd.f32 %v2471_v29, %v2382_v49  ;;  %v8243_v40 = vadd.f32 %v2506_v6, %v2417_v2  ;;  %v8252_v29 = vpack.c.b16 %v1847_v0, %v1846_v48  ;;  %v1574_v6 = vrot.slane %v1572_v9, 4 }
 0x144   : > { %v2387_v32 = vpop.f32.mrf.mxu0  ;;  %v2422_v5 = vpop.f32.mrf.mxu2 }
 0x147   : > { %2646 = vmatmul.bf16.gmra.mxu3 %v7880_v52  ;;  %v1575_v52 = vrot.slane %v8023_v4, 5 }
 0x149   : > { %2562 = vmatmul.bf16.gmra.mxu2 %v8228_v63  ;;  %v1576_v58 = vsel %vm8129_vm13, %v1574_v6, %v1575_v52 }
 0x14a   : > { %v2474_v60 = vpop.f32.mrf.mxu1  ;;  %v2509_v50 = vpop.f32.mrf.mxu3 }
 0x14b   : > { %v8250_v49 = vadd.f32 %v2474_v60, %v2385_v25  ;;  %v8254_v2 = vadd.f32 %v2509_v50, %v2420_v55  ;;  %v1573_v55 = vsel %vm8129_vm13, %v6216_v3, %v1572_v9 }
 0x14c   : > { %v2390_v12 = vpop.f32.mrf.mxu0  ;;  %v2425_v11 = vpop.f32.mrf.mxu2  ;;  %v1848_v48 = vunpack.c.l.b16 %v1573_v55 }
 0x14f   : > { %2829 = vmatmul.bf16.gmra.mxu1 %v8252_v29 }
 0x151   : > { %2745 = vmatmul.bf16.gmra.mxu0 %v8057_v33 }
 0x152   : > { %v2476_v56 = vpop.f32.mrf.mxu1  ;;  %v2511_v25 = vpop.f32.mrf.mxu3 }
 0x153   : > { %v8261_v35 = vadd.f32 %v2476_v56, %v2387_v32  ;;  %v8264_v50 = vadd.f32 %v2511_v25, %v2422_v5  ;;  %v1849_v32 = vunpack.c.l.b16 %v1576_v58  ;;  %v7032_v5 = vld [vmem:[%s10450_s1 + $0x1e0] sm:$0xff] }
 0x154   : > { %v2392_v0 = vpop.f32.mrf.mxu0  ;;  %v2427_v4 = vpop.f32.mrf.mxu2  ;;  %2982 = vmatpush.bf16.msra.mxu3 %v7032_v5  ;;  %v7040_v56 = vld [vmem:[%s10450_s1 + $0x220] sm:$0xff] }
 0x155   : > { %10546 = vst [vmem:[#allocation23_spill] sm:$0xff] %v8264_v50  ;;  %v8279_v6 = vpack.c.b16 %v1849_v32, %v1848_v48  ;;  %3071 = vmatpush.bf16.msra.mxu0 %v7040_v56  ;;  %v8345_v50 = vld [vmem:[#allocation2 + $0x60] sm:$0xff] }
 0x156   : > { %10555 = vst [vmem:[#allocation32_spill] sm:$0xff] %v8345_v50 }
 0x157   : > { %2651 = vmatmul.bf16.gmra.mxu3 %v7943_v53  ;;  %v1579_v53 = vrot.slane %v8091_v28, 5 }
 0x159   : > { %2567 = vmatmul.bf16.gmra.mxu2 %v8252_v29  ;;  %v1581_v58 = vrot.slane %v1579_v53, 4 }
 0x15a   : > { %v2479_v60 = vpop.f32.mrf.mxu1  ;;  %v2514_v9 = vpop.f32.mrf.mxu3 }
 0x15b   : > { %v8277_v3 = vadd.f32 %v2479_v60, %v2390_v12  ;;  %v8281_v52 = vadd.f32 %v2514_v9, %v2425_v11  ;;  %v6217_v12 = vrot.slane %v8075_v46, 9  ;;  %v1583_v60 = vsel %vm8129_vm13, %v1581_v58, %v1582_v21  ;;  %v7229_v21 = vld [vmem:[#allocation2 + $0x60] sm:$0xf] }
 0x15c   : > { %v2395_v25 = vpop.f32.mrf.mxu0  ;;  %v2430_v55 = vpop.f32.mrf.mxu2  ;;  %v1851_v33 = vunpack.c.l.b16 %v1583_v60 }
 0x15d   : > { %10547 = vst [vmem:[#allocation24_spill] sm:$0xff] %v8281_v52  ;;  %v1580_v28 = vsel %vm8129_vm13, %v6217_v12, %v1579_v53  ;;  %v7228_v53 = vld [vmem:[#allocation2 + $0x64] sm:$0xf] }
 0x15e   : > { %v1850_v46 = vunpack.c.l.b16 %v1580_v28  ;;  %v1586_v12 = vrot.slane %v7228_v53, 5  ;;  %v6218_v28 = vrot.slane %v7229_v21, 9 }
 0x15f   : > { %2834 = vmatmul.bf16.gmra.mxu1 %v8279_v6 }
 0x160   : > { %v1588_v60 = vrot.slane %v1586_v12, 4 }
 0x161   : > { %2750 = vmatmul.bf16.gmra.mxu0 %v8139_v10 }
 0x162   : > { %v2481_v11 = vpop.f32.mrf.mxu1  ;;  %v2516_v48 = vpop.f32.mrf.mxu3 }
 0x163   : > { %v8291_v32 = vadd.f32 %v2481_v11, %v2392_v0  ;;  %v8294_v5 = vadd.f32 %v2516_v48, %v2427_v4  ;;  %v8303_v11 = vpack.c.b16 %v1851_v33, %v1850_v46  ;;  %v7023_v46 = vld [vmem:[%s10450_s1 + $0x198] sm:$0xff] }
 0x164   : > { %v2397_v9 = vpop.f32.mrf.mxu0  ;;  %v2432_v56 = vpop.f32.mrf.mxu2  ;;  %2894 = vmatpush.bf16.msra.mxu2 %v7023_v46  ;;  %v7039_v46 = vld [vmem:[%s10450_s1 + $0x218] sm:$0xff] }
 0x165   : > { %10548 = vst [vmem:[#allocation25_spill] sm:$0xff] %v8294_v5  ;;  %3072 = vmatpush.bf16.msra.mxu0 %v7039_v46 }
 0x166   : > { %10549 = vst [vmem:[#allocation26_spill] sm:$0xff] %v8303_v11 }
 0x167   : > { %2656 = vmatmul.bf16.gmra.mxu3 %v8015_v57  ;;  %v7230_v57 = vld [vmem:[#allocation2 + $0x68] sm:$0x1] }
 0x168   : > { %v1589_v10 = vrot.slane %v7230_v57, 5 }
 0x169   : > { %2572 = vmatmul.bf16.gmra.mxu2 %v8279_v6 }
 0x16a   : > { %v2484_v41 = vpop.f32.mrf.mxu1  ;;  %v2519_v52 = vpop.f32.mrf.mxu3 }
 0x16b   : > { %v8301_v0 = vadd.f32 %v2484_v41, %v2395_v25  ;;  %v8305_v4 = vadd.f32 %v2519_v52, %v2430_v55  ;;  %v1587_v52 = vsel %vm8129_vm13, %v6218_v28, %v1586_v12  ;;  %v1590_v55 = vsel %vm8129_vm13, %v1588_v60, %v1589_v10  ;;  %v7231_v60 = vld [vmem:[#allocation2 + $0x70] sm:$0xf] }
 0x16c   : > { %v2435_v48 = vpop.f32.mrf.mxu2  ;;  %v1852_v21 = vunpack.c.l.b16 %v1587_v52  ;;  %v1853_v57 = vunpack.c.l.b16 %v1590_v55 }
 0x16d   : > { %10550 = vst [vmem:[#allocation27_spill] sm:$0xff] %v8305_v4 }
 0x16e   : > { %v2400_v58 = vpop.f32.mrf.mxu0  ;;  %v8325_v12 = vpack.c.b16 %v1853_v57, %v1852_v21 }
 0x16f   : > { %2839 = vmatmul.bf16.gmra.mxu1 %v8303_v11 }
 0x170   : > { %10552 = vst [vmem:[#allocation29_spill] sm:$0xff] %v8325_v12 }
 0x171   : > { %2755 = vmatmul.bf16.gmra.mxu0 %v7747_v23 }
 0x172   : > { %v2486_v5 = vpop.f32.mrf.mxu1  ;;  %v2521_v25 = vpop.f32.mrf.mxu3 }
 0x173   : > { %v8309_v41 = vadd.f32 %v2486_v5, %v2397_v9  ;;  %v8312_v33 = vadd.f32 %v2521_v25, %v2432_v56  ;;  %v7031_v9 = vld [vmem:[%s10450_s1 + $0x1d8] sm:$0xff]  ;;  %v1593_v25 = vrot.slane %v7231_v60, 5 }
 0x174   : > { %v2437_v53 = vpop.f32.mrf.mxu2  ;;  %2983 = vmatpush.bf16.msra.mxu3 %v7031_v9  ;;  %v7232_v9 = vld [vmem:[#allocation2 + $0x6c] sm:$0xf] }
 0x175   : > { %10551 = vst [vmem:[#allocation28_spill] sm:$0xff] %v8312_v33  ;;  %v6219_v21 = vrot.slane %v7232_v9, 9  ;;  %v1595_v57 = vrot.slane %v1593_v25, 4 }
 0x176   : > { %v2402_v5 = vpop.f32.mrf.mxu0 }
 0x177   : > { %2661 = vmatmul.bf16.gmra.mxu3 %v8088_v13 }
 0x179   : > { %2577 = vmatmul.bf16.gmra.mxu2 %v8303_v11 }
 0x17a   : > { %v2524_v56 = vpop.f32.mrf.mxu3 }
 0x17b   : > { %v8327_v10 = vadd.f32 %v2524_v56, %v2435_v48  ;;  %v7233_v48 = vld [vmem:[#allocation2 + $0x74] sm:$0x1] }
 0x17c   : > { %v2489_v28 = vpop.f32.mrf.mxu1  ;;  %v2440_v55 = vpop.f32.mrf.mxu2  ;;  %v1596_v56 = vrot.slane %v7233_v48, 5 }
 0x17d   : > { %10553 = vst [vmem:[#allocation30_spill] sm:$0xff] %v8327_v10  ;;  %v8330_v52 = vadd.f32 %v2489_v28, %v2400_v58  ;;  %v1594_v28 = vsel %vm8129_vm13, %v6219_v21, %v1593_v25  ;;  %v7235_v21 = vld [vmem:[#allocation2 + $0x7c] sm:$0xf] }
 0x17e   : > { %v2721_v13 = vpop.f32.mrf.mxu0  ;;  %v1597_v10 = vsel %vm8129_vm13, %v1595_v57, %v1596_v56  ;;  %v1854_v9 = vunpack.c.l.b16 %v1594_v28 }
 0x17f   : > { %2844 = vmatmul.bf16.gmra.mxu1 %v8325_v12  ;;  %v1855_v11 = vunpack.c.l.b16 %v1597_v10 }
 0x181   : > { %2760 = vmatmul.bf16.gmra.mxu0 %v7778_v15 }
 0x182   : > { %v2526_v23 = vpop.f32.mrf.mxu3 }
 0x183   : > { %v8337_v60 = vadd.f32 %v2526_v23, %v2437_v53  ;;  %v8350_v53 = vpack.c.b16 %v1855_v11, %v1854_v9  ;;  %v7236_v11 = vld [vmem:[#allocation2 + $0x78] sm:$0xf]  ;;  %v7237_v9 = vld [vmem:[#allocation2 + $0x80] sm:$0x1] }
 0x184   : > { %v2491_v58 = vpop.f32.mrf.mxu1  ;;  %v2442_v4 = vpop.f32.mrf.mxu2  ;;  %v6220_v28 = vrot.slane %v7236_v11, 9  ;;  %v7022_v11 = vld [vmem:[%s10450_s1 + $0x190] sm:$0xff] }
 0x185   : > { %10554 = vst [vmem:[#allocation31_spill] sm:$0xff] %v8337_v60  ;;  %v8343_v33 = vadd.f32 %v2491_v58, %v2402_v5  ;;  %v1600_v5 = vrot.slane %v7235_v21, 5  ;;  %v7069_v58 = vld [vmem:[%s10453_s4 + $0x38] sm:$0xff]  ;;  %2895 = vmatpush.bf16.msra.mxu2 %v7022_v11 }
 0x186   : > { %v8348_v46 = vpop.f32.mrf.mxu0  ;;  %10556 = vst [vmem:[#allocation33_spill] sm:$0xff] %v8350_v53  ;;  %5188 = vmatpush.bf16.msra.mxu1 %v7069_v58 }
 0x187   : > { %2666 = vmatmul.bf16.gmra.mxu3 %v8345_v50  ;;  %v8372_v50 = vld [vmem:[#allocation2 + $0x6c] sm:$0xff] }
 0x188   : > { %10559 = vst [vmem:[#allocation36_spill] sm:$0xff] %v8372_v50 }
 0x189   : > { %2582 = vmatmul.bf16.gmra.mxu2 %v8325_v12 }
 0x18a   : > { %v2529_v23 = vpop.f32.mrf.mxu3 }
 0x18b   : > { %v8352_v48 = vadd.f32 %v2529_v23, %v2440_v55  ;;  %v1602_v55 = vrot.slane %v1600_v5, 4  ;;  %v1603_v23 = vrot.slane %v7237_v9, 5 }
 0x18c   : > { %v2810_v25 = vpop.f32.mrf.mxu1  ;;  %v2543_v57 = vpop.f32.mrf.mxu2 }
 0x18d   : > { %10557 = vst [vmem:[#allocation34_spill] sm:$0xff] %v8352_v48  ;;  %v2544_v10 = vadd.f32 %v2543_v57, %v8110_v31  ;;  %v1601_v31 = vsel %vm8129_vm13, %v6220_v28, %v1600_v5  ;;  %v1604_v57 = vsel %vm8129_vm13, %v1602_v55, %v1603_v23 }
 0x18e   : > { %v8357_v56 = vpop.f32.mrf.mxu0  ;;  %v1856_v9 = vunpack.c.l.b16 %v1601_v31  ;;  %v1857_v58 = vunpack.c.l.b16 %v1604_v57  ;;  %v7239_v31 = vld [vmem:[#allocation2 + $0x88] sm:$0xf] }
 0x18f   : > { %2849 = vmatmul.bf16.gmra.mxu1 %v8350_v53  ;;  %v1607_v57 = vrot.slane %v7239_v31, 5 }
 0x190   : > { %v8380_v28 = vpack.c.b16 %v1857_v58, %v1856_v9 }
 0x191   : > { %2765 = vmatmul.bf16.gmra.mxu0 %v7815_v8  ;;  %v2457_v8 = vadd.f32 %v8160_v27, %v8150_v44 }
 0x192   : > { %v2531_v15 = vpop.f32.mrf.mxu3 }
 0x193   : > { %v8363_v21 = vadd.f32 %v2531_v15, %v2442_v4  ;;  %v7030_v4 = vld [vmem:[%s10450_s1 + $0x1d0] sm:$0xff] }
 0x194   : > { %v2812_v48 = vpop.f32.mrf.mxu1  ;;  %v2545_v60 = vpop.f32.mrf.mxu2  ;;  %2984 = vmatpush.bf16.msra.mxu3 %v7030_v4  ;;  %v1609_v4 = vrot.slane %v1607_v57, 4 }
 0x195   : > { %10558 = vst [vmem:[#allocation35_spill] sm:$0xff] %v8363_v21 }
 0x196   : > { %v8375_v15 = vpop.f32.mrf.mxu0 }
 0x197   : > { %2671 = vmatmul.bf16.gmra.mxu3 %v8372_v50  ;;  %v7240_v50 = vld [vmem:[#allocation2 + $0x84] sm:$0xf] }
 0x198   : > { %v6221_v12 = vrot.slane %v7240_v50, 9 }
 0x199   : > { %2587 = vmatmul.bf16.gmra.mxu2 %v8350_v53 }
 0x19a   : > { %v2632_v5 = vpop.f32.mrf.mxu3 }
 0x19b   : > { %v2633_v55 = vadd.f32 %v2632_v5, %v2544_v10  ;;  %v7038_v10 = vld [vmem:[%s10450_s1 + $0x210] sm:$0xff] }
 0x19c   : > { %v2815_v23 = vpop.f32.mrf.mxu1  ;;  %v2548_v21 = vpop.f32.mrf.mxu2  ;;  %3073 = vmatpush.bf16.msra.mxu0 %v7038_v10 }
 0x19d   : > { %v2722_v11 = vadd.f32 %v2721_v13, %v2633_v55  ;;  %v2549_v9 = vadd.f32 %v2548_v21, %v8173_v62  ;;  %v7241_v13 = vld [vmem:[#allocation2 + $0x8c] sm:$0x1]  ;;  %v2546_v55 = vadd.f32 %v2545_v60, %v2457_v8  ;;  %v8402_v8 = vld [vmem:[#allocation2 + $0x78] sm:$0xff] }
 0x19e   : > { %v8389_v58 = vpop.f32.mrf.mxu0  ;;  %v1610_v5 = vrot.slane %v7241_v13, 5 }
 0x19f   : > { %2854 = vmatmul.bf16.gmra.mxu1 %v8380_v28  ;;  %v8386_v26 = vadd.f32 %v2810_v25, %v2722_v11  ;;  %v1608_v25 = vsel %vm8129_vm13, %v6221_v12, %v1607_v57 }
 0x1a0   : > { %v1611_v62 = vsel %vm8129_vm13, %v1609_v4, %v1610_v5  ;;  %v1858_v11 = vunpack.c.l.b16 %v1608_v25  ;;  %v7243_v4 = vld [vmem:[#allocation2 + $0x94] sm:$0xf] }
 0x1a1   : > { %10560 = vst [vmem:[#allocation37_spill] sm:$0xff] %v8386_v26  ;;  %2770 = vmatmul.bf16.gmra.mxu0 %v7897_v19  ;;  %v1859_v26 = vunpack.c.l.b16 %v1611_v62  ;;  %v1614_v5 = vrot.slane %v7243_v4, 5 }
 0x1a2   : > { %v2634_v44 = vpop.f32.mrf.mxu3 }
 0x1a3   : > { %v2635_v27 = vadd.f32 %v2634_v44, %v2546_v55  ;;  %v8408_v12 = vpack.c.b16 %v1859_v26, %v1858_v11  ;;  %v7244_v44 = vld [vmem:[#allocation2 + $0x90] sm:$0xf] }
 0x1a4   : > { %v2817_v50 = vpop.f32.mrf.mxu1  ;;  %v2550_v31 = vpop.f32.mrf.mxu2  ;;  %v7068_v26 = vld [vmem:[%s10453_s4 + $0x30] sm:$0xff] }
 0x1a5   : > { %v2724_v21 = vadd.f32 %v8348_v46, %v2635_v27  ;;  %v2551_v60 = vadd.f32 %v2550_v31, %v8185_v47  ;;  %v6222_v27 = vrot.slane %v7244_v44, 9  ;;  %5189 = vmatpush.bf16.msra.mxu1 %v7068_v26 }
 0x1a6   : > { %v8406_v10 = vpop.f32.mrf.mxu0 }
 0x1a7   : > { %v8400_v53 = vadd.f32 %v2812_v48, %v2724_v21  ;;  %2676 = vmatmul.bf16.gmra.mxu3 %v8402_v8  ;;  %v7245_v21 = vld [vmem:[#allocation2 + $0x98] sm:$0x1] }
 0x1a8   : > { %v1617_v31 = vrot.slane %v7245_v21, 5 }
 0x1a9   : > { %2592 = vmatmul.bf16.gmra.mxu2 %v8380_v28 }
 0x1aa   : > { %v2637_v13 = vpop.f32.mrf.mxu3 }
 0x1ab   : > { %v2638_v57 = vadd.f32 %v2637_v13, %v2549_v9  ;;  %v1616_v9 = vrot.slane %v1614_v5, 4 }
 0x1ac   : > { %v2820_v46 = vpop.f32.mrf.mxu1  ;;  %v2553_v55 = vpop.f32.mrf.mxu2 }
 0x1ad   : > { %v2727_v48 = vadd.f32 %v8357_v56, %v2638_v57  ;;  %v2554_v47 = vadd.f32 %v2553_v55, %v8197_v22  ;;  %v1618_v22 = vsel %vm8129_vm13, %v1616_v9, %v1617_v31  ;;  %v7021_v57 = vld [vmem:[%s10450_s1 + $0x188] sm:$0xff] }
 0x1ae   : > { %v8416_v62 = vpop.f32.mrf.mxu0  ;;  %2896 = vmatpush.bf16.msra.mxu2 %v7021_v57  ;;  %v1861_v44 = vunpack.c.l.b16 %v1618_v22  ;;  %v7029_v9 = vld [vmem:[%s10450_s1 + $0x1c8] sm:$0xff] }
 0x1af   : > { %2859 = vmatmul.bf16.gmra.mxu1 %v8408_v12  ;;  %v8413_v25 = vadd.f32 %v2815_v23, %v2727_v48  ;;  %v1615_v23 = vsel %vm8129_vm13, %v6222_v27, %v1614_v5  ;;  %2985 = vmatpush.bf16.msra.mxu3 %v7029_v9  ;;  %v7249_v9 = vld [vmem:[#allocation2 + $0xa4] sm:$0x1] }
 0x1b0   : > { %v1860_v55 = vunpack.c.l.b16 %v1615_v23 }
 0x1b1   : > { %10561 = vst [vmem:[#allocation38_spill] sm:$0xff] %v8413_v25  ;;  %2775 = vmatmul.bf16.gmra.mxu0 %v7937_v45 }
 0x1b2   : > { %v2639_v56 = vpop.f32.mrf.mxu3  ;;  %v8441_v21 = vpack.c.b16 %v1861_v44, %v1860_v55 }
 0x1b3   : > { %v2640_v11 = vadd.f32 %v2639_v56, %v2551_v60  ;;  %v8432_v60 = vld [vmem:[#allocation2 + $0x84] sm:$0xff]  ;;  %v7247_v56 = vld [vmem:[#allocation2 + $0xa0] sm:$0xf] }
 0x1b4   : > { %v2822_v13 = vpop.f32.mrf.mxu1  ;;  %v2555_v48 = vpop.f32.mrf.mxu2 }
 0x1b5   : > { %v2729_v4 = vadd.f32 %v8375_v15, %v2640_v11  ;;  %v2556_v5 = vadd.f32 %v2555_v48, %v8208_v34  ;;  %v1621_v11 = vrot.slane %v7247_v56, 5  ;;  %v7248_v34 = vld [vmem:[#allocation2 + $0x9c] sm:$0xf] }
 0x1b6   : > { %v8436_v27 = vpop.f32.mrf.mxu0  ;;  %v6223_v57 = vrot.slane %v7248_v34, 9 }
 0x1b7   : > { %v8430_v26 = vadd.f32 %v2817_v50, %v2729_v4  ;;  %2681 = vmatmul.bf16.gmra.mxu3 %v8432_v60  ;;  %v1623_v44 = vrot.slane %v1621_v11, 4 }
 0x1b9   : > { %10562 = vst [vmem:[#allocation39_spill] sm:$0xff] %v8430_v26  ;;  %2597 = vmatmul.bf16.gmra.mxu2 %v8408_v12 }
 0x1ba   : > { %v2642_v15 = vpop.f32.mrf.mxu3 }
 0x1bb   : > { %v2643_v31 = vadd.f32 %v2642_v15, %v2554_v47  ;;  %v7037_v47 = vld [vmem:[%s10450_s1 + $0x208] sm:$0xff] }
 0x1bc   : > { %v2825_v50 = vpop.f32.mrf.mxu1  ;;  %v2558_v22 = vpop.f32.mrf.mxu2  ;;  %3074 = vmatpush.bf16.msra.mxu0 %v7037_v47 }
 0x1bd   : > { %v2732_v23 = vadd.f32 %v8389_v58, %v2643_v31  ;;  %v2559_v48 = vadd.f32 %v2558_v22, %v8226_v37  ;;  %v1624_v58 = vrot.slane %v7249_v9, 5  ;;  %v363_v22 = vld [vmem:[%s7562_s19 + $0xf8] sm:$0xff] }
 0x1be   : > { %v8449_v55 = vpop.f32.mrf.mxu0  ;;  %v395_v45 = vpack.c.bf16 %v363_v22, %v363_v22 }
 0x1bf   : > { %2864 = vmatmul.bf16.gmra.mxu1 %v8441_v21  ;;  %v8446_v4 = vadd.f32 %v2820_v46, %v2732_v23  ;;  %v1622_v46 = vsel %vm8129_vm13, %v6223_v57, %v1621_v11  ;;  %v1625_v37 = vsel %vm8129_vm13, %v1623_v44, %v1624_v58  ;;  %v362_v23 = vld [vmem:[%s7562_s19 + $0xf0] sm:$0xff]  ;;  %s6137_s19 = scalar_lea.hbm %s10456_s7, %s7152_s8 }
 0x1c0   : > { %v1862_v47 = vunpack.c.l.b16 %v1622_v46  ;;  %v1863_v26 = vunpack.c.l.b16 %v1625_v37  ;;  %v663_v58 = vshrl.u32 %v395_v45, 16  ;;  %s6140_s15 = sshll.u32 %s6137_s19, 4  ;;  %s6141_s15 = int_to_ptr.hbm [resolvable:$true] %s6140_s15 }
 0x1c1   : > { %10563 = vst [vmem:[#allocation40_spill] sm:$0xff] %v8446_v4  ;;  %2780 = vmatmul.bf16.gmra.mxu0 %v8032_v16  ;;  %v394_v4 = vpack.c.bf16 %v362_v23, %v362_v23  ;;  %s7292_s16 = sshra.s32 %s6141_s15, 4  ;;  %s7293_s16 = int_to_ptr.hbm [resolvable:$true] %s7292_s16 }
 0x1c2   : > { %v2644_v15 = vpop.f32.mrf.mxu3  ;;  %v8472_v22 = vpack.c.b16 %v1863_v26, %v1862_v47  ;;  %v7251_v26 = vld [vmem:[#allocation2 + $0xa8] sm:$0xf]  ;;  %s7294_s17 = scalar_lea.hbm %s7293_s16, 256  ;;  %p7299_p0 = scmp.lt.s32.totalorder %s7293_s16, %s10456_s7 }
 0x1c3   : > { %v2645_v31 = vadd.f32 %v2644_v15, %v2556_v5  ;;  %v8466_v5 = vld [vmem:[#allocation2 + $0x90] sm:$0xff]  ;;  %v655_v44 = vshrl.u32 %v394_v4, 16  ;;  %v658_v16 = vshll.u32 %v394_v4, 16  ;;  %v6224_v47 = vrot.slane %v7251_v26, 9  ;;  %p7295_p11 = scmp.ne.s32.totalorder %s7293_s16, %s7294_s17  ;;  %p7300_p1 = scmp.lt.s32.totalorder %s7298_s22, %s7294_s17 }
 0x1c4   : > { %v8455_v56 = vpop.f32.mrf.mxu1  ;;  %v2560_v9 = vpop.f32.mrf.mxu2  ;;  %10565 = vst [vmem:[#allocation42_spill] sm:$0xff] %v8466_v5 }
 0x1c5   : > { %v2734_v34 = vadd.f32 %v8406_v10, %v2645_v31  ;;  %v2561_v11 = vadd.f32 %v2560_v9, %v8240_v54  ;;  %v657_v15 = vrot.slane %v655_v44, 7  ;;  %v665_v10 = vrot.slane %v663_v58, 7  ;;  %p7296_p12 = pnand %p7295_p11, %p7423_p5  ;;  %p7301_p2 = por %p7300_p1, %p7299_p0 }
 0x1c6   : > { %v8470_v57 = vpop.f32.mrf.mxu0  ;;  %v666_v31 = vshll.u32 %v395_v45, 16 }
 0x1c7   : > { %v8464_v25 = vadd.f32 %v2822_v13, %v2734_v34  ;;  %2686 = vmatmul.bf16.gmra.mxu3 %v8466_v5  ;;  %v1628_v13 = vrot.slane %v8037_v38, 5  ;;  %v660_v34 = vor.u32 %v658_v16, %v657_v15  ;;  %v661_v54 = vrot.slane %v657_v15, 4  ;;  %v7252_v15 = vld [vmem:[#allocation2 + $0xb0] sm:$0x1]  ;;  %p7297_p13 = pneg %p7296_p12 }
 0x1c8   : > { %v668_v9 = vor.u32 %v666_v31, %v665_v10  ;;  %v1631_v31 = vrot.slane %v7252_v15, 5 }
 0x1c9   : > { %10564 = vst [vmem:[#allocation41_spill] sm:$0xff] %v8464_v25  ;;  %2602 = vmatmul.bf16.gmra.mxu2 %v8441_v21  ;;  %v831_v25 = vld [vmem:[#allocation2 + $0xc0] sm:$0xf]  ;;  %v1630_v38 = vrot.slane %v1628_v13, 4  ;;  %p7302_p3 = pnand %p7301_p2, %p7297_p13 }
 0x1ca   : > { %v2647_v23 = vpop.f32.mrf.mxu3  ;;  %v669_v4 = vsel %vm7627_vm8, %v661_v54, %v668_v9 }
 0x1cb   : > { %v2648_v46 = vadd.f32 %v2647_v23, %v2559_v48  ;;  %v832_v48 = vsel %vm7647_vm9, %v660_v34, %v831_v25  ;;  %834 = vst.msk [vmem:[#allocation2 + $0xc4] sm:$0xf] %vm720_vm6, %v669_v4  ;;  %v670_v23 = vrot.slane %v665_v10, 4  ;;  %v1632_v34 = vsel %vm8129_vm13, %v1630_v38, %v1631_v31  ;;  %v7020_v10 = vld [vmem:[%s10450_s1 + $0x180] sm:$0xff] }
 0x1cc   : > { %v8476_v37 = vpop.f32.mrf.mxu1  ;;  %v2563_v45 = vpop.f32.mrf.mxu2  ;;  %833 = vst [vmem:[#allocation2 + $0xc0] sm:$0xf] %v832_v48  ;;  %2897 = vmatpush.bf16.msra.mxu2 %v7020_v10  ;;  %v8515_v38 = vld [vmem:[#allocation2 + $0x9c] sm:$0xff] }
 0x1cd   : > { %v2737_v5 = vadd.f32 %v8416_v62, %v2648_v46  ;;  %v2564_v44 = vadd.f32 %v2563_v45, %v8250_v49  ;;  %v7067_v62 = vld [vmem:[%s10453_s4 + $0x28] sm:$0xff] }
 0x1ce   : > { %v8488_v58 = vpop.f32.mrf.mxu0  ;;  %v835_v46 = vld [vmem:[#allocation2 + $0xc8] sm:$0x1]  ;;  %5190 = vmatpush.bf16.msra.mxu1 %v7067_v62  ;;  %v7028_v62 = vld [vmem:[%s10450_s1 + $0x1c0] sm:$0xff] }
 0x1cf   : > { %2869 = vmatmul.bf16.gmra.mxu1 %v8472_v22  ;;  %v8485_v16 = vadd.f32 %v2825_v50, %v2737_v5  ;;  %v836_v14 = vsel %vm7657_vm10, %v670_v23, %v835_v46  ;;  %v1629_v5 = vsel %vm8129_vm13, %v6224_v47, %v1628_v13  ;;  %2986 = vmatpush.bf16.msra.mxu3 %v7028_v62  ;;  %v1635_v46 = vrot.slane %v8113_v7, 5 }
 0x1d0   : > { %837 = vst [vmem:[#allocation2 + $0xc8] sm:$0x1] %v836_v14  ;;  %v1864_v4 = vunpack.c.l.b16 %v1629_v5  ;;  %v6225_v62 = vrot.slane %v8101_v36, 9 }
 0x1d1   : > { %2785 = vmatmul.bf16.gmra.mxu0 %v8098_v30 }
 0x1d2   : > { %v2649_v25 = vpop.f32.mrf.mxu3  ;;  %v8506_v54 = vld [vmem:[#allocation2 + $0xc4] sm:$0xf]  ;;  %v1636_v36 = vsel %vm8129_vm13, %v6225_v62, %v1635_v46 }
 0x1d3   : > { %v2650_v49 = vadd.f32 %v2649_v25, %v2561_v11  ;;  %v1865_v11 = vunpack.c.l.b16 %v1632_v34  ;;  %v8508_v45 = vld [vmem:[#allocation2 + $0xc0] sm:$0xf]  ;;  %v1650_v26 = vshll.u32 %v8506_v54, 16  ;;  %v1654_v13 = vshrl.u32 %v8506_v54, 16 }
 0x1d4   : > { %v8496_v50 = vpop.f32.mrf.mxu1  ;;  %v2565_v9 = vpop.f32.mrf.mxu2  ;;  %v1641_v15 = vshrl.u32 %v8508_v45, 16  ;;  %v1644_v31 = vshll.u32 %v8508_v45, 16 }
 0x1d5   : > { %10566 = vst [vmem:[#allocation43_spill] sm:$0xff] %v8496_v50  ;;  %v2739_v20 = vadd.f32 %v8436_v27, %v2650_v49  ;;  %v2566_v27 = vadd.f32 %v2565_v9, %v8261_v35  ;;  %v1652_v14 = vrot.slane %v1650_v26, 5  ;;  %v1656_v25 = vrot.slane %v1654_v13, 4 }
 0x1d6   : > { %v8519_v48 = vpop.f32.mrf.mxu0  ;;  %v1643_v5 = vrot.slane %v1641_v15, 4  ;;  %v1646_v34 = vrot.slane %v1644_v31, 5 }
 0x1d7   : > { %v8513_v47 = vadd.f32 %v8455_v56, %v2739_v20  ;;  %2691 = vmatmul.bf16.gmra.mxu3 %v8515_v38  ;;  %v8526_v56 = vpack.c.b16 %v1865_v11, %v1864_v4  ;;  %v1086_v10 = vld [vmem:[#allocation2 + $0xc8] sm:$0x1]  ;;  %v1637_v4 = vrot.slane %v1635_v46, 4  ;;  %v10567_v11 = vld [vmem:[#allocation16_spill] sm:$0xff]  ;;  %v1657_v7 = vor.u32 %v1656_v25, %v1652_v14 }
 0x1d8   : > { %v1638_v50 = vrot.slane %v10567_v11, 5  ;;  %v1647_v15 = vor.u32 %v1646_v34, %v1643_v5  ;;  %v1660_v31 = vshll.u32 %v1086_v10, 16  ;;  %v1866_v34 = vunpack.c.l.b16 %v1636_v36 }
 0x1d9   : > { %2607 = vmatmul.bf16.gmra.mxu2 %v8472_v22  ;;  %v1669_v36 = vrot.slane %v8506_v54, 5  ;;  %v1672_v54 = vrot.slane %v1086_v10, 5  ;;  %v8586_v10 = vld [vmem:[#allocation2 + $0xb4] sm:$0xff] }
 0x1da   : > { %v2652_v23 = vpop.f32.mrf.mxu3 }
 0x1db   : > { %v2653_v49 = vadd.f32 %v2652_v23, %v2564_v44 }
 0x1dc   : > { %v2835_v35 = vpop.f32.mrf.mxu1  ;;  %v2568_v9 = vpop.f32.mrf.mxu2 }
 0x1dd   : > { %v2742_v20 = vadd.f32 %v8449_v55, %v2653_v49  ;;  %v2569_v44 = vadd.f32 %v2568_v9, %v8277_v3  ;;  %v7036_v55 = vld [vmem:[%s10450_s1 + $0x200] sm:$0xff]  ;;  %v1648_v49 = vrot.slane %v1647_v15, 4  ;;  %v1662_v9 = vrot.slane %v1660_v31, 5 }
 0x1de   : > { %v8538_v13 = vpop.f32.mrf.mxu0  ;;  %3075 = vmatpush.bf16.msra.mxu0 %v7036_v55 }
 0x1df   : > { %2874 = vmatmul.bf16.gmra.mxu1 %v8526_v56  ;;  %v8535_v26 = vadd.f32 %v8476_v37, %v2742_v20  ;;  %v1639_v37 = vsel %vm8129_vm13, %v1637_v4, %v1638_v50  ;;  %v1658_v20 = vrot.slane %v1657_v7, 4  ;;  %v1653_v50 = vsel %vm7596_vm4, %v1648_v49, %v1652_v14 }
 0x1e0   : > { %v1867_v55 = vunpack.c.l.b16 %v1639_v37 }
 0x1e1   : > { %10568 = vst [vmem:[#allocation16_spill] sm:$0xff] %v8535_v26  ;;  %2790 = vmatmul.bf16.gmra.mxu0 %v8153_v61  ;;  %v8553_v26 = vld [vmem:[#allocation2 + $0xa8] sm:$0xff] }
 0x1e2   : > { %v2654_v23 = vpop.f32.mrf.mxu3  ;;  %v8561_v7 = vpack.c.b16 %v1867_v55, %v1866_v34 }
 0x1e3   : > { %v2655_v25 = vadd.f32 %v2654_v23, %v2566_v27  ;;  %v1663_v27 = vsel %vm7596_vm4, %v1658_v20, %v1662_v9 }
 0x1e4   : > { %v8548_v3 = vpop.f32.mrf.mxu1  ;;  %v2570_v5 = vpop.f32.mrf.mxu2  ;;  %v1905_v15 = vunpack.c.l.b16 %v1663_v27 }
 0x1e5   : > { %v8551_v11 = vadd.f32 %v8470_v57, %v2655_v25  ;;  %v2571_v46 = vadd.f32 %v2570_v5, %v8291_v32  ;;  %v1904_v57 = vunpack.c.l.b16 %v1653_v50  ;;  %v6226_v25 = vrot.slane %v8508_v45, 9 }
 0x1e6   : > { %v2753_v62 = vpop.f32.mrf.mxu0  ;;  %v1671_v5 = vrot.slane %v1669_v36, 4 }
 0x1e7   : > { %2696 = vmatmul.bf16.gmra.mxu3 %v8553_v26  ;;  %v8567_v14 = vpack.c.b16 %v1905_v15, %v1904_v57  ;;  %v1670_v45 = vsel %vm8129_vm13, %v6226_v25, %v1669_v36 }
 0x1e8   : > { %v1908_v27 = vunpack.c.l.b16 %v1670_v45 }
 0x1e9   : > { %2612 = vmatmul.bf16.gmra.mxu2 %v8526_v56 }
 0x1ea   : > { %v2657_v4 = vpop.f32.mrf.mxu3 }
 0x1eb   : > { %v2658_v31 = vadd.f32 %v2657_v4, %v2569_v44  ;;  %v7066_v44 = vld [vmem:[%s10453_s4 + $0x20] sm:$0xff] }
 0x1ec   : > { %v2840_v23 = vpop.f32.mrf.mxu1  ;;  %v2573_v37 = vpop.f32.mrf.mxu2  ;;  %5191 = vmatpush.bf16.msra.mxu1 %v7066_v44 }
 0x1ed   : > { %v2747_v32 = vadd.f32 %v8488_v58, %v2658_v31  ;;  %v2574_v20 = vadd.f32 %v2573_v37, %v8301_v0  ;;  %v1673_v0 = vsel %vm8129_vm13, %v1671_v5, %v1672_v54 }
 0x1ee   : > { %v2756_v9 = vpop.f32.mrf.mxu0  ;;  %v1909_v4 = vunpack.c.l.b16 %v1673_v0 }
 0x1ef   : > { %2879 = vmatmul.bf16.gmra.mxu1 %v8561_v7  ;;  %v8570_v49 = vadd.f32 %v2835_v35, %v2747_v32 }
 0x1f0   : > { %v8590_v31 = vpack.c.b16 %v1909_v4, %v1908_v27 }
 0x1f1   : > { %2795 = vmatmul.bf16.gmra.mxu0 %v8567_v14 }
 0x1f2   : > { %v2659_v58 = vpop.f32.mrf.mxu3 }
 0x1f3   : > { %v2660_v34 = vadd.f32 %v2659_v58, %v2571_v46  ;;  %v8599_v58 = vld [vmem:[#allocation2 + $0xc0] sm:$0xff] }
 0x1f4   : > { %v8577_v55 = vpop.f32.mrf.mxu1  ;;  %v2575_v50 = vpop.f32.mrf.mxu2 }
 0x1f5   : > { %v8584_v35 = vadd.f32 %v8519_v48, %v2660_v34  ;;  %v2576_v46 = vadd.f32 %v2575_v50, %v8309_v41 }
 0x1f6   : > { %v2758_v57 = vpop.f32.mrf.mxu0 }
 0x1f7   : > { %2701 = vmatmul.bf16.gmra.mxu3 %v8586_v10 }
 0x1f9   : > { %2617 = vmatmul.bf16.gmra.mxu2 %v8561_v7 }
 0x1fa   : > { %v2662_v15 = vpop.f32.mrf.mxu3 }
 0x1fb   : > { %v2663_v36 = vadd.f32 %v2662_v15, %v2574_v20 }
 0x1fc   : > { %v2845_v32 = vpop.f32.mrf.mxu1  ;;  %v2578_v37 = vpop.f32.mrf.mxu2 }
 0x1fd   : > { %v2752_v48 = vadd.f32 %v8538_v13, %v2663_v36  ;;  %v2579_v44 = vadd.f32 %v2578_v37, %v8330_v52 }
 0x1fe   : > { %v2761_v5 = vpop.f32.mrf.mxu0 }
 0x1ff   : > { %2884 = vmatmul.bf16.gmra.mxu1 %v8590_v31  ;;  %v8595_v25 = vadd.f32 %v2840_v23, %v2752_v48 }
 0x201   : > { %3076 = vmatmul.bf16.vlgmr.msra.gmra.mxu0 %v8175_v18 }
 0x202   : > { %v2664_v54 = vpop.f32.mrf.mxu3 }
 0x203   : > { %v2665_v41 = vadd.f32 %v2664_v54, %v2576_v46  ;;  %v10569_v54 = vld [vmem:[#allocation21_spill] sm:$0xff] }
 0x204   : > { %v8601_v20 = vpop.f32.mrf.mxu1  ;;  %v2580_v45 = vpop.f32.mrf.mxu2 }
 0x205   : > { %v8603_v34 = vadd.f32 %v2753_v62, %v2665_v41  ;;  %v2581_v13 = vadd.f32 %v2580_v45, %v8343_v33  ;;  %v7065_v62 = vld [vmem:[%s10453_s4 + $0x18] sm:$0xff] }
 0x206   : > { %v2763_v23 = vpop.f32.mrf.mxu0  ;;  %5192 = vmatpush.bf16.msra.mxu1 %v7065_v62 }
 0x207   : > { %2706 = vmatmul.bf16.gmra.mxu3 %v8599_v58 }
 0x209   : > { %2898 = vmatmul.bf16.vlgmr.msra.gmra.mxu2 %v8194_v24 }
 0x20a   : > { %v2667_v0 = vpop.f32.mrf.mxu3 }
 0x20b   : > { %v2668_v50 = vadd.f32 %v2667_v0, %v2579_v44 }
 0x20c   : > { %v2850_v52 = vpop.f32.mrf.mxu1  ;;  %v2583_v18 = vpop.f32.mrf.mxu2 }
 0x20d   : > { %v2757_v27 = vadd.f32 %v2756_v9, %v2668_v50  ;;  %v2584_v46 = vadd.f32 %v2583_v18, %v8177_v17 }
 0x20e   : > { %v2766_v15 = vpop.f32.mrf.mxu0 }
 0x20f   : > { %v8608_v4 = vadd.f32 %v2845_v32, %v2757_v27 }
 0x211   : > { %3081 = vmatmul.bf16.gmra.mxu0 %v8199_v39  ;;  %v10570_v39 = vld [vmem:[#allocation19_spill] sm:$0xff] }
 0x212   : > { %v2669_v36 = vpop.f32.mrf.mxu3 }
 0x213   : > { %v2670_v33 = vadd.f32 %v2669_v36, %v2581_v13  ;;  %v10572_v36 = vld [vmem:[#allocation20_spill] sm:$0xff] }
 0x214   : > { %v8615_v48 = vpop.f32.mrf.mxu1  ;;  %v2585_v9 = vpop.f32.mrf.mxu2 }
 0x215   : > { %v8617_v24 = vadd.f32 %v2758_v57, %v2670_v33  ;;  %v2586_v32 = vadd.f32 %v2585_v9, %v8188_v59 }
 0x216   : > { %v2768_v17 = vpop.f32.mrf.mxu0 }
 0x217   : > { %2987 = vmatmul.bf16.vlgmr.msra.gmra.mxu3 %v7794_v43 }
 0x219   : > { %2903 = vmatmul.bf16.gmra.mxu2 %v10569_v54 }
 0x21a   : > { %v2672_v37 = vpop.f32.mrf.mxu3 }
 0x21b   : > { %v2673_v44 = vadd.f32 %v2672_v37, %v2584_v46  ;;  %v10571_v46 = vld [vmem:[#allocation10_spill] sm:$0xff]  ;;  %v7256_v37 = vld [vmem:[#allocation2 + $0x30] sm:$0xff] }
 0x21c   : > { %v2855_v41 = vpop.f32.mrf.mxu1  ;;  %v2588_v0 = vpop.f32.mrf.mxu2 }
 0x21d   : > { %v2762_v45 = vadd.f32 %v2761_v5, %v2673_v44  ;;  %v2589_v13 = vadd.f32 %v2588_v0, %v10570_v39 }
 0x21e   : > { %v2771_v27 = vpop.f32.mrf.mxu0 }
 0x21f   : > { %v8622_v50 = vadd.f32 %v2850_v52, %v2762_v45 }
 0x221   : > { %3086 = vmatmul.bf16.gmra.mxu0 %v8228_v63  ;;  %v10573_v63 = vld [vmem:[#allocation22_spill] sm:$0xff] }
 0x222   : > { %v2674_v57 = vpop.f32.mrf.mxu3 }
 0x223   : > { %v2675_v18 = vadd.f32 %v2674_v57, %v2586_v32 }
 0x224   : > { %v8626_v43 = vpop.f32.mrf.mxu1  ;;  %v2590_v62 = vpop.f32.mrf.mxu2 }
 0x225   : > { %v8628_v59 = vadd.f32 %v2763_v23, %v2675_v18  ;;  %v2591_v33 = vadd.f32 %v2590_v62, %v10572_v36  ;;  %v7064_v23 = vld [vmem:[%s10453_s4 + $0x10] sm:$0xff] }
 0x226   : > { %v2773_v5 = vpop.f32.mrf.mxu0  ;;  %5193 = vmatpush.bf16.msra.mxu1 %v7064_v23 }
 0x227   : > { %2992 = vmatmul.bf16.gmra.mxu3 %v10571_v46  ;;  %v10575_v46 = vld [vmem:[#allocation11_spill] sm:$0xff] }
 0x229   : > { %2908 = vmatmul.bf16.gmra.mxu2 %v7256_v37  ;;  %v7257_v37 = vld [vmem:[#allocation2 + $0x3c] sm:$0xff] }
 0x22a   : > { %v2677_v9 = vpop.f32.mrf.mxu3 }
 0x22b   : > { %v2678_v52 = vadd.f32 %v2677_v9, %v2589_v13 }
 0x22c   : > { %v2860_v44 = vpop.f32.mrf.mxu1  ;;  %v2593_v45 = vpop.f32.mrf.mxu2 }
 0x22d   : > { %v2767_v54 = vadd.f32 %v2766_v15, %v2678_v52  ;;  %v2594_v32 = vadd.f32 %v2593_v45, %v10573_v63 }
 0x22e   : > { %v2776_v39 = vpop.f32.mrf.mxu0 }
 0x22f   : > { %v8632_v0 = vadd.f32 %v2855_v41, %v2767_v54 }
 0x231   : > { %3091 = vmatmul.bf16.gmra.mxu0 %v8252_v29 }
 0x232   : > { %v2679_v57 = vpop.f32.mrf.mxu3 }
 0x233   : > { %v2680_v18 = vadd.f32 %v2679_v57, %v2591_v33 }
 0x234   : > { %v8639_v13 = vpop.f32.mrf.mxu1  ;;  %v2595_v15 = vpop.f32.mrf.mxu2 }
 0x235   : > { %10574 = vst [vmem:[#allocation21_spill] sm:$0xff] %v8639_v13  ;;  %v8641_v62 = vadd.f32 %v2768_v17, %v2680_v18  ;;  %v2596_v41 = vadd.f32 %v2595_v15, %v8243_v40 }
 0x236   : > { %v2778_v36 = vpop.f32.mrf.mxu0 }
 0x237   : > { %2997 = vmatmul.bf16.gmra.mxu3 %v10575_v46  ;;  %v10579_v46 = vld [vmem:[#allocation23_spill] sm:$0xff] }
 0x239   : > { %2913 = vmatmul.bf16.gmra.mxu2 %v7257_v37  ;;  %v7258_v37 = vld [vmem:[#allocation2 + $0x48] sm:$0xff] }
 0x23a   : > { %v2682_v9 = vpop.f32.mrf.mxu3 }
 0x23b   : > { %v2683_v52 = vadd.f32 %v2682_v9, %v2594_v32  ;;  %v10578_v32 = vld [vmem:[#allocation13_spill] sm:$0xff] }
 0x23c   : > { %v2865_v54 = vpop.f32.mrf.mxu1  ;;  %v2598_v63 = vpop.f32.mrf.mxu2 }
 0x23d   : > { %v2772_v45 = vadd.f32 %v2771_v27, %v2683_v52  ;;  %v2599_v29 = vadd.f32 %v2598_v63, %v8254_v2 }
 0x23e   : > { %v2781_v33 = vpop.f32.mrf.mxu0 }
 0x23f   : > { %v8645_v23 = vadd.f32 %v2860_v44, %v2772_v45 }
 0x241   : > { %3096 = vmatmul.bf16.gmra.mxu0 %v8279_v6  ;;  %v10581_v6 = vld [vmem:[#allocation24_spill] sm:$0xff] }
 0x242   : > { %v2684_v17 = vpop.f32.mrf.mxu3 }
 0x243   : > { %v2685_v57 = vadd.f32 %v2684_v17, %v2596_v41  ;;  %v7063_v17 = vld [vmem:[%s10453_s4 + $0x8] sm:$0xff] }
 0x244   : > { %v2600_v40 = vpop.f32.mrf.mxu2  ;;  %v8651_v15 = vpop.f32.mrf.mxu1  ;;  %5194 = vmatpush.bf16.msra.mxu1 %v7063_v17 }
 0x245   : > { %v8649_v18 = vadd.f32 %v2773_v5, %v2685_v57  ;;  %10577 = vst [vmem:[#allocation10_spill] sm:$0xff] %v8651_v15  ;;  %v2601_v9 = vadd.f32 %v2600_v40, %v10579_v46  ;;  %v10582_v40 = vld [vmem:[#allocation26_spill] sm:$0xff]  ;;  %v7259_v15 = vld [vmem:[#allocation2 + $0x54] sm:$0xff] }
 0x246   : > { %v2783_v27 = vpop.f32.mrf.mxu0 }
 0x247   : > { %10576 = vst [vmem:[#allocation19_spill] sm:$0xff] %v8649_v18  ;;  %3002 = vmatmul.bf16.gmra.mxu3 %v10578_v32  ;;  %v10591_v18 = vld [vmem:[#allocation18_spill] sm:$0xff] }
 0x249   : > { %2918 = vmatmul.bf16.gmra.mxu2 %v7258_v37 }
 0x24a   : > { %v2687_v52 = vpop.f32.mrf.mxu3 }
 0x24b   : > { %v2688_v44 = vadd.f32 %v2687_v52, %v2599_v29 }
 0x24c   : > { %v2603_v45 = vpop.f32.mrf.mxu2  ;;  %v2870_v57 = vpop.f32.mrf.mxu1 }
 0x24d   : > { %v2777_v2 = vadd.f32 %v2776_v39, %v2688_v44  ;;  %v2604_v41 = vadd.f32 %v2603_v45, %v10581_v6  ;;  %v10584_v39 = vld [vmem:[#allocation15_spill] sm:$0xff] }
 0x24e   : > { %v2786_v5 = vpop.f32.mrf.mxu0 }
 0x24f   : > { %v8655_v63 = vadd.f32 %v2865_v54, %v2777_v2  ;;  %v10585_v54 = vld [vmem:[#allocation25_spill] sm:$0xff] }
 0x251   : > { %10580 = vst [vmem:[#allocation20_spill] sm:$0xff] %v8655_v63  ;;  %3101 = vmatmul.bf16.gmra.mxu0 %v10582_v40  ;;  %v10588_v40 = vld [vmem:[#allocation27_spill] sm:$0xff] }
 0x252   : > { %v2689_v32 = vpop.f32.mrf.mxu3 }
 0x253   : > { %v2690_v46 = vadd.f32 %v2689_v32, %v2601_v9 }
 0x254   : > { %v2605_v52 = vpop.f32.mrf.mxu2  ;;  %v8666_v45 = vpop.f32.mrf.mxu1 }
 0x255   : > { %v8662_v29 = vadd.f32 %v2778_v36, %v2690_v46  ;;  %v2606_v44 = vadd.f32 %v2605_v52, %v10585_v54  ;;  %10586 = vst [vmem:[#allocation11_spill] sm:$0xff] %v8666_v45  ;;  %v10589_v46 = vld [vmem:[#allocation29_spill] sm:$0xff] }
 0x256   : > { %v2788_v37 = vpop.f32.mrf.mxu0 }
 0x257   : > { %10583 = vst [vmem:[#allocation22_spill] sm:$0xff] %v8662_v29  ;;  %3007 = vmatmul.bf16.gmra.mxu3 %v10584_v39 }
 0x259   : > { %2923 = vmatmul.bf16.gmra.mxu2 %v7259_v15 }
 0x25a   : > { %v2692_v2 = vpop.f32.mrf.mxu3 }
 0x25b   : > { %v2693_v6 = vadd.f32 %v2692_v2, %v2604_v41  ;;  %v10592_v41 = vld [vmem:[#allocation28_spill] sm:$0xff] }
 0x25c   : > { %v2608_v17 = vpop.f32.mrf.mxu2  ;;  %v2875_v29 = vpop.f32.mrf.mxu1 }
 0x25d   : > { %v2782_v63 = vadd.f32 %v2781_v33, %v2693_v6  ;;  %v2609_v9 = vadd.f32 %v2608_v17, %v10588_v40 }
 0x25e   : > { %v2791_v36 = vpop.f32.mrf.mxu0 }
 0x25f   : > { %v8668_v13 = vadd.f32 %v2870_v57, %v2782_v63  ;;  %v10593_v63 = vld [vmem:[#allocation32_spill] sm:$0xff] }
 0x261   : > { %10587 = vst [vmem:[#allocation13_spill] sm:$0xff] %v8668_v13  ;;  %3106 = vmatmul.bf16.gmra.mxu0 %v10589_v46 }
 0x262   : > { %v2694_v32 = vpop.f32.mrf.mxu3 }
 0x263   : > { %v2695_v39 = vadd.f32 %v2694_v32, %v2606_v44  ;;  %v10596_v44 = vld [vmem:[#allocation30_spill] sm:$0xff] }
 0x264   : > { %v2610_v54 = vpop.f32.mrf.mxu2  ;;  %v8677_v17 = vpop.f32.mrf.mxu1 }
 0x265   : > { %v8672_v52 = vadd.f32 %v2783_v27, %v2695_v39  ;;  %v2611_v2 = vadd.f32 %v2610_v54, %v10592_v41  ;;  %10594 = vst [vmem:[#allocation24_spill] sm:$0xff] %v8677_v17  ;;  %v10597_v39 = vld [vmem:[#allocation33_spill] sm:$0xff]  ;;  %v10599_v41 = vld [vmem:[#allocation7_spill] sm:$0xff] }
 0x266   : > { %v2793_v15 = vpop.f32.mrf.mxu0 }
 0x267   : > { %10590 = vst [vmem:[#allocation23_spill] sm:$0xff] %v8672_v52  ;;  %3012 = vmatmul.bf16.gmra.mxu3 %v10591_v18  ;;  %v7062_v18 = vld [vmem:[%s10453_s4] sm:$0xff]  ;;  %v10603_v52 = vld [vmem:[#allocation34_spill] sm:$0xff] }
 0x268   : > { %5195 = vmatpush.bf16.msra.mxu1 %v7062_v18 }
 0x269   : > { %2928 = vmatmul.bf16.gmra.mxu2 %v10593_v63 }
 0x26a   : > { %v2697_v33 = vpop.f32.mrf.mxu3 }
 0x26b   : > { %v2698_v6 = vadd.f32 %v2697_v33, %v2609_v9  ;;  %v10600_v33 = vld [vmem:[#allocation31_spill] sm:$0xff] }
 0x26c   : > { %v2613_v40 = vpop.f32.mrf.mxu2  ;;  %v2880_v63 = vpop.f32.mrf.mxu1 }
 0x26d   : > { %v2787_v57 = vadd.f32 %v2786_v5, %v2698_v6  ;;  %v2614_v32 = vadd.f32 %v2613_v40, %v10596_v44  ;;  %v10601_v44 = vld [vmem:[#allocation36_spill] sm:$0xff] }
 0x26e   : > { %v2796_v27 = vpop.f32.mrf.mxu0 }
 0x26f   : > { %v8679_v45 = vadd.f32 %v2875_v29, %v2787_v57 }
 0x271   : > { %10595 = vst [vmem:[#allocation26_spill] sm:$0xff] %v8679_v45  ;;  %3111 = vmatmul.bf16.gmra.mxu0 %v10597_v39 }
 0x272   : > { %v2699_v46 = vpop.f32.mrf.mxu3 }
 0x273   : > { %v2700_v9 = vadd.f32 %v2699_v46, %v2611_v2 }
 0x274   : > { %v2615_v5 = vpop.f32.mrf.mxu2  ;;  %v8694_v46 = vpop.f32.mrf.mxu1 }
 0x275   : > { %v8686_v54 = vadd.f32 %v2788_v37, %v2700_v9  ;;  %v2616_v29 = vadd.f32 %v2615_v5, %v10600_v33  ;;  %10604 = vst [vmem:[#allocation27_spill] sm:$0xff] %v8694_v46  ;;  %v7134_v33 = vld [vmem:[#allocation3] sm:$0xff] }
 0x276   : > { %v2798_v6 = vpop.f32.mrf.mxu0  ;;  %5196 = vmatmul.bf16.vlgmr.msra.gmra.mxu1 %v7134_v33  ;;  %v10611_v33 = vld [vmem:[#allocation37_spill] sm:$0xff] }
 0x277   : > { %10598 = vst [vmem:[#allocation15_spill] sm:$0xff] %v8686_v54  ;;  %3017 = vmatmul.bf16.gmra.mxu3 %v10599_v41 }
 0x279   : > { %2933 = vmatmul.bf16.gmra.mxu2 %v10601_v44 }
 0x27a   : > { %v2702_v57 = vpop.f32.mrf.mxu3 }
 0x27b   : > { %v2703_v40 = vadd.f32 %v2702_v57, %v2614_v32  ;;  %v10606_v32 = vld [vmem:[#allocation8_spill] sm:$0xff]  ;;  %v10607_v57 = vld [vmem:[#allocation35_spill] sm:$0xff] }
 0x27c   : > { %v2618_v45 = vpop.f32.mrf.mxu2 }
 0x27d   : > { %v2792_v17 = vadd.f32 %v2791_v36, %v2703_v40  ;;  %v2619_v39 = vadd.f32 %v2618_v45, %v10603_v52  ;;  %v2885_v45 = vpop.f32.mrf.mxu1 }
 0x27e   : > { %v3077_v2 = vpop.f32.mrf.mxu0 }
 0x27f   : > { %v8691_v18 = vadd.f32 %v2880_v63, %v2792_v17 }
 0x281   : > { %10602 = vst [vmem:[#allocation25_spill] sm:$0xff] %v8691_v18  ;;  %3116 = vmatmul.bf16.gmra.mxu0 %v8380_v28 }
 0x282   : > { %v2704_v37 = vpop.f32.mrf.mxu3 }
 0x283   : > { %v2705_v9 = vadd.f32 %v2704_v37, %v2616_v29 }
 0x284   : > { %v2620_v41 = vpop.f32.mrf.mxu2 }
 0x285   : > { %v8697_v5 = vadd.f32 %v2793_v15, %v2705_v9  ;;  %v2621_v36 = vadd.f32 %v2620_v41, %v10607_v57  ;;  %v10610_v41 = vld [vmem:[#allocation9_spill] sm:$0xff] }
 0x286   : > { %v3079_v40 = vpop.f32.mrf.mxu0  ;;  %v8720_v57 = vld [vmem:[%s10451_s2] ss:$0 sm:$0xff] }
 0x287   : > { %10605 = vst [vmem:[#allocation29_spill] sm:$0xff] %v8697_v5  ;;  %3022 = vmatmul.bf16.gmra.mxu3 %v10606_v32 }
 0x289   : > { %2938 = vmatmul.bf16.gmra.mxu2 %v8402_v8  ;;  %v7085_v8 = vld [vmem:[%s10453_s4 + $0xb8] sm:$0xff] }
 0x28a   : > { %v2707_v17 = vpop.f32.mrf.mxu3  ;;  %5366 = vmatpush.bf16.msrb.mxu3 %v7085_v8 }
 0x28b   : > { %v2708_v63 = vadd.f32 %v2707_v17, %v2619_v39  ;;  %v7077_v39 = vld [vmem:[%s10453_s4 + $0x78] sm:$0xff]  ;;  %v8726_v17 = vld [vmem:[%s10452_s3] ss:$0 sm:$0xff] }
 0x28c   : > { %v2899_v44 = vpop.f32.mrf.mxu2  ;;  %5277 = vmatpush.bf16.msrb.mxu2 %v7077_v39 }
 0x28d   : > { %v2797_v52 = vadd.f32 %v2796_v27, %v2708_v63  ;;  %v2900_v32 = vadd.f32 %v2899_v44, %v10611_v33 }
 0x28e   : > { %v3082_v28 = vpop.f32.mrf.mxu0 }
 0x28f   : > { %v8702_v46 = vadd.f32 %v2885_v45, %v2797_v52  ;;  %v7093_v45 = vld [vmem:[%s10453_s4 + $0xf8] sm:$0xff] }
 0x290   : > { %v7101_v52 = vld [vmem:[%s10453_s4 + $0x138] sm:$0xff]  ;;  %5455 = vmatpush.bf16.msrb.mxu0 %v7093_v45 }
 0x291   : > { %10608 = vst [vmem:[#allocation18_spill] sm:$0xff] %v8702_v46  ;;  %3121 = vmatmul.bf16.gmra.mxu0 %v8408_v12  ;;  %5544 = vmatpush.bf16.msrb.mxu1 %v7101_v52 }
 0x292   : > { %v2709_v15 = vpop.f32.mrf.mxu3 }
 0x293   : > { %v2710_v29 = vadd.f32 %v2709_v15, %v2621_v36 }
 0x294   : > { %v2901_v9 = vpop.f32.mrf.mxu2 }
 0x295   : > { %v8705_v37 = vadd.f32 %v2798_v6, %v2710_v29 }
 0x296   : > { %v8714_v27 = vpop.f32.mrf.mxu0 }
 0x297   : > { %10609 = vst [vmem:[#allocation28_spill] sm:$0xff] %v8705_v37  ;;  %3027 = vmatmul.bf16.gmra.mxu3 %v10610_v41 }
 0x299   : > { %2943 = vmatmul.bf16.gmra.mxu2 %v8432_v60 }
 0x29a   : > { %v2988_v12 = vpop.f32.mrf.mxu3 }
 0x29b   : > { %v2989_v6 = vadd.f32 %v2988_v12, %v2900_v32 }
 0x29c   : > { %v2904_v63 = vpop.f32.mrf.mxu2 }
 0x29d   : > { %v3078_v36 = vadd.f32 %v3077_v2, %v2989_v6  ;;  %v2902_v2 = vadd.f32 %v2901_v9, %v8400_v53  ;;  %v10612_v9 = vld [vmem:[#allocation38_spill] sm:$0xff] }
 0x29e   : > { %v8735_v15 = vpop.f32.mrf.mxu0 }
 0x29f   : > { %v3161_v44 = vmul.f32 %v8720_v57, %v3078_v36 }
 0x2a1   : > { %v3197_v60 = vadd.f32 %v8726_v17, %v3161_v44  ;;  %3126 = vmatmul.bf16.gmra.mxu0 %v8441_v21  ;;  %v2905_v44 = vadd.f32 %v2904_v63, %v10612_v9 }
 0x2a2   : > { %v2990_v29 = vpop.f32.mrf.mxu3 }
 0x2a3   : > { %v3229_v41 = vmax.f32 %v3197_v60, 0.0  ;;  %v2991_v39 = vadd.f32 %v2990_v29, %v2902_v2 }
 0x2a4   : > { %v2906_v32 = vpop.f32.mrf.mxu2 }
 0x2a5   : > { %v3261_v8 = vpack.c.bf16 %v3229_v41, %v3229_v41  ;;  %v3080_v33 = vadd.f32 %v3079_v40, %v2991_v39  ;;  %v3616_v40 = vld [vmem:[#allocation3 + $0xc] sm:$0xf]  ;;  %v10615_v39 = vld [vmem:[#allocation42_spill] sm:$0xff] }
 0x2a6   : > { %v8742_v36 = vpop.f32.mrf.mxu0 }
 0x2a7   : > { %v3294_v12 = vshrl.u32 %v3261_v8, 16  ;;  %v3162_v6 = vmul.f32 %v8720_v57, %v3080_v33  ;;  %3032 = vmatmul.bf16.gmra.mxu3 %v7897_v19  ;;  %v3297_v52 = vshll.u32 %v3261_v8, 16 }
 0x2a9   : > { %v3296_v45 = vrot.slane %v3294_v12, 7  ;;  %v3198_v53 = vadd.f32 %v8726_v17, %v3162_v6  ;;  %2948 = vmatmul.bf16.gmra.mxu2 %v10615_v39 }
 0x2aa   : > { %v2993_v60 = vpop.f32.mrf.mxu3 }
 0x2ab   : > { %v3299_v2 = vor.u32 %v3297_v52, %v3296_v45  ;;  %v3230_v29 = vmax.f32 %v3198_v53, 0.0  ;;  %v2994_v41 = vadd.f32 %v2993_v60, %v2905_v44  ;;  %v10616_v53 = vld [vmem:[#allocation39_spill] sm:$0xff]  ;;  %v3300_v60 = vrot.slane %v3296_v45, 4 }
 0x2ac   : > { %v2909_v12 = vpop.f32.mrf.mxu2  ;;  %v2907_v44 = vadd.f32 %v2906_v32, %v10616_v53 }
 0x2ad   : > { %v3617_v19 = vsel %vm8747_vm15, %v3299_v2, %v3616_v40  ;;  %v3262_v8 = vpack.c.bf16 %v3230_v29, %v3230_v29  ;;  %v3083_v33 = vadd.f32 %v3082_v28, %v2994_v41  ;;  %v3622_v28 = vld [vmem:[#allocation3 + $0x14] sm:$0x1] }
 0x2ae   : > { %3618 = vst [vmem:[#allocation3 + $0xc] sm:$0xf] %v3617_v19  ;;  %v8755_v9 = vpop.f32.mrf.mxu0 }
 0x2af   : > { %v3302_v63 = vshrl.u32 %v3262_v8, 16  ;;  %v3163_v6 = vmul.f32 %v8720_v57, %v3083_v33  ;;  %v3305_v46 = vshll.u32 %v3262_v8, 16 }
 0x2b1   : > { %v3304_v37 = vrot.slane %v3302_v63, 7  ;;  %v3199_v52 = vadd.f32 %v8726_v17, %v3163_v6  ;;  %3131 = vmatmul.bf16.gmra.mxu0 %v8472_v22  ;;  %v10619_v22 = vld [vmem:[#allocation12_spill] sm:$0xff] }
 0x2b2   : > { %v2995_v2 = vpop.f32.mrf.mxu3 }
 0x2b3   : > { %v3307_v29 = vor.u32 %v3305_v46, %v3304_v37  ;;  %v3309_v41 = vrot.slane %v3304_v37, 4  ;;  %v3231_v39 = vmax.f32 %v3199_v52, 0.0  ;;  %v2996_v19 = vadd.f32 %v2995_v2, %v2907_v44  ;;  %v7076_v46 = vld [vmem:[%s10453_s4 + $0x70] sm:$0xff] }
 0x2b4   : > { %v2911_v63 = vpop.f32.mrf.mxu2  ;;  %v7084_v37 = vld [vmem:[%s10453_s4 + $0xb0] sm:$0xff]  ;;  %5278 = vmatpush.bf16.msrb.mxu2 %v7076_v46 }
 0x2b5   : > { %v3308_v8 = vsel %vm7627_vm8, %v3300_v60, %v3307_v29  ;;  %v3623_v32 = vsel %vm8760_vm1, %v3309_v41, %v3622_v28  ;;  %v3263_v45 = vpack.c.bf16 %v3231_v39, %v3231_v39  ;;  %v3085_v33 = vadd.f32 %v8714_v27, %v2996_v19  ;;  %v10620_v28 = vld [vmem:[#allocation40_spill] sm:$0xff]  ;;  %5367 = vmatpush.bf16.msrb.mxu3 %v7084_v37  ;;  %v3625_v29 = vld [vmem:[#allocation3 + $0x18] sm:$0xf] }
 0x2b6   : > { %3619 = vst [vmem:[#allocation3 + $0x10] sm:$0xf] %v3308_v8  ;;  %v8778_v52 = vpop.f32.mrf.mxu0  ;;  %v2910_v2 = vadd.f32 %v2909_v12, %v10620_v28  ;;  %v7092_v12 = vld [vmem:[%s10453_s4 + $0xf0] sm:$0xff]  ;;  %v10621_v28 = vld [vmem:[#allocation41_spill] sm:$0xff] }
 0x2b7   : > { %3624 = vst [vmem:[#allocation3 + $0x14] sm:$0x1] %v3623_v32  ;;  %v3311_v6 = vshrl.u32 %v3263_v45, 16  ;;  %v3164_v53 = vmul.f32 %v8720_v57, %v3085_v33  ;;  %3037 = vmatmul.bf16.gmra.mxu3 %v10619_v22  ;;  %v3314_v27 = vshll.u32 %v3263_v45, 16  ;;  %v7100_v22 = vld [vmem:[%s10453_s4 + $0x130] sm:$0xff]  ;;  %5456 = vmatpush.bf16.msrb.mxu0 %v7092_v12 }
 0x2b8   : > { %5545 = vmatpush.bf16.msrb.mxu1 %v7100_v22 }
 0x2b9   : > { %v3313_v44 = vrot.slane %v3311_v6, 7  ;;  %v3200_v60 = vadd.f32 %v8726_v17, %v3164_v53  ;;  %2953 = vmatmul.bf16.gmra.mxu2 %v8515_v38 }
 0x2ba   : > { %v2998_v41 = vpop.f32.mrf.mxu3 }
 0x2bb   : > { %v3316_v39 = vor.u32 %v3314_v27, %v3313_v44  ;;  %v3232_v19 = vmax.f32 %v3200_v60, 0.0  ;;  %v2999_v8 = vadd.f32 %v2998_v41, %v2910_v2  ;;  %v2912_v2 = vadd.f32 %v2911_v63, %v10621_v28  ;;  %v3629_v41 = vld [vmem:[#allocation3 + $0x20] sm:$0x1] }
 0x2bc   : > { %v2914_v53 = vpop.f32.mrf.mxu2 }
 0x2bd   : > { %v3626_v32 = vsel %vm8747_vm15, %v3316_v39, %v3625_v29  ;;  %v3264_v33 = vpack.c.bf16 %v3232_v19, %v3232_v19  ;;  %v3088_v6 = vadd.f32 %v8735_v15, %v2999_v8  ;;  %v8786_v45 = vld [vmem:[#allocation3 + $0xc] sm:$0xff]  ;;  %v3317_v29 = vrot.slane %v3313_v44, 4 }
 0x2be   : > { %3627 = vst [vmem:[#allocation3 + $0x18] sm:$0xf] %v3626_v32  ;;  %5201 = vmatmul.bf16.gmra.mxu1 %v8786_v45  ;;  %v8796_v37 = vpop.f32.mrf.mxu0  ;;  %v2915_v28 = vadd.f32 %v2914_v53, %v8485_v16 }
 0x2bf   : > { %v3319_v46 = vshrl.u32 %v3264_v33, 16  ;;  %v3165_v38 = vmul.f32 %v8720_v57, %v3088_v6  ;;  %v3322_v27 = vshll.u32 %v3264_v33, 16 }
 0x2c1   : > { %v3321_v15 = vrot.slane %v3319_v46, 7  ;;  %v3201_v60 = vadd.f32 %v8726_v17, %v3165_v38  ;;  %3136 = vmatmul.bf16.gmra.mxu0 %v8526_v56  ;;  %v10622_v56 = vld [vmem:[#allocation14_spill] sm:$0xff] }
 0x2c2   : > { %v3000_v39 = vpop.f32.mrf.mxu3 }
 0x2c3   : > { %v3324_v19 = vor.u32 %v3322_v27, %v3321_v15  ;;  %v3326_v8 = vrot.slane %v3321_v15, 4  ;;  %v3233_v32 = vmax.f32 %v3201_v60, 0.0  ;;  %v3001_v6 = vadd.f32 %v3000_v39, %v2912_v2  ;;  %v3632_v2 = vld [vmem:[#allocation3 + $0x24] sm:$0xf] }
 0x2c4   : > { %v2916_v63 = vpop.f32.mrf.mxu2 }
 0x2c5   : > { %v3325_v5 = vsel %vm7627_vm8, %v3317_v29, %v3324_v19  ;;  %v3630_v12 = vsel %vm8760_vm1, %v3326_v8, %v3629_v41  ;;  %v3265_v33 = vpack.c.bf16 %v3233_v32, %v3233_v32  ;;  %v3090_v22 = vadd.f32 %v8742_v36, %v3001_v6 }
 0x2c6   : > { %3628 = vst [vmem:[#allocation3 + $0x1c] sm:$0xf] %v3325_v5  ;;  %v8808_v38 = vpop.f32.mrf.mxu0 }
 0x2c7   : > { %3631 = vst [vmem:[#allocation3 + $0x20] sm:$0x1] %v3630_v12  ;;  %v3328_v44 = vshrl.u32 %v3265_v33, 16  ;;  %v3166_v46 = vmul.f32 %v8720_v57, %v3090_v22  ;;  %3042 = vmatmul.bf16.gmra.mxu3 %v10622_v56  ;;  %v3331_v27 = vshll.u32 %v3265_v33, 16  ;;  %v3636_v56 = vld [vmem:[#allocation3 + $0x2c] sm:$0x1] }
 0x2c9   : > { %v3330_v15 = vrot.slane %v3328_v44, 7  ;;  %v3202_v60 = vadd.f32 %v8726_v17, %v3166_v46  ;;  %2958 = vmatmul.bf16.gmra.mxu2 %v8553_v26  ;;  %v2917_v44 = vadd.f32 %v2916_v63, %v8513_v47 }
 0x2ca   : > { %v3003_v29 = vpop.f32.mrf.mxu3 }
 0x2cb   : > { %v3333_v41 = vor.u32 %v3331_v27, %v3330_v15  ;;  %v3234_v36 = vmax.f32 %v3202_v60, 0.0  ;;  %v3004_v5 = vadd.f32 %v3003_v29, %v2915_v28  ;;  %v3334_v46 = vrot.slane %v3330_v15, 4 }
 0x2cc   : > { %v2919_v6 = vpop.f32.mrf.mxu2 }
 0x2cd   : > { %v3633_v39 = vsel %vm8747_vm15, %v3333_v41, %v3632_v2  ;;  %v3266_v19 = vpack.c.bf16 %v3234_v36, %v3234_v36  ;;  %v3093_v8 = vadd.f32 %v8755_v9, %v3004_v5  ;;  %v8816_v32 = vld [vmem:[#allocation3 + $0x18] sm:$0xff] }
 0x2ce   : > { %3634 = vst [vmem:[#allocation3 + $0x24] sm:$0xf] %v3633_v39  ;;  %5206 = vmatmul.bf16.gmra.mxu1 %v8816_v32  ;;  %v8820_v53 = vpop.f32.mrf.mxu0  ;;  %v7083_v39 = vld [vmem:[%s10453_s4 + $0xa8] sm:$0xff] }
 0x2cf   : > { %v3336_v12 = vshrl.u32 %v3266_v19, 16  ;;  %v3167_v16 = vmul.f32 %v8720_v57, %v3093_v8  ;;  %v3339_v22 = vshll.u32 %v3266_v19, 16  ;;  %5368 = vmatpush.bf16.msrb.mxu3 %v7083_v39  ;;  %v8869_v39 = vld [vmem:[#allocation2 + $0xd4] sm:$0x1] }
 0x2d1   : > { %v3338_v33 = vrot.slane %v3336_v12, 7  ;;  %v3203_v26 = vadd.f32 %v8726_v17, %v3167_v16  ;;  %3141 = vmatmul.bf16.gmra.mxu0 %v8561_v7  ;;  %v7075_v7 = vld [vmem:[%s10453_s4 + $0x68] sm:$0xff]  ;;  %v10623_v16 = vld [vmem:[#allocation16_spill] sm:$0xff] }
 0x2d2   : > { %v3005_v9 = vpop.f32.mrf.mxu3  ;;  %5279 = vmatpush.bf16.msrb.mxu2 %v7075_v7  ;;  %v7090_v7 = vld [vmem:[%s10453_s4 + $0xe0] sm:$0xff] }
 0x2d3   : > { %v3341_v27 = vor.u32 %v3339_v22, %v3338_v33  ;;  %v3343_v60 = vrot.slane %v3338_v33, 4  ;;  %v3235_v28 = vmax.f32 %v3203_v26, 0.0  ;;  %v3006_v2 = vadd.f32 %v3005_v9, %v2917_v44  ;;  %v3639_v22 = vld [vmem:[#allocation3 + $0x30] sm:$0xf]  ;;  %v8846_v9 = vld [vmem:[#allocation2 + $0xd0] sm:$0xf] }
 0x2d4   : > { %v2921_v47 = vpop.f32.mrf.mxu2  ;;  %v2920_v33 = vadd.f32 %v2919_v6, %v10623_v16 }
 0x2d5   : > { %v3342_v29 = vsel %vm7627_vm8, %v3334_v46, %v3341_v27  ;;  %v3637_v41 = vsel %vm8760_vm1, %v3343_v60, %v3636_v56  ;;  %v3267_v36 = vpack.c.bf16 %v3235_v28, %v3235_v28  ;;  %v3095_v5 = vadd.f32 %v8778_v52, %v3006_v2  ;;  %v7091_v56 = vld [vmem:[%s10453_s4 + $0xe8] sm:$0xff] }
 0x2d6   : > { %3635 = vst [vmem:[#allocation3 + $0x28] sm:$0xf] %v3342_v29  ;;  %v8838_v19 = vpop.f32.mrf.mxu0  ;;  %5457 = vmatpush.bf16.msrb.mxu0 %v7091_v56  ;;  %v1703_v29 = vrot.slane %v8846_v9, 5  ;;  %v1706_v56 = vrot.slane %v8869_v39, 5 }
 0x2d7   : > { %3638 = vst [vmem:[#allocation3 + $0x2c] sm:$0x1] %v3637_v41  ;;  %v3345_v63 = vshrl.u32 %v3267_v36, 16  ;;  %v3168_v15 = vmul.f32 %v8720_v57, %v3095_v5  ;;  %3047 = vmatmul.bf16.gmra.mxu3 %v8098_v30  ;;  %v3348_v52 = vshll.u32 %v3267_v36, 16  ;;  %v10624_v41 = vld [vmem:[#allocation43_spill] sm:$0xff] }
 0x2d8   : > { %v2833_v36 = vadd.f32 %v10624_v41, %v8551_v11 }
 0x2d9   : > { %v3347_v8 = vrot.slane %v3345_v63, 7  ;;  %v3204_v12 = vadd.f32 %v8726_v17, %v3168_v15  ;;  %2963 = vmatmul.bf16.gmra.mxu2 %v8586_v10  ;;  %v7099_v10 = vld [vmem:[%s10453_s4 + $0x128] sm:$0xff]  ;;  %v7074_v15 = vld [vmem:[%s10453_s4 + $0x60] sm:$0xff] }
 0x2da   : > { %v3008_v30 = vpop.f32.mrf.mxu3  ;;  %5546 = vmatpush.bf16.msrb.mxu1 %v7099_v10  ;;  %v2922_v16 = vadd.f32 %v2921_v47, %v2833_v36  ;;  %5280 = vmatpush.bf16.msrb.mxu2 %v7074_v15  ;;  %v7082_v47 = vld [vmem:[%s10453_s4 + $0xa0] sm:$0xff] }
 0x2db   : > { %v3350_v26 = vor.u32 %v3348_v52, %v3347_v8  ;;  %v3236_v44 = vmax.f32 %v3204_v12, 0.0  ;;  %v3009_v46 = vadd.f32 %v3008_v30, %v2920_v33  ;;  %5458 = vmatpush.bf16.msrb.mxu0 %v7090_v7  ;;  %v1087_v33 = vld [vmem:[#allocation2 + $0xcc] sm:$0xf]  ;;  %v3643_v30 = vld [vmem:[#allocation3 + $0x38] sm:$0x1]  ;;  %5369 = vmatpush.bf16.msrb.mxu3 %v7082_v47 }
 0x2dc   : > { %v2924_v2 = vpop.f32.mrf.mxu2 }
 0x2dd   : > { %v3640_v27 = vsel %vm8747_vm15, %v3350_v26, %v3639_v22  ;;  %v3268_v60 = vpack.c.bf16 %v3236_v44, %v3236_v44  ;;  %v3098_v6 = vadd.f32 %v8796_v37, %v3009_v46  ;;  %v8851_v28 = vld [vmem:[#allocation3 + $0x24] sm:$0xff]  ;;  %v3351_v22 = vrot.slane %v3347_v8, 4 }
 0x2de   : > { %3641 = vst [vmem:[#allocation3 + $0x30] sm:$0xf] %v3640_v27  ;;  %5211 = vmatmul.bf16.gmra.mxu1 %v8851_v28  ;;  %v8861_v37 = vpop.f32.mrf.mxu0  ;;  %v6227_v44 = vrot.slane %v1087_v33, 9  ;;  %v1705_v46 = vrot.slane %v1703_v29, 4  ;;  %v7073_v8 = vld [vmem:[%s10453_s4 + $0x58] sm:$0xff] }
 0x2df   : > { %v3353_v5 = vshrl.u32 %v3268_v60, 16  ;;  %v3169_v63 = vmul.f32 %v8720_v57, %v3098_v6  ;;  %v3356_v11 = vshll.u32 %v3268_v60, 16  ;;  %5281 = vmatpush.bf16.msrb.mxu2 %v7073_v8  ;;  %v8913_v8 = vld [vmem:[#allocation3] sm:$0xf] }
 0x2e1   : > { %v3355_v52 = vrot.slane %v3353_v5, 7  ;;  %v3205_v12 = vadd.f32 %v8726_v17, %v3169_v63  ;;  %3146 = vmatmul.bf16.gmra.mxu0 %v8590_v31  ;;  %v7089_v31 = vld [vmem:[%s10453_s4 + $0xd8] sm:$0xff] }
 0x2e2   : > { %v3010_v26 = vpop.f32.mrf.mxu3  ;;  %5459 = vmatpush.bf16.msrb.mxu0 %v7089_v31 }
 0x2e3   : > { %v3358_v27 = vor.u32 %v3356_v11, %v3355_v52  ;;  %v3360_v6 = vrot.slane %v3355_v52, 4  ;;  %v3237_v10 = vmax.f32 %v3205_v12, 0.0  ;;  %v3011_v41 = vadd.f32 %v3010_v26, %v2922_v16  ;;  %v7081_v16 = vld [vmem:[%s10453_s4 + $0x98] sm:$0xff] }
 0x2e4   : > { %v8888_v15 = vpop.f32.mrf.mxu2  ;;  %v1704_v12 = vsel %vm8129_vm13, %v6227_v44, %v1703_v29  ;;  %v1678_v26 = vshll.u32 %v1087_v33, 16  ;;  %v7088_v29 = vld [vmem:[%s10453_s4 + $0xd0] sm:$0xff]  ;;  %5370 = vmatpush.bf16.msrb.mxu3 %v7081_v16 }
 0x2e5   : > { %v3359_v60 = vsel %vm7627_vm8, %v3351_v22, %v3358_v27  ;;  %v3644_v36 = vsel %vm8760_vm1, %v3360_v6, %v3643_v30  ;;  %v3269_v5 = vpack.c.bf16 %v3237_v10, %v3237_v10  ;;  %v3100_v63 = vadd.f32 %v8808_v38, %v3011_v41  ;;  %v7072_v22 = vld [vmem:[%s10453_s4 + $0x50] sm:$0xff] }
 0x2e6   : > { %3642 = vst [vmem:[#allocation3 + $0x34] sm:$0xf] %v3359_v60  ;;  %v8892_v11 = vpop.f32.mrf.mxu0  ;;  %v1707_v38 = vsel %vm8129_vm13, %v1705_v46, %v1706_v56  ;;  %v1675_v30 = vshrl.u32 %v1087_v33, 16  ;;  %v1688_v27 = vshrl.u32 %v8846_v9, 16  ;;  %v2925_v6 = vadd.f32 %v2924_v2, %v8570_v49  ;;  %v3646_v10 = vld [vmem:[#allocation3 + $0x3c] sm:$0xf]  ;;  %5282 = vmatpush.bf16.msrb.mxu2 %v7072_v22  ;;  %5460 = vmatpush.bf16.msrb.mxu0 %v7088_v29 }
 0x2e7   : > { %3645 = vst [vmem:[#allocation3 + $0x38] sm:$0x1] %v3644_v36  ;;  %v3362_v7 = vshrl.u32 %v3269_v5, 16  ;;  %v3170_v52 = vmul.f32 %v8720_v57, %v3100_v63  ;;  %3052 = vmatmul.bf16.gmra.mxu3 %v8153_v61  ;;  %v1684_v61 = vshll.u32 %v8846_v9, 16  ;;  %v3365_v46 = vshll.u32 %v3269_v5, 16  ;;  %v7080_v49 = vld [vmem:[%s10453_s4 + $0x90] sm:$0xff] }
 0x2e8   : > { %v1920_v47 = vunpack.c.l.b16 %v1704_v12  ;;  %v1921_v33 = vunpack.c.l.b16 %v1707_v38  ;;  %v2838_v9 = vadd.f32 %v8548_v3, %v8584_v35  ;;  %v7071_v2 = vld [vmem:[%s10453_s4 + $0x48] sm:$0xff]  ;;  %v8925_v5 = vld [vmem:[#allocation3 + $0x4] sm:$0xf]  ;;  %v1677_v63 = vrot.slane %v1675_v30, 4  ;;  %5371 = vmatpush.bf16.msrb.mxu3 %v7080_v49 }
 0x2e9   : > { %v8909_v44 = vrot.slane %v3362_v7, 7  ;;  %v3206_v56 = vadd.f32 %v8726_v17, %v3170_v52  ;;  %2968 = vmatmul.bf16.gmra.mxu2 %v8599_v58  ;;  %v1680_v7 = vrot.slane %v1678_v26, 5  ;;  %v8927_v52 = vrot.slane %v1684_v61, 5  ;;  %v7087_v35 = vld [vmem:[%s10453_s4 + $0xc8] sm:$0xff] }
 0x2ea   : > { %v3013_v41 = vpop.f32.mrf.mxu3  ;;  %v1690_v3 = vrot.slane %v1688_v27, 4  ;;  %v3929_v22 = vshrl.u32 %v8913_v8, 16  ;;  %v1922_v26 = vpack.c.b16 %v1921_v33, %v1920_v47  ;;  %5283 = vmatpush.bf16.msrb.mxu2 %v7071_v2  ;;  %5461 = vmatpush.bf16.msrb.mxu0 %v7087_v35  ;;  %v3932_v61 = vshll.u32 %v8913_v8, 16 }
 0x2eb   : > { %v3367_v31 = vor.u32 %v3365_v46, %v8909_v44  ;;  %v3238_v60 = vmax.f32 %v3206_v56, 0.0  ;;  %v3014_v36 = vadd.f32 %v3013_v41, %v2925_v6  ;;  %v3938_v27 = vshll.u32 %v8925_v5, 16  ;;  %v7079_v6 = vld [vmem:[%s10453_s4 + $0x88] sm:$0xff]  ;;  %v7086_v41 = vld [vmem:[%s10453_s4 + $0xc0] sm:$0xff] }
 0x2ec   : > { %v2929_v30 = vpop.f32.mrf.mxu2  ;;  %v3942_v29 = vshrl.u32 %v8925_v5, 16  ;;  %v2927_v47 = vadd.f32 %v8888_v15, %v2838_v9  ;;  %v1681_v33 = vor.u32 %v1680_v7, %v1677_v63  ;;  %5372 = vmatpush.bf16.msrb.mxu3 %v7079_v6  ;;  %v3931_v35 = vrot.slane %v3929_v22, 4 }
 0x2ed   : > { %v3647_v58 = vsel %vm8747_vm15, %v3367_v31, %v3646_v10  ;;  %v3270_v12 = vpack.c.bf16 %v3238_v60, %v3238_v60  ;;  %v3103_v38 = vadd.f32 %v8820_v53, %v3014_v36  ;;  %v8935_v16 = vld [vmem:[#allocation3 + $0x30] sm:$0xff]  ;;  %v7070_v10 = vld [vmem:[%s10453_s4 + $0x40] sm:$0xff]  ;;  %v1691_v31 = vor.u32 %v1690_v3, %v8927_v52 }
 0x2ee   : > { %3648 = vst [vmem:[#allocation3 + $0x3c] sm:$0xf] %v3647_v58  ;;  %5216 = vmatmul.bf16.gmra.mxu1 %v8935_v16  ;;  %v8943_v53 = vpop.f32.mrf.mxu0  ;;  %v1694_v60 = vshll.u32 %v8869_v39, 16  ;;  %v3368_v58 = vrot.slane %v8909_v44, 4  ;;  %5284 = vmatpush.bf16.msrb.mxu2 %v7070_v10  ;;  %v3934_v54 = vrot.slane %v3932_v61, 5  ;;  %v8959_v13 = vrot.slane %v3938_v27, 5 }
 0x2ef   : > { %v3370_v46 = vshrl.u32 %v3270_v12, 16  ;;  %v3171_v56 = vmul.f32 %v8720_v57, %v3103_v38  ;;  %v3373_v49 = vshll.u32 %v3270_v12, 16  ;;  %v3650_v38 = vld [vmem:[#allocation3 + $0x44] sm:$0x1]  ;;  %v3944_v15 = vrot.slane %v3942_v29, 4  ;;  %5462 = vmatpush.bf16.msrb.mxu0 %v7086_v41  ;;  %v7078_v3 = vld [vmem:[%s10453_s4 + $0x80] sm:$0xff] }
 0x2f0   : > { %v1682_v12 = vrot.slane %v1681_v33, 4  ;;  %v1692_v22 = vrot.slane %v1691_v31, 4  ;;  %v1696_v44 = vrot.slane %v1694_v60, 5  ;;  %5373 = vmatpush.bf16.msrb.mxu3 %v7078_v3 }
 0x2f1   : > { %v3372_v36 = vrot.slane %v3370_v46, 7  ;;  %v3207_v2 = vadd.f32 %v8726_v17, %v3171_v56  ;;  %3151 = vmatmul.bf16.gmra.mxu0 %v1922_v26  ;;  %v8964_v46 = vld [vmem:[#allocation3 + $0x8] sm:$0x1]  ;;  %v3935_v56 = vor.u32 %v3934_v54, %v3931_v35  ;;  %v3945_v6 = vor.u32 %v3944_v15, %v8959_v13 }
 0x2f2   : > { %v3015_v18 = vpop.f32.mrf.mxu3  ;;  %v3948_v31 = vshll.u32 %v8964_v46, 16  ;;  %v1697_v54 = vsel %vm7596_vm4, %v1692_v22, %v1696_v44  ;;  %v3653_v35 = vld [vmem:[#allocation3 + $0x48] sm:$0xf] }
 0x2f3   : > { %v3375_v9 = vor.u32 %v3373_v49, %v3372_v36  ;;  %v3377_v63 = vrot.slane %v3372_v36, 4  ;;  %v3239_v7 = vmax.f32 %v3207_v2, 0.0  ;;  %v3016_v39 = vadd.f32 %v3015_v18, %v2927_v47  ;;  %v7061_v47 = vld [vmem:[#allocation2 + $0xcc] sm:$0xff] }
 0x2f4   : > { %v2931_v18 = vpop.f32.mrf.mxu2  ;;  %v2930_v2 = vadd.f32 %v2929_v30, %v8595_v25  ;;  %v1917_v3 = vunpack.c.l.b16 %v1697_v54  ;;  %v8991_v30 = vld [vmem:[#allocation3 + $0x10] sm:$0xf] }
 0x2f5   : > { %v3376_v26 = vsel %vm7627_vm8, %v3368_v58, %v3375_v9  ;;  %v3651_v61 = vsel %vm8760_vm1, %v3377_v63, %v3650_v38  ;;  %v3271_v27 = vpack.c.bf16 %v3239_v7, %v3239_v7  ;;  %v3105_v29 = vadd.f32 %v8838_v19, %v3016_v39  ;;  %v8984_v39 = vld [vmem:[#allocation3 + $0xc] sm:$0xf] }
 0x2f6   : > { %3649 = vst [vmem:[#allocation3 + $0x40] sm:$0xf] %v3376_v26  ;;  %v8974_v33 = vpop.f32.mrf.mxu0  ;;  %v1687_v19 = vsel %vm7596_vm4, %v1682_v12, %v8927_v52  ;;  %v3936_v58 = vrot.slane %v3935_v56, 4  ;;  %v3946_v38 = vrot.slane %v3945_v6, 4  ;;  %v3950_v7 = vrot.slane %v3948_v31, 5 }
 0x2f7   : > { %3652 = vst [vmem:[#allocation3 + $0x44] sm:$0x1] %v3651_v61  ;;  %v3379_v10 = vshrl.u32 %v3271_v27, 16  ;;  %v3172_v41 = vmul.f32 %v8720_v57, %v3105_v29  ;;  %3057 = vmatmul.bf16.gmra.mxu3 %v8567_v14  ;;  %v3382_v36 = vshll.u32 %v3271_v27, 16  ;;  %v1916_v52 = vunpack.c.l.b16 %v1687_v19  ;;  %v7098_v27 = vld [vmem:[%s10453_s4 + $0x120] sm:$0xff] }
 0x2f8   : > { %v2843_v26 = vadd.f32 %v8577_v55, %v8603_v34  ;;  %v3953_v29 = vshrl.u32 %v8984_v39, 16  ;;  %v3951_v55 = vsel %vm7596_vm4, %v3946_v38, %v3950_v7  ;;  %5547 = vmatpush.bf16.msrb.mxu1 %v7098_v27  ;;  %v3966_v31 = vshrl.u32 %v8991_v30, 16 }
 0x2f9   : > { %v3381_v60 = vrot.slane %v3379_v10, 7  ;;  %v3208_v49 = vadd.f32 %v8726_v17, %v3172_v41  ;;  %2973 = vmatmul.bf16.gmra.mxu2 %v7061_v47  ;;  %v3941_v10 = vsel %vm7596_vm4, %v3936_v58, %v8959_v13  ;;  %v1918_v34 = vpack.c.b16 %v1917_v3, %v1916_v52 }
 0x2fa   : > { %v3018_v14 = vpop.f32.mrf.mxu3  ;;  %v3956_v41 = vshll.u32 %v8984_v39, 16  ;;  %v3962_v47 = vshll.u32 %v8991_v30, 16  ;;  %v4604_v13 = vunpack.c.l.b16 %v3941_v10  ;;  %v4605_v58 = vunpack.c.l.b16 %v3951_v55 }
 0x2fb   : > { %v3384_v15 = vor.u32 %v3382_v36, %v3381_v60  ;;  %v3240_v9 = vmax.f32 %v3208_v49, 0.0  ;;  %v3019_v63 = vadd.f32 %v3018_v14, %v2930_v2  ;;  %v2932_v49 = vadd.f32 %v2931_v18, %v2843_v26 }
 0x2fc   : > { %v2934_v61 = vpop.f32.mrf.mxu2  ;;  %v3385_v2 = vrot.slane %v3381_v60, 4  ;;  %v4362_v38 = vrot.slane %v8925_v5, 5  ;;  %v9014_v52 = vrot.slane %v3962_v47, 5  ;;  %v3968_v3 = vrot.slane %v3966_v31, 4  ;;  %v9026_v31 = vld [vmem:[#allocation3 + $0x14] sm:$0x1] }
 0x2fd   : > { %v3654_v12 = vsel %vm8747_vm15, %v3384_v15, %v3653_v35  ;;  %v3272_v22 = vpack.c.bf16 %v3240_v9, %v3240_v9  ;;  %v3108_v44 = vadd.f32 %v8861_v37, %v3019_v63  ;;  %v8989_v25 = vld [vmem:[#allocation3 + $0x3c] sm:$0xff]  ;;  %v3657_v35 = vld [vmem:[#allocation3 + $0x50] sm:$0x1]  ;;  %v6588_v5 = vrot.slane %v8913_v8, 9 }
 0x2fe   : > { %3655 = vst [vmem:[#allocation3 + $0x48] sm:$0xf] %v3654_v12  ;;  %5221 = vmatmul.bf16.gmra.mxu1 %v8989_v25  ;;  %v9001_v37 = vpop.f32.mrf.mxu0  ;;  %v3955_v26 = vrot.slane %v3953_v29, 4  ;;  %v3958_v27 = vrot.slane %v3956_v41, 5  ;;  %v4636_v10 = vpack.c.b16 %v4605_v58, %v4604_v13  ;;  %v4365_v55 = vrot.slane %v8964_v46, 5 }
 0x2ff   : > { %v3387_v56 = vshrl.u32 %v3272_v22, 16  ;;  %v3173_v6 = vmul.f32 %v8720_v57, %v3108_v44  ;;  %v3390_v54 = vshll.u32 %v3272_v22, 16  ;;  %v4364_v44 = vrot.slane %v4362_v38, 4  ;;  %v3660_v41 = vld [vmem:[#allocation3 + $0x54] sm:$0xf] }
 0x300   : > { %v2935_v29 = vadd.f32 %v2934_v61, %v8608_v4  ;;  %v3972_v46 = vshll.u32 %v9026_v31, 16 }
 0x301   : > { %v3389_v19 = vrot.slane %v3387_v56, 7  ;;  %v3209_v36 = vadd.f32 %v8726_v17, %v3173_v6  ;;  %5463 = vmatmul.bf16.vlgmr.msrb.gmra.mxu0 %v8786_v45  ;;  %v4366_v13 = vsel %vm8129_vm13, %v4364_v44, %v4365_v55 }
 0x302   : > { %v3020_v14 = vpop.f32.mrf.mxu3 }
 0x303   : > { %v3392_v15 = vor.u32 %v3390_v54, %v3389_v19  ;;  %v3394_v9 = vrot.slane %v3389_v19, 4  ;;  %v3241_v63 = vmax.f32 %v3209_v36, 0.0  ;;  %v3021_v7 = vadd.f32 %v3020_v14, %v2932_v49 }
 0x304   : > { %v2936_v45 = vpop.f32.mrf.mxu2  ;;  %v3959_v49 = vor.u32 %v3958_v27, %v3955_v26  ;;  %v9050_v26 = vld [vmem:[#allocation3 + $0x18] sm:$0xf] }
 0x305   : > { %v3393_v12 = vsel %vm7627_vm8, %v3385_v2, %v3392_v15  ;;  %v3658_v18 = vsel %vm8760_vm1, %v3394_v9, %v3657_v35  ;;  %v3273_v60 = vpack.c.bf16 %v3241_v63, %v3241_v63  ;;  %v3110_v22 = vadd.f32 %v8892_v11, %v3021_v7 }
 0x306   : > { %3656 = vst [vmem:[#allocation3 + $0x4c] sm:$0xf] %v3393_v12  ;;  %v9024_v47 = vpop.f32.mrf.mxu0  ;;  %v3969_v11 = vor.u32 %v3968_v3, %v9014_v52  ;;  %v4669_v3 = vunpack.c.l.b16 %v4366_v13  ;;  %v3960_v12 = vrot.slane %v3959_v49, 4 }
 0x307   : > { %3659 = vst [vmem:[#allocation3 + $0x50] sm:$0x1] %v3658_v18  ;;  %v3396_v56 = vshrl.u32 %v3273_v60, 16  ;;  %v3174_v6 = vmul.f32 %v8720_v57, %v3110_v22  ;;  %3062 = vmatmul.bf16.gmra.mxu3 %v1918_v34  ;;  %v3399_v54 = vshll.u32 %v3273_v60, 16  ;;  %v4363_v34 = vsel %vm8129_vm13, %v6588_v5, %v4362_v38  ;;  %v9041_v38 = vld [vmem:[#allocation3 + $0x1c] sm:$0xf] }
 0x308   : > { %v3970_v58 = vrot.slane %v3969_v11, 4  ;;  %v4668_v7 = vunpack.c.l.b16 %v4363_v34  ;;  %v3974_v18 = vrot.slane %v3972_v46, 5  ;;  %v2848_v60 = vadd.f32 %v8601_v20, %v8617_v24 }
 0x309   : > { %v3398_v19 = vrot.slane %v3396_v56, 7  ;;  %v3210_v8 = vadd.f32 %v8726_v17, %v3174_v6  ;;  %5285 = vmatmul.bf16.vlgmr.msrb.gmra.mxu2 %v4636_v10  ;;  %v3965_v27 = vsel %vm7596_vm4, %v3960_v12, %v9014_v52  ;;  %v3986_v20 = vshll.u32 %v9041_v38, 16 }
 0x30a   : > { %v3023_v36 = vpop.f32.mrf.mxu3  ;;  %v3975_v56 = vsel %vm7596_vm4, %v3970_v58, %v3974_v18  ;;  %v3990_v24 = vshrl.u32 %v9041_v38, 16  ;;  %v2937_v11 = vadd.f32 %v2936_v45, %v2848_v60  ;;  %v3977_v52 = vshrl.u32 %v9050_v26, 16 }
 0x30b   : > { %v3401_v2 = vor.u32 %v3399_v54, %v3398_v19  ;;  %v3242_v35 = vmax.f32 %v3210_v8, 0.0  ;;  %v3024_v14 = vadd.f32 %v3023_v36, %v2935_v29  ;;  %v3402_v54 = vrot.slane %v3398_v19, 4 }
 0x30c   : > { %v2939_v63 = vpop.f32.mrf.mxu2  ;;  %v4700_v29 = vpack.c.b16 %v4669_v3, %v4668_v7  ;;  %v3992_v13 = vrot.slane %v3990_v24, 4  ;;  %v3979_v7 = vrot.slane %v3977_v52, 4 }
 0x30d   : > { %v3661_v15 = vsel %vm8747_vm15, %v3401_v2, %v3660_v41  ;;  %v3274_v4 = vpack.c.bf16 %v3242_v35, %v3242_v35  ;;  %v3113_v61 = vadd.f32 %v8943_v53, %v3024_v14  ;;  %v9039_v9 = vld [vmem:[#allocation3 + $0x48] sm:$0xff]  ;;  %v4369_v53 = vrot.slane %v8991_v30, 5  ;;  %v3664_v30 = vld [vmem:[#allocation3 + $0x5c] sm:$0x1] }
 0x30e   : > { %3662 = vst [vmem:[#allocation3 + $0x54] sm:$0xf] %v3661_v15  ;;  %5226 = vmatmul.bf16.gmra.mxu1 %v9039_v9  ;;  %v9047_v44 = vpop.f32.mrf.mxu0  ;;  %v3980_v41 = vshll.u32 %v9050_v26, 16  ;;  %v4607_v2 = vunpack.c.l.b16 %v3975_v56  ;;  %v9063_v14 = vrot.slane %v3986_v20, 5 }
 0x30f   : > { %v3404_v22 = vshrl.u32 %v3274_v4, 16  ;;  %v3175_v5 = vmul.f32 %v8720_v57, %v3113_v61  ;;  %v3407_v10 = vshll.u32 %v3274_v4, 16  ;;  %v4371_v35 = vrot.slane %v4369_v53, 4 }
 0x310   : > { %v4606_v4 = vunpack.c.l.b16 %v3965_v27  ;;  %v4372_v61 = vrot.slane %v9026_v31, 5  ;;  %v3982_v3 = vrot.slane %v3980_v41, 5  ;;  %v3993_v31 = vor.u32 %v3992_v13, %v9063_v14 }
 0x311   : > { %v3406_v6 = vrot.slane %v3404_v22, 7  ;;  %v3211_v55 = vadd.f32 %v8726_v17, %v3175_v5  ;;  %5468 = vmatmul.bf16.gmra.mxu0 %v8816_v32  ;;  %v9074_v22 = vld [vmem:[#allocation3 + $0x20] sm:$0x1]  ;;  %v4376_v13 = vrot.slane %v9041_v38, 5 }
 0x312   : > { %v3025_v8 = vpop.f32.mrf.mxu3  ;;  %v9076_v5 = vpack.c.b16 %v4607_v2, %v4606_v4  ;;  %v4373_v27 = vsel %vm8129_vm13, %v4371_v35, %v4372_v61  ;;  %v3994_v41 = vrot.slane %v3993_v31, 4  ;;  %v9107_v4 = vld [vmem:[#allocation3 + $0x24] sm:$0xf] }
 0x313   : > { %v3409_v36 = vor.u32 %v3407_v10, %v3406_v6  ;;  %v3411_v34 = vrot.slane %v3406_v6, 4  ;;  %v3243_v49 = vmax.f32 %v3211_v55, 0.0  ;;  %v3026_v46 = vadd.f32 %v3025_v8, %v2937_v11  ;;  %v3667_v10 = vld [vmem:[#allocation3 + $0x60] sm:$0xf] }
 0x314   : > { %v2941_v15 = vpop.f32.mrf.mxu2  ;;  %v2940_v6 = vadd.f32 %v2939_v63, %v8622_v50  ;;  %v4671_v52 = vunpack.c.l.b16 %v4373_v27  ;;  %v3671_v27 = vld [vmem:[#allocation3 + $0x68] sm:$0x1] }
 0x315   : > { %v3410_v45 = vsel %vm7627_vm8, %v3402_v54, %v3409_v36  ;;  %v3665_v19 = vsel %vm8760_vm1, %v3411_v34, %v3664_v30  ;;  %v3275_v32 = vpack.c.bf16 %v3243_v49, %v3243_v49  ;;  %v3115_v58 = vadd.f32 %v8974_v33, %v3026_v46  ;;  %v7097_v46 = vld [vmem:[%s10453_s4 + $0x118] sm:$0xff] }
 0x316   : > { %3663 = vst [vmem:[#allocation3 + $0x58] sm:$0xf] %v3410_v45  ;;  %v9072_v60 = vpop.f32.mrf.mxu0  ;;  %v6589_v33 = vrot.slane %v8984_v39, 9  ;;  %v3983_v54 = vor.u32 %v3982_v3, %v3979_v7  ;;  %v3996_v30 = vshll.u32 %v9074_v22, 16  ;;  %v2853_v45 = vadd.f32 %v8615_v48, %v8628_v59  ;;  %5548 = vmatpush.bf16.msrb.mxu1 %v7097_v46  ;;  %v9119_v3 = vld [vmem:[%s10452_s3] ss:$0 sm:$0xff] }
 0x317   : > { %3666 = vst [vmem:[#allocation3 + $0x5c] sm:$0x1] %v3665_v19  ;;  %v3413_v12 = vshrl.u32 %v3275_v32, 16  ;;  %v3176_v18 = vmul.f32 %v8720_v57, %v3115_v58  ;;  %5374 = vmatmul.bf16.vlgmr.msrb.gmra.mxu3 %v4700_v29  ;;  %v3416_v20 = vshll.u32 %v3275_v32, 16 }
 0x318   : > { %v4370_v11 = vsel %vm8129_vm13, %v6589_v33, %v4369_v53  ;;  %v9093_v53 = vld [vmem:[#allocation3 + $0x28] sm:$0xf]  ;;  %v3984_v2 = vrot.slane %v3983_v54, 4  ;;  %v3998_v35 = vrot.slane %v3996_v30, 5  ;;  %v9122_v33 = vpop.f32.mrf.mxu1 }
 0x319   : > { %v3415_v56 = vrot.slane %v3413_v12, 7  ;;  %v3212_v24 = vadd.f32 %v8726_v17, %v3176_v18  ;;  %5290 = vmatmul.bf16.gmra.mxu2 %v9076_v5  ;;  %v4670_v34 = vunpack.c.l.b16 %v4370_v11  ;;  %v4010_v48 = vshll.u32 %v9093_v53, 16 }
 0x31a   : > { %v3028_v55 = vpop.f32.mrf.mxu3  ;;  %v3989_v61 = vsel %vm7596_vm4, %v3984_v2, %v9063_v14  ;;  %v3999_v38 = vsel %vm7596_vm4, %v3994_v41, %v3998_v35  ;;  %v4014_v59 = vshrl.u32 %v9093_v53, 16  ;;  %v2942_v18 = vadd.f32 %v2941_v15, %v2853_v45 }
 0x31b   : > { %v3418_v39 = vor.u32 %v3416_v20, %v3415_v56  ;;  %v3244_v8 = vmax.f32 %v3212_v24, 0.0  ;;  %v3029_v29 = vadd.f32 %v3028_v55, %v2940_v6  ;;  %v9103_v32 = vpack.c.b16 %v4671_v52, %v4670_v34 }
 0x31c   : > { %v2944_v49 = vpop.f32.mrf.mxu2  ;;  %v3419_v14 = vrot.slane %v3415_v56, 4  ;;  %v4378_v20 = vrot.slane %v4376_v13, 4  ;;  %v4001_v24 = vshrl.u32 %v9107_v4, 16  ;;  %v4004_v6 = vshll.u32 %v9107_v4, 16 }
 0x31d   : > { %v3668_v17 = vsel %vm8747_vm15, %v3418_v39, %v3667_v10  ;;  %v3276_v36 = vpack.c.bf16 %v3244_v8, %v3244_v8  ;;  %v3118_v50 = vadd.f32 %v9001_v37, %v3029_v29  ;;  %v9091_v63 = vld [vmem:[#allocation3 + $0x54] sm:$0xff]  ;;  %10625 = vst [vmem:[#allocation32_spill] sm:$0xff] %v9103_v32  ;;  %v4609_v30 = vunpack.c.l.b16 %v3999_v38 }
 0x31e   : > { %3669 = vst [vmem:[#allocation3 + $0x60] sm:$0xf] %v3668_v17  ;;  %5231 = vmatmul.bf16.gmra.mxu1 %v9091_v63  ;;  %v9105_v58 = vpop.f32.mrf.mxu0  ;;  %v4379_v39 = vrot.slane %v9074_v22, 5  ;;  %v9128_v15 = vrot.slane %v4010_v48, 5  ;;  %v4016_v8 = vrot.slane %v4014_v59, 4  ;;  %v4608_v17 = vunpack.c.l.b16 %v3989_v61 }
 0x31f   : > { %v3421_v19 = vshrl.u32 %v3276_v36, 16  ;;  %v3177_v37 = vmul.f32 %v8720_v57, %v3118_v50  ;;  %v3424_v7 = vshll.u32 %v3276_v36, 16  ;;  %v4003_v36 = vrot.slane %v4001_v24, 4  ;;  %v9138_v22 = vld [vmem:[%s10451_s2] ss:$0 sm:$0xff] }
 0x320   : > { %v4380_v46 = vsel %vm8129_vm13, %v4378_v20, %v4379_v39  ;;  %v4006_v35 = vrot.slane %v4004_v6, 5  ;;  %v9148_v45 = vpack.c.b16 %v4609_v30, %v4608_v17  ;;  %v2945_v59 = vadd.f32 %v2944_v49, %v8632_v0 }
 0x321   : > { %v3423_v57 = vrot.slane %v3421_v19, 7  ;;  %v3213_v12 = vadd.f32 %v9119_v3, %v3177_v37  ;;  %5473 = vmatmul.bf16.gmra.mxu0 %v8851_v28  ;;  %v6590_v19 = vrot.slane %v9050_v26, 9  ;;  %v4017_v37 = vor.u32 %v4016_v8, %v9128_v15 }
 0x322   : > { %v3030_v31 = vpop.f32.mrf.mxu3  ;;  %v4007_v24 = vor.u32 %v4006_v35, %v4003_v36 }
 0x323   : > { %v3426_v10 = vor.u32 %v3424_v7, %v3423_v57  ;;  %v3428_v55 = vrot.slane %v3423_v57, 4  ;;  %v3245_v11 = vmax.f32 %v3213_v12, 0.0  ;;  %v3031_v54 = vadd.f32 %v3030_v31, %v2942_v18  ;;  %v3674_v57 = vld [vmem:[#allocation3 + $0x6c] sm:$0xf]  ;;  %v9154_v7 = vpop.f32.mrf.mxu1 }
 0x324   : > { %v2946_v41 = vpop.f32.mrf.mxu2  ;;  %v4377_v18 = vsel %vm8129_vm13, %v6590_v19, %v4376_v13  ;;  %v4018_v6 = vrot.slane %v4017_v37, 4  ;;  %v9165_v13 = vld [vmem:[#allocation3 + $0x34] sm:$0xf] }
 0x325   : > { %v3427_v56 = vsel %vm7627_vm8, %v3419_v14, %v3426_v10  ;;  %v3672_v28 = vsel %vm8760_vm1, %v3428_v55, %v3671_v27  ;;  %v3277_v29 = vpack.c.bf16 %v3245_v11, %v3245_v11  ;;  %v3120_v52 = vadd.f32 %v9024_v47, %v3031_v54  ;;  %v9146_v47 = vld [vmem:[#allocation3 + $0x2c] sm:$0x1]  ;;  %v3678_v37 = vld [vmem:[#allocation3 + $0x74] sm:$0x1] }
 0x326   : > { %3670 = vst [vmem:[#allocation3 + $0x64] sm:$0xf] %v3427_v56  ;;  %v9144_v2 = vpop.f32.mrf.mxu0  ;;  %v4673_v14 = vunpack.c.l.b16 %v4380_v46  ;;  %v4020_v27 = vshll.u32 %v9146_v47, 16  ;;  %v4672_v11 = vunpack.c.l.b16 %v4377_v18  ;;  %v2858_v54 = vadd.f32 %v8626_v43, %v8641_v62 }
 0x327   : > { %3673 = vst [vmem:[#allocation3 + $0x68] sm:$0x1] %v3672_v28  ;;  %v3430_v50 = vshrl.u32 %v3277_v29, 16  ;;  %v3178_v34 = vmul.f32 %v9138_v22, %v3120_v52  ;;  %5379 = vmatmul.bf16.gmra.mxu3 %v9103_v32  ;;  %v3433_v38 = vshll.u32 %v3277_v29, 16  ;;  %v9175_v52 = vld [vmem:[#allocation3 + $0x30] sm:$0xf] }
 0x328   : > { %v4022_v39 = vrot.slane %v4020_v27, 5  ;;  %v9171_v28 = vpack.c.b16 %v4673_v14, %v4672_v11  ;;  %v4383_v43 = vrot.slane %v9093_v53, 5  ;;  %v4034_v62 = vshll.u32 %v9165_v13, 16 }
 0x329   : > { %v3432_v61 = vrot.slane %v3430_v50, 7  ;;  %v3214_v48 = vadd.f32 %v9119_v3, %v3178_v34  ;;  %5295 = vmatmul.bf16.gmra.mxu2 %v9148_v45  ;;  %v4038_v36 = vshrl.u32 %v9165_v13, 16  ;;  %v2947_v35 = vadd.f32 %v2946_v41, %v2858_v54 }
 0x32a   : > { %v3033_v12 = vpop.f32.mrf.mxu3  ;;  %10626 = vst [vmem:[#allocation30_spill] sm:$0xff] %v9171_v28  ;;  %v4023_v17 = vsel %vm7596_vm4, %v4018_v6, %v4022_v39  ;;  %v4025_v53 = vshrl.u32 %v9175_v52, 16 }
 0x32b   : > { %v3435_v31 = vor.u32 %v3433_v38, %v3432_v61  ;;  %v3246_v26 = vmax.f32 %v3214_v48, 0.0  ;;  %v3034_v20 = vadd.f32 %v3033_v12, %v2945_v59  ;;  %v3436_v19 = vrot.slane %v3432_v61, 4  ;;  %v9189_v27 = vpop.f32.mrf.mxu1 }
 0x32c   : > { %v2949_v30 = vpop.f32.mrf.mxu2  ;;  %v4028_v59 = vshll.u32 %v9175_v52, 16  ;;  %v4611_v41 = vunpack.c.l.b16 %v4023_v17  ;;  %v4385_v61 = vrot.slane %v4383_v43, 4 }
 0x32d   : > { %v3675_v0 = vsel %vm8747_vm15, %v3435_v31, %v3674_v57  ;;  %v3278_v49 = vpack.c.bf16 %v3246_v26, %v3246_v26  ;;  %v3123_v10 = vadd.f32 %v9047_v44, %v3034_v20  ;;  %v9163_v55 = vld [vmem:[#allocation3 + $0x60] sm:$0xff]  ;;  %v4008_v44 = vrot.slane %v4007_v24, 4 }
 0x32e   : > { %3676 = vst [vmem:[#allocation3 + $0x6c] sm:$0xf] %v3675_v0  ;;  %5236 = vmatmul.bf16.gmra.mxu1 %v9163_v55  ;;  %v9173_v29 = vpop.f32.mrf.mxu0  ;;  %v9191_v31 = vrot.slane %v4034_v62, 5  ;;  %v4040_v26 = vrot.slane %v4038_v36, 4  ;;  %v4030_v11 = vrot.slane %v4028_v59, 5 }
 0x32f   : > { %v3438_v8 = vshrl.u32 %v3278_v49, 16  ;;  %v3179_v56 = vmul.f32 %v9138_v22, %v3123_v10  ;;  %v3441_v34 = vshll.u32 %v3278_v49, 16  ;;  %v4013_v48 = vsel %vm7596_vm4, %v4008_v44, %v9128_v15 }
 0x330   : > { %v4610_v0 = vunpack.c.l.b16 %v4013_v48  ;;  %v4386_v49 = vrot.slane %v9146_v47, 5  ;;  %v4027_v10 = vrot.slane %v4025_v53, 4  ;;  %v4041_v47 = vor.u32 %v4040_v26, %v9191_v31  ;;  %v7096_v26 = vld [vmem:[%s10453_s4 + $0x110] sm:$0xff] }
 0x331   : > { %v3440_v50 = vrot.slane %v3438_v8, 7  ;;  %v3215_v46 = vadd.f32 %v9119_v3, %v3179_v56  ;;  %5478 = vmatmul.bf16.gmra.mxu0 %v8935_v16  ;;  %v9203_v56 = vld [vmem:[#allocation3 + $0x38] sm:$0x1]  ;;  %5549 = vmatpush.bf16.msrb.mxu1 %v7096_v26 }
 0x332   : > { %v3035_v38 = vpop.f32.mrf.mxu3  ;;  %v9205_v44 = vpack.c.b16 %v4611_v41, %v4610_v0  ;;  %v4387_v17 = vsel %vm8129_vm13, %v4385_v61, %v4386_v49  ;;  %v9224_v41 = vld [vmem:[#allocation3 + $0x40] sm:$0xf]  ;;  %v10628_v0 = vld [vmem:[#allocation21_spill] sm:$0xff] }
 0x333   : > { %v3443_v57 = vor.u32 %v3441_v34, %v3440_v50  ;;  %v3445_v12 = vrot.slane %v3440_v50, 4  ;;  %v3247_v18 = vmax.f32 %v3215_v46, 0.0  ;;  %v3036_v14 = vadd.f32 %v3035_v38, %v2947_v35  ;;  %v3681_v46 = vld [vmem:[#allocation3 + $0x78] sm:$0xf] }
 0x334   : > { %v2951_v6 = vpop.f32.mrf.mxu2  ;;  %v2950_v34 = vadd.f32 %v2949_v30, %v8645_v23  ;;  %v4044_v38 = vshll.u32 %v9203_v56, 16  ;;  %v4675_v59 = vunpack.c.l.b16 %v4387_v17  ;;  %v4058_v17 = vshll.u32 %v9224_v41, 16 }
 0x335   : > { %v3444_v15 = vsel %vm7627_vm8, %v3436_v19, %v3443_v57  ;;  %v3679_v16 = vsel %vm8760_vm1, %v3445_v12, %v3678_v37  ;;  %v3279_v20 = vpack.c.bf16 %v3247_v18, %v3247_v18  ;;  %v3125_v24 = vadd.f32 %v9072_v60, %v3036_v14 }
 0x336   : > { %3677 = vst [vmem:[#allocation3 + $0x70] sm:$0xf] %v3444_v15  ;;  %v9201_v8 = vpop.f32.mrf.mxu0  ;;  %v6591_v60 = vrot.slane %v9107_v4, 9  ;;  %v4031_v37 = vor.u32 %v4030_v11, %v4027_v10  ;;  %v4042_v12 = vrot.slane %v4041_v47, 4  ;;  %v4062_v47 = vshrl.u32 %v9224_v41, 16 }
 0x337   : > { %3680 = vst [vmem:[#allocation3 + $0x74] sm:$0x1] %v3679_v16  ;;  %v3447_v54 = vshrl.u32 %v3279_v20, 16  ;;  %v3180_v39 = vmul.f32 %v9138_v22, %v3125_v24  ;;  %5384 = vmatmul.bf16.gmra.mxu3 %v9171_v28  ;;  %v3450_v36 = vshll.u32 %v3279_v20, 16  ;;  %v4046_v16 = vrot.slane %v4044_v38, 5  ;;  %v10627_v24 = vld [vmem:[#allocation19_spill] sm:$0xff] }
 0x338   : > { %v4384_v19 = vsel %vm8129_vm13, %v6591_v60, %v4383_v43  ;;  %v4032_v15 = vrot.slane %v4031_v37, 4  ;;  %v4390_v20 = vrot.slane %v9165_v13, 5  ;;  %v2863_v49 = vadd.f32 %v10628_v0, %v10627_v24 }
 0x339   : > { %v3449_v62 = vrot.slane %v3447_v54, 7  ;;  %v3216_v50 = vadd.f32 %v9119_v3, %v3180_v39  ;;  %5300 = vmatmul.bf16.gmra.mxu2 %v9205_v44  ;;  %v4674_v43 = vunpack.c.l.b16 %v4384_v19  ;;  %v9238_v39 = vld [vmem:[#allocation3 + $0x3c] sm:$0xf]  ;;  %v4047_v13 = vsel %vm7596_vm4, %v4042_v12, %v4046_v16  ;;  %v3685_v19 = vld [vmem:[#allocation3 + $0x80] sm:$0x1] }
 0x33a   : > { %v3038_v35 = vpop.f32.mrf.mxu3  ;;  %v4037_v60 = vsel %vm7596_vm4, %v4032_v15, %v9191_v31  ;;  %v4392_v38 = vrot.slane %v4390_v20, 4  ;;  %v4049_v31 = vshrl.u32 %v9238_v39, 16 }
 0x33b   : > { %v3452_v4 = vor.u32 %v3450_v36, %v3449_v62  ;;  %v3248_v48 = vmax.f32 %v3216_v50, 0.0  ;;  %v3039_v53 = vadd.f32 %v3038_v35, %v2950_v34  ;;  %v9217_v57 = vpop.f32.mrf.mxu1  ;;  %v9234_v11 = vpack.c.b16 %v4675_v59, %v4674_v43 }
 0x33c   : > { %v2954_v61 = vpop.f32.mrf.mxu2  ;;  %v3453_v35 = vrot.slane %v3449_v62, 4  ;;  %v4064_v62 = vrot.slane %v4062_v47, 4  ;;  %v4612_v24 = vunpack.c.l.b16 %v4037_v60 }
 0x33d   : > { %v3682_v23 = vsel %vm8747_vm15, %v3452_v4, %v3681_v46  ;;  %v3280_v30 = vpack.c.bf16 %v3248_v48, %v3248_v48  ;;  %v3128_v18 = vadd.f32 %v9105_v58, %v3039_v53  ;;  %v9222_v14 = vld [vmem:[#allocation3 + $0x6c] sm:$0xff]  ;;  %10629 = vst [vmem:[#allocation33_spill] sm:$0xff] %v9234_v11  ;;  %v2952_v46 = vadd.f32 %v2951_v6, %v2863_v49  ;;  %v9263_v49 = vld [vmem:[#allocation3 + $0x44] sm:$0x1] }
 0x33e   : > { %3683 = vst [vmem:[#allocation3 + $0x78] sm:$0xf] %v3682_v23  ;;  %5241 = vmatmul.bf16.gmra.mxu1 %v9222_v14  ;;  %v9236_v54 = vpop.f32.mrf.mxu0  ;;  %v4052_v4 = vshll.u32 %v9238_v39, 16  ;;  %v9254_v6 = vrot.slane %v4058_v17, 5 }
 0x33f   : > { %v3455_v10 = vshrl.u32 %v3280_v30, 16  ;;  %v3181_v58 = vmul.f32 %v9138_v22, %v3128_v18  ;;  %v3458_v50 = vshll.u32 %v3280_v30, 16  ;;  %v4613_v30 = vunpack.c.l.b16 %v4047_v13 }
 0x340   : > { %v4393_v18 = vrot.slane %v9203_v56, 5  ;;  %v4051_v13 = vrot.slane %v4049_v31, 4  ;;  %v4054_v17 = vrot.slane %v4052_v4, 5  ;;  %v4065_v60 = vor.u32 %v4064_v62, %v9254_v6 }
 0x341   : > { %v3457_v36 = vrot.slane %v3455_v10, 7  ;;  %v3217_v34 = vadd.f32 %v9119_v3, %v3181_v58  ;;  %5483 = vmatmul.bf16.gmra.mxu0 %v8989_v25  ;;  %v9269_v47 = vpack.c.b16 %v4613_v30, %v4612_v24  ;;  %v4068_v31 = vshll.u32 %v9263_v49, 16  ;;  %v10632_v24 = vld [vmem:[#allocation10_spill] sm:$0xff] }
 0x342   : > { %v3040_v37 = vpop.f32.mrf.mxu3  ;;  %v4394_v0 = vsel %vm8129_vm13, %v4392_v38, %v4393_v18  ;;  %v4066_v30 = vrot.slane %v4065_v60, 4 }
 0x343   : > { %v3460_v48 = vor.u32 %v3458_v50, %v3457_v36  ;;  %v3462_v53 = vrot.slane %v3457_v36, 4  ;;  %v3249_v59 = vmax.f32 %v3217_v34, 0.0  ;;  %v3041_v12 = vadd.f32 %v3040_v37, %v2952_v46  ;;  %v9251_v23 = vpop.f32.mrf.mxu1  ;;  %v10630_v46 = vld [vmem:[#allocation20_spill] sm:$0xff] }
 0x344   : > { %v2956_v16 = vpop.f32.mrf.mxu2 }
 0x345   : > { %v3461_v25 = vsel %vm7627_vm8, %v3453_v35, %v3460_v48  ;;  %v3686_v43 = vsel %vm8760_vm1, %v3462_v53, %v3685_v19  ;;  %v3281_v26 = vpack.c.bf16 %v3249_v59, %v3249_v59  ;;  %v3130_v15 = vadd.f32 %v9144_v2, %v3041_v12  ;;  %v3688_v19 = vld [vmem:[#allocation3 + $0x84] sm:$0xf] }
 0x346   : > { %3684 = vst [vmem:[#allocation3 + $0x7c] sm:$0xf] %v3461_v25  ;;  %v9267_v58 = vpop.f32.mrf.mxu0  ;;  %v6592_v2 = vrot.slane %v9175_v52, 9  ;;  %v2955_v35 = vadd.f32 %v2954_v61, %v10630_v46  ;;  %v4677_v48 = vunpack.c.l.b16 %v4394_v0  ;;  %v4055_v52 = vor.u32 %v4054_v17, %v4051_v13 }
 0x347   : > { %3687 = vst [vmem:[#allocation3 + $0x80] sm:$0x1] %v3686_v43  ;;  %v3464_v56 = vshrl.u32 %v3281_v26, 16  ;;  %v3182_v10 = vmul.f32 %v9138_v22, %v3130_v15  ;;  %5389 = vmatmul.bf16.gmra.mxu3 %v9234_v11  ;;  %v3467_v50 = vshll.u32 %v3281_v26, 16  ;;  %v9286_v43 = vld [vmem:[#allocation3 + $0x48] sm:$0xf] }
 0x348   : > { %v4391_v38 = vsel %vm8129_vm13, %v6592_v2, %v4390_v20  ;;  %v9288_v26 = vld [vmem:[#allocation3 + $0x4c] sm:$0xf]  ;;  %v10631_v15 = vld [vmem:[#allocation22_spill] sm:$0xff]  ;;  %v4397_v13 = vrot.slane %v9224_v41, 5  ;;  %v4073_v46 = vshrl.u32 %v9286_v43, 16 }
 0x349   : > { %v3466_v36 = vrot.slane %v3464_v56, 7  ;;  %v3218_v34 = vadd.f32 %v9119_v3, %v3182_v10  ;;  %5305 = vmatmul.bf16.gmra.mxu2 %v9269_v47  ;;  %v4676_v20 = vunpack.c.l.b16 %v4391_v38  ;;  %v2868_v0 = vadd.f32 %v10632_v24, %v10631_v15 }
 0x34a   : > { %v3043_v37 = vpop.f32.mrf.mxu3  ;;  %v4070_v10 = vrot.slane %v4068_v31, 5 }
 0x34b   : > { %v3469_v4 = vor.u32 %v3467_v50, %v3466_v36  ;;  %v3250_v53 = vmax.f32 %v3218_v34, 0.0  ;;  %v3044_v59 = vadd.f32 %v3043_v37, %v2955_v35  ;;  %v9279_v12 = vpop.f32.mrf.mxu1  ;;  %v4056_v50 = vrot.slane %v4055_v52, 4 }
 0x34c   : > { %v2959_v56 = vpop.f32.mrf.mxu2  ;;  %v4071_v34 = vsel %vm7596_vm4, %v4066_v30, %v4070_v10  ;;  %v4082_v35 = vshll.u32 %v9288_v26, 16  ;;  %v2957_v31 = vadd.f32 %v2956_v16, %v2868_v0  ;;  %v4399_v52 = vrot.slane %v4397_v13, 4 }
 0x34d   : > { %v3689_v61 = vsel %vm8747_vm15, %v3469_v4, %v3688_v19  ;;  %v3282_v18 = vpack.c.bf16 %v3250_v53, %v3250_v53  ;;  %v3133_v62 = vadd.f32 %v9173_v29, %v3044_v59  ;;  %v9284_v25 = vld [vmem:[#allocation3 + $0x78] sm:$0xff]  ;;  %v9295_v29 = vpack.c.b16 %v4677_v48, %v4676_v20  ;;  %v3692_v48 = vld [vmem:[#allocation3 + $0x8c] sm:$0x1] }
 0x34e   : > { %3690 = vst [vmem:[#allocation3 + $0x84] sm:$0xf] %v3689_v61  ;;  %5246 = vmatmul.bf16.gmra.mxu1 %v9284_v25  ;;  %v9297_v60 = vpop.f32.mrf.mxu0  ;;  %v4086_v19 = vshrl.u32 %v9288_v26, 16  ;;  %v3470_v4 = vrot.slane %v3466_v36, 4  ;;  %v4061_v59 = vsel %vm7596_vm4, %v4056_v50, %v9254_v6  ;;  %v4076_v30 = vshll.u32 %v9286_v43, 16 }
 0x34f   : > { %v3472_v17 = vshrl.u32 %v3282_v18, 16  ;;  %v3183_v2 = vmul.f32 %v9138_v22, %v3133_v62  ;;  %10633 = vst [vmem:[#allocation7_spill] sm:$0xff] %v9295_v29  ;;  %v3475_v37 = vshll.u32 %v3282_v18, 16  ;;  %v4615_v24 = vunpack.c.l.b16 %v4071_v34 }
 0x350   : > { %v4400_v16 = vrot.slane %v9263_v49, 5  ;;  %v9313_v36 = vrot.slane %v4082_v35, 5  ;;  %v4088_v0 = vrot.slane %v4086_v19, 4  ;;  %v4614_v50 = vunpack.c.l.b16 %v4061_v59 }
 0x351   : > { %v3474_v41 = vrot.slane %v3472_v17, 7  ;;  %v3219_v38 = vadd.f32 %v9119_v3, %v3183_v2  ;;  %5488 = vmatmul.bf16.gmra.mxu0 %v9039_v9 }
 0x352   : > { %v3045_v53 = vpop.f32.mrf.mxu3  ;;  %v4401_v34 = vsel %vm8129_vm13, %v4399_v52, %v4400_v16  ;;  %v10634_v52 = vld [vmem:[#allocation13_spill] sm:$0xff] }
 0x353   : > { %v3477_v61 = vor.u32 %v3475_v37, %v3474_v41  ;;  %v3479_v62 = vrot.slane %v3474_v41, 4  ;;  %v3251_v20 = vmax.f32 %v3219_v38, 0.0  ;;  %v3046_v15 = vadd.f32 %v3045_v53, %v2957_v31  ;;  %v9310_v18 = vpop.f32.mrf.mxu1  ;;  %v9322_v41 = vld [vmem:[#allocation3 + $0x50] sm:$0x1] }
 0x354   : > { %v2961_v2 = vpop.f32.mrf.mxu2  ;;  %v4075_v37 = vrot.slane %v4073_v46, 4  ;;  %v4078_v38 = vrot.slane %v4076_v30, 5  ;;  %v9328_v31 = vpack.c.b16 %v4615_v24, %v4614_v50  ;;  %v4679_v16 = vunpack.c.l.b16 %v4401_v34 }
 0x355   : > { %v3478_v6 = vsel %vm7627_vm8, %v3470_v4, %v3477_v61  ;;  %v3693_v9 = vsel %vm8760_vm1, %v3479_v62, %v3692_v48  ;;  %v3283_v10 = vpack.c.bf16 %v3251_v20, %v3251_v20  ;;  %v3135_v17 = vadd.f32 %v9201_v8, %v3046_v15  ;;  %v3695_v62 = vld [vmem:[#allocation3 + $0x90] sm:$0xf] }
 0x356   : > { %3691 = vst [vmem:[#allocation3 + $0x88] sm:$0xf] %v3478_v6  ;;  %v9326_v19 = vpop.f32.mrf.mxu0  ;;  %v6593_v8 = vrot.slane %v9238_v39, 9  ;;  %v4089_v4 = vor.u32 %v4088_v0, %v9313_v36  ;;  %v2960_v61 = vadd.f32 %v2959_v56, %v10634_v52  ;;  %v4092_v46 = vshll.u32 %v9322_v41, 16 }
 0x357   : > { %3694 = vst [vmem:[#allocation3 + $0x8c] sm:$0x1] %v3693_v9  ;;  %v3481_v49 = vshrl.u32 %v3283_v10, 16  ;;  %v3184_v35 = vmul.f32 %v9138_v22, %v3135_v17  ;;  %5394 = vmatmul.bf16.gmra.mxu3 %v9295_v29  ;;  %v3484_v53 = vshll.u32 %v3283_v10, 16  ;;  %v4079_v39 = vor.u32 %v4078_v38, %v4075_v37  ;;  %v7095_v38 = vld [vmem:[%s10453_s4 + $0x108] sm:$0xff] }
 0x358   : > { %v4398_v15 = vsel %vm8129_vm13, %v6593_v8, %v4397_v13  ;;  %v4090_v9 = vrot.slane %v4089_v4, 4  ;;  %v10475_v10 = vrot.slane %v9288_v26, 5  ;;  %v10636_v8 = vld [vmem:[#allocation11_spill] sm:$0xff]  ;;  %v4094_v4 = vrot.slane %v4092_v46, 5  ;;  %5550 = vmatpush.bf16.msrb.mxu1 %v7095_v38 }
 0x359   : > { %v3483_v48 = vrot.slane %v3481_v49, 7  ;;  %v3220_v59 = vadd.f32 %v9119_v3, %v3184_v35  ;;  %5310 = vmatmul.bf16.gmra.mxu2 %v9328_v31  ;;  %v4678_v34 = vunpack.c.l.b16 %v4398_v15  ;;  %v9346_v49 = vld [vmem:[#allocation3 + $0x58] sm:$0xf] }
 0x35a   : > { %v3048_v20 = vpop.f32.mrf.mxu3  ;;  %v10635_v35 = vld [vmem:[#allocation23_spill] sm:$0xff]  ;;  %v4095_v15 = vsel %vm7596_vm4, %v4090_v9, %v4094_v4  ;;  %v4106_v46 = vshll.u32 %v9346_v49, 16 }
 0x35b   : > { %v3486_v30 = vor.u32 %v3484_v53, %v3483_v48  ;;  %v3252_v24 = vmax.f32 %v3220_v59, 0.0  ;;  %v3049_v6 = vadd.f32 %v3048_v20, %v2960_v61  ;;  %v9338_v0 = vpop.f32.mrf.mxu1  ;;  %v2873_v53 = vadd.f32 %v10636_v8, %v10635_v35  ;;  %v9359_v20 = vld [vmem:[#allocation3 + $0x54] sm:$0xf] }
 0x35c   : > { %v2964_v37 = vpop.f32.mrf.mxu2  ;;  %v4097_v9 = vshrl.u32 %v9359_v20, 16  ;;  %v4100_v38 = vshll.u32 %v9359_v20, 16 }
 0x35d   : > { %v3696_v56 = vsel %vm8747_vm15, %v3486_v30, %v3695_v62  ;;  %v3284_v17 = vpack.c.bf16 %v3252_v24, %v3252_v24  ;;  %v3138_v13 = vadd.f32 %v9236_v54, %v3049_v6  ;;  %v9344_v50 = vld [vmem:[#allocation3 + $0x84] sm:$0xff]  ;;  %v9355_v54 = vpack.c.b16 %v4679_v16, %v4678_v34 }
 0x35e   : > { %3697 = vst [vmem:[#allocation3 + $0x90] sm:$0xf] %v3696_v56  ;;  %5251 = vmatmul.bf16.gmra.mxu1 %v9344_v50  ;;  %v9357_v61 = vpop.f32.mrf.mxu0  ;;  %v4080_v62 = vrot.slane %v4079_v39, 4  ;;  %v4406_v30 = vrot.slane %v10475_v10, 4  ;;  %v4110_v24 = vshrl.u32 %v9346_v49, 16  ;;  %v3487_v34 = vrot.slane %v3483_v48, 4 }
 0x35f   : > { %v3489_v59 = vshrl.u32 %v3284_v17, 16  ;;  %v3185_v52 = vmul.f32 %v9138_v22, %v3138_v13  ;;  %10637 = vst [vmem:[#allocation31_spill] sm:$0xff] %v9355_v54  ;;  %v3492_v56 = vshll.u32 %v3284_v17, 16  ;;  %v2962_v13 = vadd.f32 %v2961_v2, %v2873_v53  ;;  %v3699_v39 = vld [vmem:[#allocation3 + $0x98] sm:$0x1] }
 0x360   : > { %v4085_v8 = vsel %vm7596_vm4, %v4080_v62, %v9313_v36  ;;  %v4617_v2 = vunpack.c.l.b16 %v4095_v15  ;;  %v4407_v48 = vrot.slane %v9322_v41, 5  ;;  %v9377_v53 = vrot.slane %v4106_v46, 5 }
 0x361   : > { %v3491_v6 = vrot.slane %v3489_v59, 7  ;;  %v3221_v16 = vadd.f32 %v9119_v3, %v3185_v52  ;;  %5493 = vmatmul.bf16.gmra.mxu0 %v9091_v63  ;;  %v4112_v52 = vrot.slane %v4110_v24, 4 }
 0x362   : > { %v3050_v35 = vpop.f32.mrf.mxu3  ;;  %v4408_v15 = vsel %vm8129_vm13, %v4406_v30, %v4407_v48  ;;  %v3702_v48 = vld [vmem:[#allocation3 + $0x9c] sm:$0xf] }
 0x363   : > { %v3494_v4 = vor.u32 %v3492_v56, %v3491_v6  ;;  %v3496_v10 = vrot.slane %v3491_v6, 4  ;;  %v3253_v59 = vmax.f32 %v3221_v16, 0.0  ;;  %v3051_v17 = vadd.f32 %v3050_v35, %v2962_v13  ;;  %v9374_v29 = vpop.f32.mrf.mxu1  ;;  %v9386_v13 = vld [vmem:[#allocation3 + $0x5c] sm:$0x1] }
 0x364   : > { %v2966_v6 = vpop.f32.mrf.mxu2  ;;  %v4616_v16 = vunpack.c.l.b16 %v4085_v8  ;;  %v4113_v35 = vor.u32 %v4112_v52, %v9377_v53 }
 0x365   : > { %v3495_v36 = vsel %vm7627_vm8, %v3487_v34, %v3494_v4  ;;  %v3700_v63 = vsel %vm8760_vm1, %v3496_v10, %v3699_v39  ;;  %v3285_v62 = vpack.c.bf16 %v3253_v59, %v3253_v59  ;;  %v3140_v56 = vadd.f32 %v9267_v58, %v3051_v17  ;;  %v10639_v59 = vld [vmem:[#allocation26_spill] sm:$0xff] }
 0x366   : > { %3698 = vst [vmem:[#allocation3 + $0x94] sm:$0xf] %v3495_v36  ;;  %v9390_v24 = vpop.f32.mrf.mxu0  ;;  %v4099_v10 = vrot.slane %v4097_v9, 4  ;;  %v4102_v34 = vrot.slane %v4100_v38, 5  ;;  %v9392_v39 = vpack.c.b16 %v4617_v2, %v4616_v16  ;;  %v6594_v58 = vrot.slane %v9286_v43, 9 }
 0x367   : > { %3701 = vst [vmem:[#allocation3 + $0x98] sm:$0x1] %v3700_v63  ;;  %v3498_v41 = vshrl.u32 %v3285_v62, 16  ;;  %v3186_v46 = vmul.f32 %v9138_v22, %v3140_v56  ;;  %5399 = vmatmul.bf16.gmra.mxu3 %v9355_v54  ;;  %v3501_v30 = vshll.u32 %v3285_v62, 16  ;;  %v2965_v17 = vadd.f32 %v2964_v37, %v10639_v59 }
 0x368   : > { %10638 = vst [vmem:[#allocation36_spill] sm:$0xff] %v9392_v39  ;;  %v10640_v63 = vrot.slane %v9288_v26, 5  ;;  %v4681_v38 = vunpack.c.l.b16 %v4408_v15  ;;  %v4116_v2 = vshll.u32 %v9386_v13, 16  ;;  %v4103_v52 = vor.u32 %v4102_v34, %v4099_v10 }
 0x369   : > { %v3500_v8 = vrot.slane %v3498_v41, 7  ;;  %v3222_v4 = vadd.f32 %v9119_v3, %v3186_v46  ;;  %5315 = vmatmul.bf16.gmra.mxu2 %v9392_v39  ;;  %v4114_v41 = vrot.slane %v4113_v35, 4  ;;  %v4411_v34 = vrot.slane %v9346_v49, 5 }
 0x36a   : > { %v3053_v36 = vpop.f32.mrf.mxu3  ;;  %v4405_v9 = vsel %vm8129_vm13, %v6594_v58, %v10640_v63  ;;  %v9411_v58 = vld [vmem:[#allocation3 + $0x64] sm:$0xf]  ;;  %v4118_v10 = vrot.slane %v4116_v2, 5 }
 0x36b   : > { %v3503_v56 = vor.u32 %v3501_v30, %v3500_v8  ;;  %v3254_v43 = vmax.f32 %v3222_v4, 0.0  ;;  %v3054_v16 = vadd.f32 %v3053_v36, %v2965_v17  ;;  %v9404_v62 = vpop.f32.mrf.mxu1  ;;  %v4680_v15 = vunpack.c.l.b16 %v4405_v9  ;;  %v10641_v30 = vld [vmem:[#allocation15_spill] sm:$0xff]  ;;  %v10642_v4 = vld [vmem:[#allocation24_spill] sm:$0xff] }
 0x36c   : > { %v2878_v17 = vadd.f32 %v10642_v4, %v10641_v30  ;;  %v2969_v36 = vpop.f32.mrf.mxu2  ;;  %v4104_v9 = vrot.slane %v4103_v52, 4  ;;  %v4130_v2 = vshll.u32 %v9411_v58, 16  ;;  %v4134_v49 = vshrl.u32 %v9411_v58, 16  ;;  %v3706_v4 = vld [vmem:[#allocation3 + $0xa4] sm:$0x1] }
 0x36d   : > { %v3703_v37 = vsel %vm8747_vm15, %v3503_v56, %v3702_v48  ;;  %v3286_v46 = vpack.c.bf16 %v3254_v43, %v3254_v43  ;;  %v3143_v26 = vadd.f32 %v9297_v60, %v3054_v16  ;;  %v9409_v59 = vld [vmem:[#allocation3 + $0x90] sm:$0xff]  ;;  %v9418_v48 = vpack.c.b16 %v4681_v38, %v4680_v15  ;;  %v9422_v56 = vld [vmem:[#allocation3 + $0x60] sm:$0xf] }
 0x36e   : > { %3704 = vst [vmem:[#allocation3 + $0x9c] sm:$0xf] %v3703_v37  ;;  %5256 = vmatmul.bf16.gmra.mxu1 %v9409_v59  ;;  %v9420_v60 = vpop.f32.mrf.mxu0  ;;  %v4119_v43 = vsel %vm7596_vm4, %v4114_v41, %v4118_v10  ;;  %v4414_v16 = vrot.slane %v9386_v13, 5  ;;  %v2967_v38 = vadd.f32 %v2966_v6, %v2878_v17  ;;  %v3504_v15 = vrot.slane %v3500_v8, 4 }
 0x36f   : > { %v3506_v35 = vshrl.u32 %v3286_v46, 16  ;;  %v3187_v63 = vmul.f32 %v9138_v22, %v3143_v26  ;;  %10643 = vst [vmem:[#allocation34_spill] sm:$0xff] %v9418_v48  ;;  %v3509_v26 = vshll.u32 %v3286_v46, 16  ;;  %v4109_v52 = vsel %vm7596_vm4, %v4104_v9, %v9377_v53 }
 0x370   : > { %v4413_v41 = vrot.slane %v4411_v34, 4  ;;  %v4121_v13 = vshrl.u32 %v9422_v56, 16  ;;  %v4124_v6 = vshll.u32 %v9422_v56, 16  ;;  %v9438_v8 = vrot.slane %v4130_v2, 5 }
 0x371   : > { %v3508_v37 = vrot.slane %v3506_v35, 7  ;;  %v3223_v30 = vadd.f32 %v9119_v3, %v3187_v63  ;;  %5498 = vmatmul.bf16.gmra.mxu0 %v9163_v55  ;;  %v4619_v63 = vunpack.c.l.b16 %v4119_v43  ;;  %v4136_v17 = vrot.slane %v4134_v49, 4 }
 0x372   : > { %v3055_v54 = vpop.f32.mrf.mxu3  ;;  %v6595_v2 = vrot.slane %v9359_v20, 9  ;;  %v4415_v49 = vsel %vm8129_vm13, %v4413_v41, %v4414_v16  ;;  %v3709_v20 = vld [vmem:[#allocation3 + $0xa8] sm:$0xf] }
 0x373   : > { %v3511_v10 = vor.u32 %v3509_v26, %v3508_v37  ;;  %v3513_v11 = vrot.slane %v3508_v37, 4  ;;  %v3255_v28 = vmax.f32 %v3223_v30, 0.0  ;;  %v3056_v35 = vadd.f32 %v3055_v54, %v2967_v38  ;;  %v9435_v46 = vpop.f32.mrf.mxu1 }
 0x374   : > { %v2971_v37 = vpop.f32.mrf.mxu2  ;;  %v4618_v54 = vunpack.c.l.b16 %v4109_v52  ;;  %v4412_v16 = vsel %vm8129_vm13, %v6595_v2, %v4411_v34  ;;  %v9470_v2 = vld [vmem:[#allocation3 + $0x70] sm:$0xf] }
 0x375   : > { %v3512_v53 = vsel %vm7627_vm8, %v3504_v15, %v3511_v10  ;;  %v3707_v55 = vsel %vm8760_vm1, %v3513_v11, %v3706_v4  ;;  %v3287_v9 = vpack.c.bf16 %v3255_v28, %v3255_v28  ;;  %v3145_v26 = vadd.f32 %v9326_v19, %v3056_v35  ;;  %v9452_v11 = vld [vmem:[#allocation3 + $0x68] sm:$0x1] }
 0x376   : > { %3705 = vst [vmem:[#allocation3 + $0xa0] sm:$0xf] %v3512_v53  ;;  %v9450_v38 = vpop.f32.mrf.mxu0  ;;  %v9454_v28 = vpack.c.b16 %v4619_v63, %v4618_v54  ;;  %v4123_v19 = vrot.slane %v4121_v13, 4  ;;  %v4126_v15 = vrot.slane %v4124_v6, 5  ;;  %v4137_v4 = vor.u32 %v4136_v17, %v9438_v8  ;;  %v10645_v53 = vld [vmem:[#allocation25_spill] sm:$0xff] }
 0x377   : > { %3708 = vst [vmem:[#allocation3 + $0xa4] sm:$0x1] %v3707_v55  ;;  %v3515_v30 = vshrl.u32 %v3287_v9, 16  ;;  %v3188_v43 = vmul.f32 %v9138_v22, %v3145_v26  ;;  %5404 = vmatmul.bf16.gmra.mxu3 %v9418_v48  ;;  %v3518_v10 = vshll.u32 %v3287_v9, 16  ;;  %v2970_v55 = vadd.f32 %v2969_v36, %v10645_v53 }
 0x378   : > { %10644 = vst [vmem:[#allocation8_spill] sm:$0xff] %v9454_v28  ;;  %v4140_v41 = vshll.u32 %v9452_v11, 16  ;;  %v4683_v13 = vunpack.c.l.b16 %v4415_v49  ;;  %v4127_v17 = vor.u32 %v4126_v15, %v4123_v19  ;;  %v4138_v9 = vrot.slane %v4137_v4, 4  ;;  %v7094_v49 = vld [vmem:[%s10453_s4 + $0x100] sm:$0xff]  ;;  %v10647_v15 = vld [vmem:[#allocation27_spill] sm:$0xff] }
 0x379   : > { %v3517_v52 = vrot.slane %v3515_v30, 7  ;;  %v3224_v35 = vadd.f32 %v9119_v3, %v3188_v43  ;;  %5320 = vmatmul.bf16.gmra.mxu2 %v9454_v28  ;;  %v4682_v34 = vunpack.c.l.b16 %v4412_v16  ;;  %v10646_v19 = vld [vmem:[#allocation29_spill] sm:$0xff]  ;;  %5551 = vmatpush.bf16.msrb.mxu1 %v7094_v49 }
 0x37a   : > { %v3058_v26 = vpop.f32.mrf.mxu3  ;;  %v2883_v4 = vadd.f32 %v10647_v15, %v10646_v19  ;;  %v4128_v16 = vrot.slane %v4127_v17, 4 }
 0x37b   : > { %v3520_v48 = vor.u32 %v3518_v10, %v3517_v52  ;;  %v3256_v63 = vmax.f32 %v3224_v35, 0.0  ;;  %v3059_v54 = vadd.f32 %v3058_v26, %v2970_v55  ;;  %v9463_v6 = vpop.f32.mrf.mxu1  ;;  %v4142_v35 = vrot.slane %v4140_v41, 5  ;;  %v9483_v26 = vld [vmem:[#allocation3 + $0x6c] sm:$0xf] }
 0x37c   : > { %v2974_v10 = vpop.f32.mrf.mxu2  ;;  %v4154_v41 = vshll.u32 %v9470_v2, 16  ;;  %v2972_v15 = vadd.f32 %v2971_v37, %v2883_v4  ;;  %v4133_v49 = vsel %vm7596_vm4, %v4128_v16, %v9438_v8  ;;  %v4145_v17 = vshrl.u32 %v9483_v26, 16 }
 0x37d   : > { %v3710_v36 = vsel %vm8747_vm15, %v3520_v48, %v3709_v20  ;;  %v3288_v30 = vpack.c.bf16 %v3256_v63, %v3256_v63  ;;  %v3148_v43 = vadd.f32 %v9357_v61, %v3059_v54  ;;  %v9468_v53 = vld [vmem:[#allocation3 + $0x9c] sm:$0xff]  ;;  %v9479_v61 = vpack.c.b16 %v4683_v13, %v4682_v34  ;;  %v3713_v34 = vld [vmem:[#allocation3 + $0xb0] sm:$0x1] }
 0x37e   : > { %3711 = vst [vmem:[#allocation3 + $0xa8] sm:$0xf] %v3710_v36  ;;  %5261 = vmatmul.bf16.gmra.mxu1 %v9468_v53  ;;  %v9481_v20 = vpop.f32.mrf.mxu0  ;;  %v4143_v63 = vsel %vm7596_vm4, %v4138_v9, %v4142_v35  ;;  %v4158_v54 = vshrl.u32 %v9470_v2, 16  ;;  %v3521_v13 = vrot.slane %v3517_v52, 4  ;;  %v4148_v9 = vshll.u32 %v9483_v26, 16 }
 0x37f   : > { %v3523_v55 = vshrl.u32 %v3288_v30, 16  ;;  %v3189_v48 = vmul.f32 %v9138_v22, %v3148_v43  ;;  %10648 = vst [vmem:[#allocation35_spill] sm:$0xff] %v9479_v61  ;;  %v3526_v19 = vshll.u32 %v3288_v30, 16  ;;  %v4621_v37 = vunpack.c.l.b16 %v4143_v63 }
 0x380   : > { %v4418_v52 = vrot.slane %v9411_v58, 5  ;;  %v9499_v4 = vrot.slane %v4154_v41, 5  ;;  %v4147_v63 = vrot.slane %v4145_v17, 4 }
 0x381   : > { %v3525_v36 = vrot.slane %v3523_v55, 7  ;;  %v3225_v43 = vadd.f32 %v9119_v3, %v3189_v48  ;;  %5503 = vmatmul.bf16.gmra.mxu0 %v9222_v14  ;;  %v4160_v48 = vrot.slane %v4158_v54, 4 }
 0x382   : > { %v3060_v28 = vpop.f32.mrf.mxu3 }
 0x383   : > { %v3528_v35 = vor.u32 %v3526_v19, %v3525_v36  ;;  %v3530_v32 = vrot.slane %v3525_v36, 4  ;;  %v3257_v55 = vmax.f32 %v3225_v43, 0.0  ;;  %v3061_v30 = vadd.f32 %v3060_v28, %v2972_v15  ;;  %v9496_v39 = vpop.f32.mrf.mxu1  ;;  %v9506_v43 = vld [vmem:[#allocation3 + $0x74] sm:$0x1] }
 0x384   : > { %10649 = vst [vmem:[#allocation9_spill] sm:$0xff] %v9496_v39  ;;  %v2976_v36 = vpop.f32.mrf.mxu2  ;;  %v4620_v28 = vunpack.c.l.b16 %v4133_v49  ;;  %v4150_v15 = vrot.slane %v4148_v9, 5  ;;  %v4161_v49 = vor.u32 %v4160_v48, %v9499_v4  ;;  %v4421_v48 = vrot.slane %v9452_v11, 5 }
 0x385   : > { %v3529_v8 = vsel %vm7627_vm8, %v3521_v13, %v3528_v35  ;;  %v3714_v14 = vsel %vm8760_vm1, %v3530_v32, %v3713_v34  ;;  %v3289_v16 = vpack.c.bf16 %v3257_v55, %v3257_v55  ;;  %v3150_v19 = vadd.f32 %v9390_v24, %v3061_v30  ;;  %v7109_v32 = vld [vmem:[%s10453_s4 + $0x178] sm:$0xff]  ;;  %v10650_v55 = vld [vmem:[#allocation18_spill] sm:$0xff] }
 0x386   : > { %3712 = vst [vmem:[#allocation3 + $0xac] sm:$0xf] %v3529_v8  ;;  %v9510_v54 = vpop.f32.mrf.mxu0  ;;  %v7117_v24 = vld [vmem:[%s10453_s4 + $0x1b8] sm:$0xff]  ;;  %v9518_v13 = vpack.c.b16 %v4621_v37, %v4620_v28  ;;  %v4420_v34 = vrot.slane %v4418_v52, 4  ;;  %v2975_v30 = vadd.f32 %v2974_v10, %v10650_v55  ;;  %5633 = vmatpush.bf16.msra.mxu2 %v7109_v32  ;;  %v3716_v8 = vld [vmem:[#allocation3 + $0xb4] sm:$0xf] }
 0x387   : > { %3715 = vst [vmem:[#allocation3 + $0xb0] sm:$0x1] %v3714_v14  ;;  %v3532_v58 = vshrl.u32 %v3289_v16, 16  ;;  %v3190_v41 = vmul.f32 %v9138_v22, %v3150_v19  ;;  %5409 = vmatmul.bf16.gmra.mxu3 %v9479_v61  ;;  %v3535_v9 = vshll.u32 %v3289_v16, 16  ;;  %v4151_v19 = vor.u32 %v4150_v15, %v4147_v63 }
 0x388   : > { %5722 = vmatpush.bf16.msra.mxu3 %v7117_v24  ;;  %v4164_v61 = vshll.u32 %v9506_v43, 16  ;;  %v4162_v10 = vrot.slane %v4161_v49, 4  ;;  %v4422_v11 = vsel %vm8129_vm13, %v4420_v34, %v4421_v48  ;;  %v10651_v49 = vld [vmem:[#allocation28_spill] sm:$0xff] }
 0x389   : > { %v9521_v17 = vrot.slane %v3532_v58, 7  ;;  %v3226_v35 = vadd.f32 %v9119_v3, %v3190_v41  ;;  %5325 = vmatmul.bf16.gmra.mxu2 %v9518_v13  ;;  %v6596_v3 = vrot.slane %v9422_v56, 9  ;;  %v7125_v58 = vld [vmem:[%s10453_s4 + $0x1f8] sm:$0xff] }
 0x38a   : > { %v3063_v14 = vpop.f32.mrf.mxu3  ;;  %v4166_v56 = vrot.slane %v4164_v61, 5  ;;  %5811 = vmatpush.bf16.msra.mxu0 %v7125_v58  ;;  %v7133_v34 = vld [vmem:[%s10453_s4 + $0x238] sm:$0xff]  ;;  %v4685_v61 = vunpack.c.l.b16 %v4422_v11  ;;  %v3720_v58 = vld [vmem:[#allocation3 + $0xbc] sm:$0x1] }
 0x38b   : > { %v3537_v37 = vor.u32 %v3535_v9, %v9521_v17  ;;  %v3258_v28 = vmax.f32 %v3226_v35, 0.0  ;;  %v3064_v39 = vadd.f32 %v3063_v14, %v2975_v30  ;;  %v9529_v16 = vpop.f32.mrf.mxu1  ;;  %v4152_v9 = vrot.slane %v4151_v19, 4  ;;  %5900 = vmatpush.bf16.msra.mxu1 %v7133_v34 }
 0x38c   : > { %v5286_v24 = vpop.f32.mrf.mxu2  ;;  %v2888_v35 = vadd.f32 %v9122_v33, %v10651_v49  ;;  %v4425_v14 = vrot.slane %v9470_v2, 5 }
 0x38d   : > { %v3717_v63 = vsel %vm8747_vm15, %v3537_v37, %v3716_v8  ;;  %v3290_v15 = vpack.c.bf16 %v3258_v28, %v3258_v28  ;;  %v3153_v41 = vadd.f32 %v9420_v60, %v3064_v39  ;;  %v9538_v32 = vld [vmem:[#allocation3 + $0xa8] sm:$0xff]  ;;  %v4419_v39 = vsel %vm8129_vm13, %v6596_v3, %v4418_v52  ;;  %v9553_v8 = vld [vmem:[#allocation3 + $0x7c] sm:$0xf] }
 0x38e   : > { %3718 = vst [vmem:[#allocation3 + $0xb4] sm:$0xf] %v3717_v63  ;;  %5266 = vmatmul.bf16.gmra.mxu1 %v9538_v32  ;;  %v9548_v60 = vpop.f32.mrf.mxu0  ;;  %v4157_v33 = vsel %vm7596_vm4, %v4152_v9, %v9499_v4  ;;  %v7262_v37 = vld [vmem:[%s10452_s3] ss:$0 sm:$0xff]  ;;  %v2977_v48 = vadd.f32 %v2976_v36, %v2888_v35  ;;  %v3538_v3 = vrot.slane %v9521_v17, 4  ;;  %v4178_v4 = vshll.u32 %v9553_v8, 16 }
 0x38f   : > { %v3540_v55 = vshrl.u32 %v3290_v15, 16  ;;  %v3191_v30 = vmul.f32 %v9138_v22, %v3153_v41  ;;  %v4167_v22 = vsel %vm7596_vm4, %v4162_v10, %v4166_v56  ;;  %v3543_v52 = vshll.u32 %v3290_v15, 16  ;;  %v9568_v56 = vld [vmem:[#allocation3 + $0x78] sm:$0xf] }
 0x390   : > { %v4684_v41 = vunpack.c.l.b16 %v4419_v39  ;;  %v4182_v2 = vshrl.u32 %v9553_v8, 16  ;;  %v4622_v17 = vunpack.c.l.b16 %v4157_v33  ;;  %v4623_v35 = vunpack.c.l.b16 %v4167_v22 }
 0x391   : > { %v3542_v19 = vrot.slane %v3540_v55, 7  ;;  %v3227_v28 = vadd.f32 %v7262_v37, %v3191_v30  ;;  %5508 = vmatmul.bf16.gmra.mxu0 %v9284_v25  ;;  %v4427_v55 = vrot.slane %v4425_v14, 4 }
 0x392   : > { %v3065_v63 = vpop.f32.mrf.mxu3  ;;  %v9572_v36 = vpack.c.b16 %v4685_v61, %v4684_v41  ;;  %v9581_v61 = vrot.slane %v4178_v4, 5  ;;  %v4184_v33 = vrot.slane %v4182_v2, 4  ;;  %v4428_v41 = vrot.slane %v9506_v43, 5 }
 0x393   : > { %v3545_v10 = vor.u32 %v3543_v52, %v3542_v19  ;;  %v3547_v15 = vrot.slane %v3542_v19, 4  ;;  %v3259_v11 = vmax.f32 %v3227_v28, 0.0  ;;  %v3066_v9 = vadd.f32 %v3065_v63, %v2977_v48  ;;  %v9570_v49 = vpop.f32.mrf.mxu1  ;;  %v7263_v48 = vld [vmem:[%s10451_s2] ss:$0 sm:$0xff] }
 0x394   : > { %10652 = vst [vmem:[#allocation37_spill] sm:$0xff] %v9572_v36  ;;  %v5288_v19 = vpop.f32.mrf.mxu2  ;;  %v4169_v52 = vshrl.u32 %v9568_v56, 16  ;;  %v4172_v28 = vshll.u32 %v9568_v56, 16  ;;  %v6597_v63 = vrot.slane %v9483_v26, 9 }
 0x395   : > { %v3546_v25 = vsel %vm7627_vm8, %v3538_v3, %v3545_v10  ;;  %v3721_v30 = vsel %vm8760_vm1, %v3547_v15, %v3720_v58  ;;  %v3291_v39 = vpack.c.bf16 %v3259_v11, %v3259_v11  ;;  %v3155_v34 = vadd.f32 %v9450_v38, %v3066_v9  ;;  %v9594_v11 = vld [vmem:[#allocation3 + $0x80] sm:$0x1] }
 0x396   : > { %3719 = vst [vmem:[#allocation3 + $0xb8] sm:$0xf] %v3546_v25  ;;  %v9587_v58 = vpop.f32.mrf.mxu0  ;;  %v9589_v38 = vpack.c.b16 %v4623_v35, %v4622_v17  ;;  %v5287_v15 = vadd.f32 %v5286_v24, %v9154_v7  ;;  %v3723_v9 = vld [vmem:[#allocation3 + $0xc0] sm:$0xf]  ;;  %v4185_v17 = vor.u32 %v4184_v33, %v9581_v61  ;;  %v4426_v7 = vsel %vm8129_vm13, %v6597_v63, %v4425_v14 }
 0x397   : > { %3722 = vst [vmem:[#allocation3 + $0xbc] sm:$0x1] %v3721_v30  ;;  %v3549_v22 = vshrl.u32 %v3291_v39, 16  ;;  %v3192_v3 = vmul.f32 %v7263_v48, %v3155_v34  ;;  %5414 = vmatmul.bf16.gmra.mxu3 %v9572_v36  ;;  %v3552_v10 = vshll.u32 %v3291_v39, 16  ;;  %v4429_v30 = vsel %vm8129_vm13, %v4427_v55, %v4428_v41 }
 0x398   : > { %v4171_v34 = vrot.slane %v4169_v52, 4  ;;  %v4174_v48 = vrot.slane %v4172_v28, 5  ;;  %v4188_v24 = vshll.u32 %v9594_v11, 16  ;;  %v4687_v52 = vunpack.c.l.b16 %v4429_v30 }
 0x399   : > { %v3551_v4 = vrot.slane %v3549_v22, 7  ;;  %v3228_v2 = vadd.f32 %v7262_v37, %v3192_v3  ;;  %5330 = vmatmul.bf16.gmra.mxu2 %v9589_v38  ;;  %v4186_v3 = vrot.slane %v4185_v17, 4  ;;  %v4686_v14 = vunpack.c.l.b16 %v4426_v7 }
 0x39a   : > { %v5375_v25 = vpop.f32.mrf.mxu3  ;;  %v4175_v22 = vor.u32 %v4174_v48, %v4171_v34  ;;  %v4190_v21 = vrot.slane %v4188_v24, 5 }
 0x39b   : > { %v3554_v35 = vor.u32 %v3552_v10, %v3551_v4  ;;  %v3260_v26 = vmax.f32 %v3228_v2, 0.0  ;;  %v5376_v36 = vadd.f32 %v5375_v25, %v5287_v15  ;;  %v9600_v43 = vpop.f32.mrf.mxu1  ;;  %v9615_v10 = vld [vmem:[#allocation3 + $0x88] sm:$0xf]  ;;  %v9618_v25 = vpack.c.b16 %v4687_v52, %v4686_v14 }
 0x39c   : > { %v5291_v33 = vpop.f32.mrf.mxu2  ;;  %v4176_v34 = vrot.slane %v4175_v22, 4  ;;  %v4191_v48 = vsel %vm7596_vm4, %v4186_v3, %v4190_v21  ;;  %v4202_v17 = vshll.u32 %v9615_v10, 16 }
 0x39d   : > { %v3724_v37 = vsel %vm8747_vm15, %v3554_v35, %v3723_v9  ;;  %v3292_v55 = vpack.c.bf16 %v3260_v26, %v3260_v26  ;;  %v9607_v39 = vld [vmem:[#allocation3 + $0xb4] sm:$0xff]  ;;  %v9610_v28 = vadd.f32 %v9481_v20, %v5376_v36  ;;  %v5289_v9 = vadd.f32 %v5288_v19, %v9189_v27  ;;  %10653 = vst [vmem:[#allocation38_spill] sm:$0xff] %v9618_v25  ;;  %v9620_v20 = vld [vmem:[#allocation3 + $0x84] sm:$0xf]  ;;  %v3727_v36 = vld [vmem:[#allocation3 + $0xc8] sm:$0x1] }
 0x39e   : > { %3725 = vst [vmem:[#allocation3 + $0xc0] sm:$0xf] %v3724_v37  ;;  %5271 = vmatmul.bf16.gmra.mxu1 %v9607_v39  ;;  %v9613_v63 = vpop.f32.mrf.mxu0  ;;  %v4206_v35 = vshrl.u32 %v9615_v10, 16  ;;  %v3555_v26 = vrot.slane %v3551_v4, 4  ;;  %v7108_v19 = vld [vmem:[%s10453_s4 + $0x170] sm:$0xff]  ;;  %v4193_v52 = vshrl.u32 %v9620_v20, 16  ;;  %v4625_v14 = vunpack.c.l.b16 %v4191_v48 }
 0x39f   : > { %v3557_v41 = vshrl.u32 %v3292_v55, 16  ;;  %v3560_v15 = vshll.u32 %v3292_v55, 16  ;;  %v4181_v55 = vsel %vm7596_vm4, %v4176_v34, %v9581_v61  ;;  %v4196_v22 = vshll.u32 %v9620_v20, 16  ;;  %v7116_v4 = vld [vmem:[%s10453_s4 + $0x1b0] sm:$0xff]  ;;  %5634 = vmatpush.bf16.msra.mxu2 %v7108_v19 }
 0x3a0   : > { %v9648_v21 = vrot.slane %v4202_v17, 5  ;;  %5723 = vmatpush.bf16.msra.mxu3 %v7116_v4  ;;  %v5292_v40 = vadd.f32 %v5291_v33, %v9217_v57  ;;  %v4435_v17 = vrot.slane %v9594_v11, 5  ;;  %v6598_v57 = vrot.slane %v9568_v56, 9  ;;  %v7124_v11 = vld [vmem:[%s10453_s4 + $0x1f0] sm:$0xff] }
 0x3a1   : > { %v3559_v2 = vrot.slane %v3557_v41, 7  ;;  %5513 = vmatmul.bf16.gmra.mxu0 %v9344_v50  ;;  %v4432_v50 = vrot.slane %v9553_v8, 5  ;;  %v4198_v34 = vrot.slane %v4196_v22, 5 }
 0x3a2   : > { %v5377_v30 = vpop.f32.mrf.mxu3  ;;  %5812 = vmatpush.bf16.msra.mxu0 %v7124_v11 }
 0x3a3   : > { %v3562_v7 = vor.u32 %v3560_v15, %v3559_v2  ;;  %v3564_v24 = vrot.slane %v3559_v2, 4  ;;  %v5378_v27 = vadd.f32 %v5377_v30, %v5289_v9  ;;  %v9630_v37 = vpop.f32.mrf.mxu1  ;;  %v4208_v2 = vrot.slane %v4206_v35, 4  ;;  %v9656_v30 = vld [vmem:[#allocation3 + $0x8c] sm:$0x1] }
 0x3a4   : > { %v5293_v8 = vpop.f32.mrf.mxu2  ;;  %v4624_v15 = vunpack.c.l.b16 %v4181_v55  ;;  %v4434_v9 = vrot.slane %v4432_v50, 4  ;;  %v4433_v4 = vsel %vm8129_vm13, %v6598_v57, %v4432_v50 }
 0x3a5   : > { %v3563_v3 = vsel %vm7627_vm8, %v3555_v26, %v3562_v7  ;;  %v3728_v41 = vsel %vm8760_vm1, %v3564_v24, %v3727_v36  ;;  %v9646_v61 = vadd.f32 %v9510_v54, %v5378_v27  ;;  %v4195_v54 = vrot.slane %v4193_v52, 4  ;;  %v9661_v7 = vld [vmem:[#allocation3 + $0xc0] sm:$0xf] }
 0x3a6   : > { %3726 = vst [vmem:[#allocation3 + $0xc4] sm:$0xf] %v3563_v3  ;;  %v9651_v1 = vpop.f32.mrf.mxu0  ;;  %v9654_v36 = vpack.c.b16 %v4625_v14, %v4624_v15  ;;  %v4209_v35 = vor.u32 %v4208_v2, %v9648_v21  ;;  %v4436_v33 = vsel %vm8129_vm13, %v4434_v9, %v4435_v17  ;;  %v4212_v27 = vshll.u32 %v9656_v30, 16  ;;  %v9689_v9 = vld [vmem:[#allocation3 + $0x94] sm:$0xf] }
 0x3a7   : > { %3729 = vst [vmem:[#allocation3 + $0xc8] sm:$0x1] %v3728_v41  ;;  %5419 = vmatmul.bf16.gmra.mxu3 %v9618_v25  ;;  %v4199_v19 = vor.u32 %v4198_v34, %v4195_v54  ;;  %v6604_v41 = vrot.slane %v9661_v7, 9  ;;  %v4689_v2 = vunpack.c.l.b16 %v4436_v33  ;;  %v4688_v17 = vunpack.c.l.b16 %v4433_v4 }
 0x3a8   : > { %10654 = vst [vmem:[#allocation42_spill] sm:$0xff] %v9661_v7  ;;  %v4210_v56 = vrot.slane %v4209_v35, 4  ;;  %v4214_v50 = vrot.slane %v4212_v27, 5  ;;  %v4226_v57 = vshll.u32 %v9689_v9, 16  ;;  %v4230_v33 = vshrl.u32 %v9689_v9, 16 }
 0x3a9   : > { %5335 = vmatmul.bf16.gmra.mxu2 %v9654_v36  ;;  %v9706_v4 = vpack.c.b16 %v4689_v2, %v4688_v17  ;;  %v9809_v7 = vld [vmem:[#allocation3 + $0xa8] sm:$0xf] }
 0x3aa   : > { %v5380_v48 = vpop.f32.mrf.mxu3  ;;  %v4232_v2 = vrot.slane %v4230_v33, 4  ;;  %v4442_v33 = vrot.slane %v9656_v30, 5 }
 0x3ab   : > { %v5381_v26 = vadd.f32 %v5380_v48, %v5292_v40  ;;  %v9663_v24 = vpop.f32.mrf.mxu1  ;;  %v5294_v48 = vadd.f32 %v5293_v8, %v9251_v23  ;;  %10657 = vst [vmem:[#allocation40_spill] sm:$0xff] %v9706_v4 }
 0x3ac   : > { %v5296_v22 = vpop.f32.mrf.mxu2 }
 0x3ad   : > { %v9673_v55 = vadd.f32 %v9548_v60, %v5381_v26  ;;  %v9675_v52 = vld [vmem:[#allocation3 + $0xc4] sm:$0xf]  ;;  %v7132_v60 = vld [vmem:[%s10453_s4 + $0x230] sm:$0xff]  ;;  %v4215_v26 = vsel %vm7596_vm4, %v4210_v56, %v4214_v50 }
 0x3ae   : > { %10655 = vst [vmem:[#allocation39_spill] sm:$0xff] %v9675_v52  ;;  %v9679_v3 = vld [vmem:[#allocation3 + $0xc8] sm:$0x1]  ;;  %v4501_v14 = vrot.slane %v9675_v52, 5  ;;  %5552 = vmatmul.bf16.vlgmr.msrb.gmra.mxu1 %v9076_v5  ;;  %v9684_v15 = vpop.f32.mrf.mxu0  ;;  %v4200_v5 = vrot.slane %v4199_v19, 4  ;;  %v4627_v56 = vunpack.c.l.b16 %v4215_v26 }
 0x3af   : > { %10656 = vst [vmem:[#allocation12_spill] sm:$0xff] %v9679_v3  ;;  %v4504_v34 = vrot.slane %v9679_v3, 5  ;;  %5901 = vmatpush.bf16.msra.mxu1 %v7132_v60 }
 0x3b0   : > { %v4502_v40 = vsel %vm8129_vm13, %v6604_v41, %v4501_v14  ;;  %v4503_v54 = vrot.slane %v4501_v14, 4  ;;  %v9702_v41 = vld [vmem:[#allocation3 + $0x90] sm:$0xf]  ;;  %v4439_v14 = vrot.slane %v9615_v10, 5 }
 0x3b1   : > { %5518 = vmatmul.bf16.gmra.mxu0 %v9409_v59  ;;  %v4740_v23 = vunpack.c.l.b16 %v4502_v40  ;;  %v4205_v59 = vsel %vm7596_vm4, %v4200_v5, %v9648_v21  ;;  %v4217_v40 = vshrl.u32 %v9702_v41, 16  ;;  %v5297_v21 = vadd.f32 %v5296_v22, %v9279_v12 }
 0x3b2   : > { %v5382_v35 = vpop.f32.mrf.mxu3  ;;  %v4505_v27 = vsel %vm8129_vm13, %v4503_v54, %v4504_v34  ;;  %v4220_v34 = vshll.u32 %v9702_v41, 16  ;;  %v4626_v17 = vunpack.c.l.b16 %v4205_v59  ;;  %v4441_v26 = vrot.slane %v4439_v14, 4 }
 0x3b3   : > { %v5383_v11 = vadd.f32 %v5382_v35, %v5294_v48  ;;  %v4741_v8 = vunpack.c.l.b16 %v4505_v27  ;;  %v9704_v19 = vpop.f32.mrf.mxu1  ;;  %v4228_v48 = vrot.slane %v4226_v57, 5  ;;  %v4219_v27 = vrot.slane %v4217_v40, 4 }
 0x3b4   : > { %v5298_v54 = vpop.f32.mrf.mxu2  ;;  %v9723_v10 = vpack.c.b16 %v4627_v56, %v4626_v17  ;;  %v6599_v56 = vrot.slane %v9620_v20, 9  ;;  %v4443_v40 = vsel %vm8129_vm13, %v4441_v26, %v4442_v33 }
 0x3b5   : > { %v9713_v60 = vadd.f32 %v9587_v58, %v5383_v11  ;;  %v9715_v50 = vpack.c.b16 %v4741_v8, %v4740_v23  ;;  %v9725_v58 = vld [vmem:[#allocation3 + $0x98] sm:$0x1]  ;;  %v4222_v11 = vrot.slane %v4220_v34, 5  ;;  %v4233_v23 = vor.u32 %v4232_v2, %v4228_v48 }
 0x3b6   : > { %v9720_v35 = vpop.f32.mrf.mxu0  ;;  %v4236_v59 = vshll.u32 %v9725_v58, 16  ;;  %v4440_v30 = vsel %vm8129_vm13, %v6599_v56, %v4439_v14 }
 0x3b7   : > { %10658 = vst [vmem:[#allocation41_spill] sm:$0xff] %v9715_v50  ;;  %5424 = vmatmul.bf16.gmra.mxu3 %v9706_v4  ;;  %v4223_v34 = vor.u32 %v4222_v11, %v4219_v27  ;;  %v4234_v2 = vrot.slane %v4233_v23, 4  ;;  %v4690_v33 = vunpack.c.l.b16 %v4440_v30  ;;  %v9751_v4 = vld [vmem:[#allocation3 + $0x9c] sm:$0xf] }
 0x3b8   : > { %v4244_v30 = vshll.u32 %v9751_v4, 16 }
 0x3b9   : > { %5340 = vmatmul.bf16.gmra.mxu2 %v9723_v10  ;;  %v4224_v20 = vrot.slane %v4223_v34, 4 }
 0x3ba   : > { %v5385_v5 = vpop.f32.mrf.mxu3 }
 0x3bb   : > { %v5386_v8 = vadd.f32 %v5385_v5, %v5297_v21  ;;  %v9728_v57 = vpop.f32.mrf.mxu1  ;;  %v9741_v21 = vld [vmem:[#allocation3 + $0xa0] sm:$0xf]  ;;  %v4238_v5 = vrot.slane %v4236_v59, 5 }
 0x3bc   : > { %v5301_v22 = vpop.f32.mrf.mxu2  ;;  %v4250_v27 = vshll.u32 %v9741_v21, 16  ;;  %v4254_v11 = vshrl.u32 %v9741_v21, 16 }
 0x3bd   : > { %v9733_v12 = vadd.f32 %v9613_v63, %v5386_v8  ;;  %v5299_v63 = vadd.f32 %v5298_v54, %v9310_v18  ;;  %v4691_v8 = vunpack.c.l.b16 %v4443_v40  ;;  %v4239_v26 = vsel %vm7596_vm4, %v4234_v2, %v4238_v5  ;;  %v7107_v18 = vld [vmem:[%s10453_s4 + $0x168] sm:$0xff] }
 0x3be   : > { %5557 = vmatmul.bf16.gmra.mxu1 %v9148_v45  ;;  %v9739_v17 = vpop.f32.mrf.mxu0  ;;  %v4229_v54 = vsel %vm7596_vm4, %v4224_v20, %v4228_v48  ;;  %v4629_v56 = vunpack.c.l.b16 %v4239_v26  ;;  %5635 = vmatpush.bf16.msra.mxu2 %v7107_v18  ;;  %v4241_v2 = vshrl.u32 %v9751_v4, 16  ;;  %v4252_v5 = vrot.slane %v4250_v27, 5  ;;  %v9777_v26 = vld [vmem:[#allocation3 + $0xa4] sm:$0x1] }
 0x3bf   : > { %v9763_v59 = vpack.c.b16 %v4691_v8, %v4690_v33  ;;  %v4256_v48 = vrot.slane %v4254_v11, 4  ;;  %v5302_v20 = vadd.f32 %v5301_v22, %v9338_v0  ;;  %v4246_v18 = vrot.slane %v4244_v30, 5  ;;  %v7123_v0 = vld [vmem:[%s10453_s4 + $0x1e8] sm:$0xff] }
 0x3c0   : > { %v4243_v33 = vrot.slane %v4241_v2, 4  ;;  %v4449_v11 = vrot.slane %v9725_v58, 5  ;;  %5813 = vmatpush.bf16.msra.mxu0 %v7123_v0 }
 0x3c1   : > { %5523 = vmatmul.bf16.gmra.mxu0 %v9468_v53  ;;  %v7115_v53 = vld [vmem:[%s10453_s4 + $0x1a8] sm:$0xff]  ;;  %10659 = vst [vmem:[#allocation14_spill] sm:$0xff] %v9763_v59  ;;  %v4257_v3 = vor.u32 %v4256_v48, %v4252_v5 }
 0x3c2   : > { %v5387_v50 = vpop.f32.mrf.mxu3  ;;  %5724 = vmatpush.bf16.msra.mxu3 %v7115_v53  ;;  %v4247_v30 = vor.u32 %v4246_v18, %v4243_v33 }
 0x3c3   : > { %v5388_v23 = vadd.f32 %v5387_v50, %v5299_v63  ;;  %v9756_v14 = vpop.f32.mrf.mxu1  ;;  %v4446_v50 = vrot.slane %v9689_v9, 5  ;;  %v4628_v63 = vunpack.c.l.b16 %v4229_v54  ;;  %v4260_v54 = vshll.u32 %v9777_v26, 16 }
 0x3c4   : > { %v5303_v34 = vpop.f32.mrf.mxu2  ;;  %v4258_v48 = vrot.slane %v4257_v3, 4 }
 0x3c5   : > { %v9767_v40 = vadd.f32 %v9651_v1, %v5388_v23  ;;  %v9775_v9 = vpack.c.b16 %v4629_v56, %v4628_v63  ;;  %v4448_v23 = vrot.slane %v4446_v50, 4  ;;  %v6600_v56 = vrot.slane %v9702_v41, 9  ;;  %v7131_v63 = vld [vmem:[%s10453_s4 + $0x228] sm:$0xff] }
 0x3c6   : > { %v9772_v8 = vpop.f32.mrf.mxu0  ;;  %v5304_v41 = vadd.f32 %v5303_v34, %v9374_v29  ;;  %5902 = vmatpush.bf16.msra.mxu1 %v7131_v63 }
 0x3c7   : > { %5429 = vmatmul.bf16.gmra.mxu3 %v9763_v59  ;;  %v4450_v2 = vsel %vm8129_vm13, %v4448_v23, %v4449_v11  ;;  %v4248_v23 = vrot.slane %v4247_v30, 4  ;;  %v4265_v30 = vshrl.u32 %v9809_v7, 16 }
 0x3c9   : > { %5345 = vmatmul.bf16.gmra.mxu2 %v9775_v9  ;;  %v4253_v29 = vsel %vm7596_vm4, %v4248_v23, %v4252_v5 }
 0x3ca   : > { %v5390_v1 = vpop.f32.mrf.mxu3 }
 0x3cb   : > { %v5391_v25 = vadd.f32 %v5390_v1, %v5302_v20  ;;  %v9780_v27 = vpop.f32.mrf.mxu1  ;;  %v9799_v20 = vld [vmem:[#allocation3 + $0xac] sm:$0xf]  ;;  %v4693_v1 = vunpack.c.l.b16 %v4450_v2 }
 0x3cc   : > { %v5306_v53 = vpop.f32.mrf.mxu2  ;;  %v4274_v18 = vshll.u32 %v9799_v20, 16  ;;  %v4278_v11 = vshrl.u32 %v9799_v20, 16 }
 0x3cd   : > { %v9788_v22 = vadd.f32 %v9684_v15, %v5391_v25  ;;  %v4447_v25 = vsel %vm8129_vm13, %v6600_v56, %v4446_v50  ;;  %v4262_v15 = vrot.slane %v4260_v54, 5  ;;  %v4453_v56 = vrot.slane %v9741_v21, 5  ;;  %v9829_v21 = vld [vmem:[#allocation3 + $0xb0] sm:$0x1] }
 0x3ce   : > { %5562 = vmatmul.bf16.gmra.mxu1 %v9205_v44  ;;  %v9794_v58 = vpop.f32.mrf.mxu0  ;;  %v4692_v59 = vunpack.c.l.b16 %v4447_v25  ;;  %v4276_v63 = vrot.slane %v4274_v18, 5  ;;  %v4280_v25 = vrot.slane %v4278_v11, 4  ;;  %v4456_v11 = vrot.slane %v9777_v26, 5  ;;  %v7106_v26 = vld [vmem:[%s10453_s4 + $0x160] sm:$0xff] }
 0x3cf   : > { %v4263_v33 = vsel %vm7596_vm4, %v4258_v48, %v4262_v15  ;;  %v4268_v48 = vshll.u32 %v9809_v7, 16  ;;  %v4630_v15 = vunpack.c.l.b16 %v4253_v29  ;;  %v4284_v29 = vshll.u32 %v9829_v21, 16  ;;  %5636 = vmatpush.bf16.msra.mxu2 %v7106_v26 }
 0x3d0   : > { %v9815_v34 = vpack.c.b16 %v4693_v1, %v4692_v59  ;;  %v4631_v54 = vunpack.c.l.b16 %v4263_v33  ;;  %v5307_v59 = vadd.f32 %v5306_v53, %v9404_v62  ;;  %v4455_v1 = vrot.slane %v4453_v56, 4 }
 0x3d1   : > { %5528 = vmatmul.bf16.gmra.mxu0 %v9538_v32  ;;  %v4270_v23 = vrot.slane %v4268_v48, 5  ;;  %v4281_v33 = vor.u32 %v4280_v25, %v4276_v63 }
 0x3d2   : > { %v5392_v3 = vpop.f32.mrf.mxu3  ;;  %10660 = vst [vmem:[#allocation16_spill] sm:$0xff] %v9815_v34  ;;  %v9827_v5 = vpack.c.b16 %v4631_v54, %v4630_v15  ;;  %v6601_v54 = vrot.slane %v9751_v4, 9 }
 0x3d3   : > { %v5393_v0 = vadd.f32 %v5392_v3, %v5304_v41  ;;  %v9811_v50 = vpop.f32.mrf.mxu1  ;;  %v4267_v3 = vrot.slane %v4265_v30, 4  ;;  %v4457_v30 = vsel %vm8129_vm13, %v4455_v1, %v4456_v11  ;;  %v4282_v25 = vrot.slane %v4281_v33, 4 }
 0x3d4   : > { %v5308_v2 = vpop.f32.mrf.mxu2  ;;  %10661 = vst [vmem:[#allocation43_spill] sm:$0xff] %v9827_v5  ;;  %v4454_v4 = vsel %vm8129_vm13, %v6601_v54, %v4453_v56  ;;  %v9861_v56 = vld [vmem:[#allocation3 + $0xb4] sm:$0xf]  ;;  %v7121_v54 = vld [vmem:[%s10453_s4 + $0x1d8] sm:$0xff] }
 0x3d5   : > { %v9819_v32 = vadd.f32 %v9720_v35, %v5393_v0  ;;  %v4271_v48 = vor.u32 %v4270_v23, %v4267_v3  ;;  %v5309_v1 = vadd.f32 %v5308_v2, %v9435_v46  ;;  %v4695_v3 = vunpack.c.l.b16 %v4457_v30  ;;  %v7114_v46 = vld [vmem:[%s10453_s4 + $0x1a0] sm:$0xff] }
 0x3d6   : > { %v9824_v41 = vpop.f32.mrf.mxu0  ;;  %5725 = vmatpush.bf16.msra.mxu3 %v7114_v46 }
 0x3d7   : > { %5434 = vmatmul.bf16.gmra.mxu3 %v9815_v34  ;;  %v4272_v33 = vrot.slane %v4271_v48, 4 }
 0x3d9   : > { %5350 = vmatmul.bf16.gmra.mxu2 %v9827_v5  ;;  %v4694_v5 = vunpack.c.l.b16 %v4454_v4  ;;  %v4292_v4 = vshll.u32 %v9861_v56, 16 }
 0x3da   : > { %v5395_v35 = vpop.f32.mrf.mxu3 }
 0x3db   : > { %v5396_v0 = vadd.f32 %v5395_v35, %v5307_v59  ;;  %v9832_v18 = vpop.f32.mrf.mxu1  ;;  %v9851_v59 = vld [vmem:[#allocation3 + $0xb8] sm:$0xf]  ;;  %v4286_v35 = vrot.slane %v4284_v29, 5  ;;  %v4277_v29 = vsel %vm7596_vm4, %v4272_v33, %v4276_v63  ;;  %v9876_v30 = vpack.c.b16 %v4695_v3, %v4694_v5  ;;  %v9901_v33 = vld [vmem:[#allocation3 + $0xbc] sm:$0x1] }
 0x3dc   : > { %v5311_v53 = vpop.f32.mrf.mxu2  ;;  %v4298_v11 = vshll.u32 %v9851_v59, 16  ;;  %v4302_v34 = vshrl.u32 %v9851_v59, 16  ;;  %v4289_v63 = vshrl.u32 %v9861_v56, 16  ;;  %v4632_v5 = vunpack.c.l.b16 %v4277_v29 }
 0x3dd   : > { %v9837_v62 = vadd.f32 %v9739_v17, %v5396_v0  ;;  %v7122_v17 = vld [vmem:[%s10453_s4 + $0x1e0] sm:$0xff]  ;;  %v4287_v0 = vsel %vm7596_vm4, %v4282_v25, %v4286_v35  ;;  %10662 = vst [vmem:[#allocation19_spill] sm:$0xff] %v9876_v30  ;;  %v4460_v25 = vrot.slane %v9799_v20, 5  ;;  %v7120_v20 = vld [vmem:[%s10453_s4 + $0x1d0] sm:$0xff]  ;;  %v4294_v29 = vrot.slane %v4292_v4, 5  ;;  %v7119_v4 = vld [vmem:[%s10453_s4 + $0x1c8] sm:$0xff] }
 0x3de   : > { %5567 = vmatmul.bf16.gmra.mxu1 %v9269_v47  ;;  %v9843_v15 = vpop.f32.mrf.mxu0  ;;  %5814 = vmatpush.bf16.msra.mxu0 %v7122_v17  ;;  %v4633_v48 = vunpack.c.l.b16 %v4287_v0  ;;  %v9884_v35 = vrot.slane %v4298_v11, 5  ;;  %v4291_v46 = vrot.slane %v4289_v63, 4  ;;  %v7103_v63 = vld [vmem:[%s10453_s4 + $0x148] sm:$0xff] }
 0x3df   : > { %v4462_v11 = vrot.slane %v4460_v25, 4 }
 0x3e1   : > { %5533 = vmatmul.bf16.gmra.mxu0 %v9607_v39  ;;  %v7105_v39 = vld [vmem:[%s10453_s4 + $0x158] sm:$0xff] }
 0x3e2   : > { %v5397_v23 = vpop.f32.mrf.mxu3  ;;  %5637 = vmatpush.bf16.msra.mxu2 %v7105_v39  ;;  %5815 = vmatpush.bf16.msra.mxu0 %v7121_v54 }
 0x3e3   : > { %v5398_v52 = vadd.f32 %v5397_v23, %v5309_v1  ;;  %v9866_v2 = vpop.f32.mrf.mxu1  ;;  %v4304_v1 = vrot.slane %v4302_v34, 4  ;;  %v5312_v34 = vadd.f32 %v5311_v53, %v9463_v6  ;;  %v9899_v23 = vpack.c.b16 %v4633_v48, %v4632_v5  ;;  %v7112_v6 = vld [vmem:[%s10453_s4 + $0x190] sm:$0xff] }
 0x3e4   : > { %v5313_v17 = vpop.f32.mrf.mxu2  ;;  %v4463_v48 = vrot.slane %v9829_v21, 5  ;;  %v4308_v5 = vshll.u32 %v9901_v33, 16 }
 0x3e5   : > { %v9880_v26 = vadd.f32 %v9772_v8, %v5398_v52  ;;  %v7113_v52 = vld [vmem:[%s10453_s4 + $0x198] sm:$0xff]  ;;  %v7104_v8 = vld [vmem:[%s10453_s4 + $0x150] sm:$0xff]  ;;  %10663 = vst [vmem:[#allocation21_spill] sm:$0xff] %v9899_v23  ;;  %v4305_v39 = vor.u32 %v4304_v1, %v9884_v35 }
 0x3e6   : > { %v9887_v3 = vpop.f32.mrf.mxu0  ;;  %5726 = vmatpush.bf16.msra.mxu3 %v7113_v52  ;;  %5638 = vmatpush.bf16.msra.mxu2 %v7104_v8  ;;  %v6602_v8 = vrot.slane %v9809_v7, 9  ;;  %v4464_v21 = vsel %vm8129_vm13, %v4462_v11, %v4463_v48  ;;  %v7102_v7 = vld [vmem:[%s10453_s4 + $0x140] sm:$0xff] }
 0x3e7   : > { %5439 = vmatmul.bf16.gmra.mxu3 %v9876_v30  ;;  %5816 = vmatpush.bf16.msra.mxu0 %v7120_v20  ;;  %v4295_v20 = vor.u32 %v4294_v29, %v4291_v46  ;;  %v4310_v46 = vrot.slane %v4308_v5, 5  ;;  %v9938_v29 = vld [vmem:[#allocation3 + $0xc0] sm:$0xff] }
 0x3e8   : > { %v4461_v11 = vsel %vm8129_vm13, %v6602_v8, %v4460_v25  ;;  %10665 = vst [vmem:[#allocation22_spill] sm:$0xff] %v9938_v29  ;;  %v7110_v8 = vld [vmem:[%s10453_s4 + $0x180] sm:$0xff] }
 0x3e9   : > { %5355 = vmatmul.bf16.gmra.mxu2 %v9899_v23  ;;  %v4296_v30 = vrot.slane %v4295_v20, 4  ;;  %v4696_v5 = vunpack.c.l.b16 %v4461_v11 }
 0x3ea   : > { %v5400_v0 = vpop.f32.mrf.mxu3  ;;  %5727 = vmatpush.bf16.msra.mxu3 %v7112_v6  ;;  %5639 = vmatpush.bf16.msra.mxu2 %v7103_v63  ;;  %v7111_v6 = vld [vmem:[%s10453_s4 + $0x188] sm:$0xff]  ;;  %v4697_v63 = vunpack.c.l.b16 %v4464_v21 }
 0x3eb   : > { %v5401_v54 = vadd.f32 %v5400_v0, %v5312_v34  ;;  %v9908_v53 = vpop.f32.mrf.mxu1  ;;  %v4306_v34 = vrot.slane %v4305_v39, 4  ;;  %5817 = vmatpush.bf16.msra.mxu0 %v7119_v4  ;;  %v7118_v39 = vld [vmem:[%s10453_s4 + $0x1c0] sm:$0xff] }
 0x3ec   : > { %v5316_v52 = vpop.f32.mrf.mxu2  ;;  %v9955_v21 = vpack.c.b16 %v4697_v63, %v4696_v5  ;;  %v6603_v63 = vrot.slane %v9861_v56, 9 }
 0x3ed   : > { %v9919_v1 = vadd.f32 %v9794_v58, %v5401_v54  ;;  %v7130_v58 = vld [vmem:[%s10453_s4 + $0x220] sm:$0xff]  ;;  %v4311_v23 = vsel %vm7596_vm4, %v4306_v34, %v4310_v46  ;;  %v5317_v46 = vadd.f32 %v5316_v52, %v9529_v16  ;;  %v10667_v52 = vld [vmem:[#allocation36_spill] sm:$0xff] }
 0x3ee   : > { %5572 = vmatmul.bf16.gmra.mxu1 %v9328_v31  ;;  %v9925_v0 = vpop.f32.mrf.mxu0  ;;  %v10666_v54 = vld [vmem:[#allocation9_spill] sm:$0xff]  ;;  %5728 = vmatpush.bf16.msra.mxu3 %v7111_v6  ;;  %v4635_v20 = vunpack.c.l.b16 %v4311_v23 }
 0x3ef   : > { %10664 = vst [vmem:[#allocation20_spill] sm:$0xff] %v9919_v1  ;;  %v5314_v48 = vadd.f32 %v5313_v17, %v10666_v54  ;;  %5903 = vmatpush.bf16.msra.mxu1 %v7130_v58  ;;  %5640 = vmatpush.bf16.msra.mxu2 %v7102_v7  ;;  %v4301_v17 = vsel %vm7596_vm4, %v4296_v30, %v9884_v35  ;;  %v4467_v58 = vrot.slane %v9851_v59, 5 }
 0x3f0   : > { %5818 = vmatpush.bf16.msra.mxu0 %v7118_v39  ;;  %v4634_v7 = vunpack.c.l.b16 %v4301_v17 }
 0x3f1   : > { %5538 = vmatmul.bf16.gmra.mxu0 %v9938_v29  ;;  %v4469_v30 = vrot.slane %v4467_v58, 4 }
 0x3f2   : > { %v5402_v4 = vpop.f32.mrf.mxu3  ;;  %5729 = vmatpush.bf16.msra.mxu3 %v7110_v8  ;;  %v9963_v39 = vpack.c.b16 %v4635_v20, %v4634_v7 }
 0x3f3   : > { %v5403_v25 = vadd.f32 %v5402_v4, %v5314_v48  ;;  %v9950_v1 = vpop.f32.mrf.mxu1 }
 0x3f4   : > { %v5318_v6 = vpop.f32.mrf.mxu2 }
 0x3f5   : > { %v9958_v34 = vadd.f32 %v9824_v41, %v5403_v25  ;;  %v4470_v41 = vrot.slane %v9901_v33, 5  ;;  %v4468_v25 = vsel %vm8129_vm13, %v6603_v63, %v4467_v58  ;;  %v5319_v5 = vadd.f32 %v5318_v6, %v9570_v49  ;;  %v10669_v63 = vld [vmem:[#allocation8_spill] sm:$0xff] }
 0x3f6   : > { %v5501_v11 = vpop.f32.mrf.mxu0  ;;  %v4698_v33 = vunpack.c.l.b16 %v4468_v25 }
 0x3f7   : > { %5444 = vmatmul.bf16.gmra.mxu3 %v9955_v21  ;;  %v4471_v16 = vsel %vm8129_vm13, %v4469_v30, %v4470_v41  ;;  %v10668_v30 = vld [vmem:[#allocation32_spill] sm:$0xff] }
 0x3f8   : > { %v4699_v8 = vunpack.c.l.b16 %v4471_v16  ;;  %v7129_v16 = vld [vmem:[%s10453_s4 + $0x218] sm:$0xff] }
 0x3f9   : > { %5360 = vmatmul.bf16.gmra.mxu2 %v9963_v39  ;;  %5904 = vmatpush.bf16.msra.mxu1 %v7129_v16 }
 0x3fa   : > { %v5405_v54 = vpop.f32.mrf.mxu3  ;;  %v9982_v56 = vpack.c.b16 %v4699_v8, %v4698_v33 }
 0x3fb   : > { %v5406_v35 = vadd.f32 %v5405_v54, %v5317_v46  ;;  %v9966_v23 = vpop.f32.mrf.mxu1 }
 0x3fc   : > { %v5321_v59 = vpop.f32.mrf.mxu2 }
 0x3fd   : > { %v9970_v48 = vadd.f32 %v9843_v15, %v5406_v35  ;;  %v5322_v58 = vadd.f32 %v5321_v59, %v9600_v43 }
 0x3fe   : > { %5577 = vmatmul.bf16.gmra.mxu1 %v10667_v52  ;;  %v5504_v4 = vpop.f32.mrf.mxu0 }
 0x401   : > { %5819 = vmatmul.bf16.vlgmr.msra.gmra.mxu0 %v9148_v45 }
 0x402   : > { %v5407_v17 = vpop.f32.mrf.mxu3 }
 0x403   : > { %v5408_v15 = vadd.f32 %v5407_v17, %v5319_v5  ;;  %v9980_v20 = vpop.f32.mrf.mxu1  ;;  %v7264_v17 = vld [vmem:[#allocation3 + $0x18] sm:$0xff] }
 0x404   : > { %v5323_v46 = vpop.f32.mrf.mxu2 }
 0x405   : > { %v9985_v7 = vadd.f32 %v9887_v3, %v5408_v15  ;;  %v5324_v25 = vadd.f32 %v5323_v46, %v9630_v37 }
 0x406   : > { %v5506_v54 = vpop.f32.mrf.mxu0 }
 0x407   : > { %5449 = vmatmul.bf16.gmra.mxu3 %v9982_v56 }
 0x409   : > { %5641 = vmatmul.bf16.vlgmr.msra.gmra.mxu2 %v10668_v30 }
 0x40a   : > { %v5410_v49 = vpop.f32.mrf.mxu3 }
 0x40b   : > { %v5411_v6 = vadd.f32 %v5410_v49, %v5322_v58  ;;  %v9990_v45 = vpop.f32.mrf.mxu1 }
 0x40c   : > { %v5326_v41 = vpop.f32.mrf.mxu2 }
 0x40d   : > { %v9993_v35 = vadd.f32 %v9925_v0, %v5411_v6  ;;  %v5327_v33 = vadd.f32 %v5326_v41, %v9663_v24  ;;  %v10670_v6 = vld [vmem:[#allocation30_spill] sm:$0xff] }
 0x40e   : > { %5582 = vmatmul.bf16.gmra.mxu1 %v10669_v63  ;;  %v5509_v3 = vpop.f32.mrf.mxu0 }
 0x411   : > { %5824 = vmatmul.bf16.gmra.mxu0 %v9205_v44 }
 0x412   : > { %v5412_v43 = vpop.f32.mrf.mxu3 }
 0x413   : > { %v5413_v59 = vadd.f32 %v5412_v43, %v5324_v25  ;;  %v10001_v5 = vpop.f32.mrf.mxu1 }
 0x414   : > { %v5328_v0 = vpop.f32.mrf.mxu2 }
 0x415   : > { %v10003_v8 = vadd.f32 %v5501_v11, %v5413_v59  ;;  %v5329_v11 = vadd.f32 %v5328_v0, %v9704_v19  ;;  %v7265_v59 = vld [vmem:[#allocation3 + $0x24] sm:$0xff] }
 0x416   : > { %v5511_v15 = vpop.f32.mrf.mxu0 }
 0x417   : > { %5730 = vmatmul.bf16.vlgmr.msra.gmra.mxu3 %v7264_v17 }
 0x419   : > { %5646 = vmatmul.bf16.gmra.mxu2 %v10670_v6 }
 0x41a   : > { %v5415_v58 = vpop.f32.mrf.mxu3 }
 0x41b   : > { %v5416_v49 = vadd.f32 %v5415_v58, %v5327_v33  ;;  %v10007_v37 = vpop.f32.mrf.mxu1 }
 0x41c   : > { %v5331_v44 = vpop.f32.mrf.mxu2 }
 0x41d   : > { %v10009_v46 = vadd.f32 %v5504_v4, %v5416_v49  ;;  %v5332_v4 = vadd.f32 %v5331_v44, %v9728_v57  ;;  %v10671_v49 = vld [vmem:[#allocation33_spill] sm:$0xff] }
 0x41e   : > { %5587 = vmatmul.bf16.gmra.mxu1 %v9518_v13  ;;  %v5514_v30 = vpop.f32.mrf.mxu0 }
 0x421   : > { %5829 = vmatmul.bf16.gmra.mxu0 %v9269_v47 }
 0x422   : > { %v5417_v16 = vpop.f32.mrf.mxu3 }
 0x423   : > { %v5418_v25 = vadd.f32 %v5417_v16, %v5329_v11  ;;  %v10014_v43 = vpop.f32.mrf.mxu1  ;;  %v7128_v11 = vld [vmem:[%s10453_s4 + $0x210] sm:$0xff] }
 0x424   : > { %v5333_v41 = vpop.f32.mrf.mxu2  ;;  %5905 = vmatpush.bf16.msra.mxu1 %v7128_v11 }
 0x425   : > { %v10016_v24 = vadd.f32 %v5506_v54, %v5418_v25  ;;  %v5334_v57 = vadd.f32 %v5333_v41, %v9756_v14  ;;  %v10672_v14 = vld [vmem:[#allocation7_spill] sm:$0xff] }
 0x426   : > { %v5516_v17 = vpop.f32.mrf.mxu0 }
 0x427   : > { %5735 = vmatmul.bf16.gmra.mxu3 %v7265_v59  ;;  %v7266_v59 = vld [vmem:[#allocation3 + $0x30] sm:$0xff] }
 0x429   : > { %5651 = vmatmul.bf16.gmra.mxu2 %v10671_v49 }
 0x42a   : > { %v5420_v33 = vpop.f32.mrf.mxu3 }
 0x42b   : > { %v5421_v58 = vadd.f32 %v5420_v33, %v5332_v4  ;;  %v5553_v51 = vpop.f32.mrf.mxu1 }
 0x42c   : > { %v10021_v19 = vadd.f32 %v5553_v51, %v9610_v28  ;;  %v5336_v0 = vpop.f32.mrf.mxu2 }
 0x42d   : > { %v10023_v47 = vadd.f32 %v5509_v3, %v5421_v58  ;;  %v5337_v33 = vadd.f32 %v5336_v0, %v9780_v27 }
 0x42e   : > { %5592 = vmatmul.bf16.gmra.mxu1 %v9589_v38  ;;  %v5519_v54 = vpop.f32.mrf.mxu0 }
 0x431   : > { %5834 = vmatmul.bf16.gmra.mxu0 %v9328_v31 }
 0x432   : > { %v5422_v44 = vpop.f32.mrf.mxu3 }
 0x433   : > { %v5423_v16 = vadd.f32 %v5422_v44, %v5334_v57  ;;  %v5555_v25 = vpop.f32.mrf.mxu1 }
 0x434   : > { %v10032_v51 = vadd.f32 %v5555_v25, %v9646_v61  ;;  %v5338_v3 = vpop.f32.mrf.mxu2 }
 0x435   : > { %v10034_v28 = vadd.f32 %v5511_v15, %v5423_v16  ;;  %v5339_v57 = vadd.f32 %v5338_v3, %v9811_v50 }
 0x436   : > { %v5521_v4 = vpop.f32.mrf.mxu0 }
 0x437   : > { %5740 = vmatmul.bf16.gmra.mxu3 %v7266_v59  ;;  %v7267_v59 = vld [vmem:[#allocation3 + $0x3c] sm:$0xff] }
 0x439   : > { %5656 = vmatmul.bf16.gmra.mxu2 %v10672_v14 }
 0x43a   : > { %v5425_v58 = vpop.f32.mrf.mxu3 }
 0x43b   : > { %v5426_v29 = vadd.f32 %v5425_v58, %v5337_v33  ;;  %v5558_v41 = vpop.f32.mrf.mxu1 }
 0x43c   : > { %v10039_v31 = vadd.f32 %v5558_v41, %v9673_v55  ;;  %v5341_v61 = vpop.f32.mrf.mxu2  ;;  %v10673_v41 = vld [vmem:[#allocation31_spill] sm:$0xff] }
 0x43d   : > { %v10041_v11 = vadd.f32 %v5514_v30, %v5426_v29  ;;  %v5342_v30 = vadd.f32 %v5341_v61, %v9832_v18 }
 0x43e   : > { %5597 = vmatmul.bf16.gmra.mxu1 %v9654_v36  ;;  %v5524_v15 = vpop.f32.mrf.mxu0 }
 0x441   : > { %5839 = vmatmul.bf16.gmra.mxu0 %v10667_v52 }
 0x442   : > { %v5427_v44 = vpop.f32.mrf.mxu3 }
 0x443   : > { %v5428_v27 = vadd.f32 %v5427_v44, %v5339_v57  ;;  %v5560_v0 = vpop.f32.mrf.mxu1 }
 0x444   : > { %v10047_v16 = vadd.f32 %v5560_v0, %v9713_v60  ;;  %v5343_v55 = vpop.f32.mrf.mxu2 }
 0x445   : > { %v10049_v25 = vadd.f32 %v5516_v17, %v5428_v27  ;;  %v7127_v17 = vld [vmem:[%s10453_s4 + $0x208] sm:$0xff]  ;;  %v5344_v57 = vadd.f32 %v5343_v55, %v9866_v2 }
 0x446   : > { %v5526_v29 = vpop.f32.mrf.mxu0  ;;  %5906 = vmatpush.bf16.msra.mxu1 %v7127_v17  ;;  %v10674_v2 = vld [vmem:[#allocation34_spill] sm:$0xff] }
 0x447   : > { %5745 = vmatmul.bf16.gmra.mxu3 %v7267_v59  ;;  %v7268_v59 = vld [vmem:[#allocation3 + $0x48] sm:$0xff] }
 0x449   : > { %5661 = vmatmul.bf16.gmra.mxu2 %v10673_v41 }
 0x44a   : > { %v5430_v33 = vpop.f32.mrf.mxu3 }
 0x44b   : > { %v5431_v58 = vadd.f32 %v5430_v33, %v5342_v30  ;;  %v5563_v50 = vpop.f32.mrf.mxu1 }
 0x44c   : > { %v10054_v52 = vadd.f32 %v5563_v50, %v9733_v12  ;;  %v5346_v60 = vpop.f32.mrf.mxu2 }
 0x44d   : > { %v10056_v3 = vadd.f32 %v5519_v54, %v5431_v58  ;;  %v5347_v30 = vadd.f32 %v5346_v60, %v9908_v53 }
 0x44e   : > { %5602 = vmatmul.bf16.gmra.mxu1 %v9723_v10  ;;  %v5529_v61 = vpop.f32.mrf.mxu0 }
 0x451   : > { %5844 = vmatmul.bf16.gmra.mxu0 %v10669_v63 }
 0x452   : > { %v5432_v18 = vpop.f32.mrf.mxu3 }
 0x453   : > { %v5433_v44 = vadd.f32 %v5432_v18, %v5344_v57  ;;  %v5565_v27 = vpop.f32.mrf.mxu1 }
 0x454   : > { %v10065_v12 = vadd.f32 %v5565_v27, %v9767_v40  ;;  %v5348_v0 = vpop.f32.mrf.mxu2 }
 0x455   : > { %v10067_v54 = vadd.f32 %v5521_v4, %v5433_v44  ;;  %v5349_v4 = vadd.f32 %v5348_v0, %v9950_v1 }
 0x456   : > { %v5531_v50 = vpop.f32.mrf.mxu0 }
 0x457   : > { %5750 = vmatmul.bf16.gmra.mxu3 %v7268_v59  ;;  %v7269_v59 = vld [vmem:[#allocation3 + $0x54] sm:$0xff] }
 0x459   : > { %5666 = vmatmul.bf16.gmra.mxu2 %v10674_v2 }
 0x45a   : > { %v5435_v33 = vpop.f32.mrf.mxu3 }
 0x45b   : > { %v5436_v58 = vadd.f32 %v5435_v33, %v5347_v30  ;;  %v5568_v55 = vpop.f32.mrf.mxu1 }
 0x45c   : > { %v10072_v63 = vadd.f32 %v5568_v55, %v9788_v22  ;;  %v5351_v40 = vpop.f32.mrf.mxu2  ;;  %v10677_v55 = vld [vmem:[#allocation43_spill] sm:$0xff] }
 0x45d   : > { %v10074_v17 = vadd.f32 %v5524_v15, %v5436_v58  ;;  %v5352_v15 = vadd.f32 %v5351_v40, %v9966_v23  ;;  %v10675_v58 = vld [vmem:[#allocation35_spill] sm:$0xff] }
 0x45e   : > { %5607 = vmatmul.bf16.gmra.mxu1 %v9775_v9  ;;  %v5534_v22 = vpop.f32.mrf.mxu0 }
 0x461   : > { %5849 = vmatmul.bf16.gmra.mxu0 %v9518_v13 }
 0x462   : > { %v5437_v57 = vpop.f32.mrf.mxu3 }
 0x463   : > { %v5438_v53 = vadd.f32 %v5437_v57, %v5349_v4  ;;  %v5570_v60 = vpop.f32.mrf.mxu1 }
 0x464   : > { %v10080_v18 = vadd.f32 %v5570_v60, %v9819_v32  ;;  %v5353_v27 = vpop.f32.mrf.mxu2 }
 0x465   : > { %v10082_v44 = vadd.f32 %v5526_v29, %v5438_v53  ;;  %v7126_v29 = vld [vmem:[%s10453_s4 + $0x200] sm:$0xff]  ;;  %v5354_v23 = vadd.f32 %v5353_v27, %v9980_v20 }
 0x466   : > { %v5536_v4 = vpop.f32.mrf.mxu0  ;;  %5907 = vmatpush.bf16.msra.mxu1 %v7126_v29  ;;  %v10679_v20 = vld [vmem:[#allocation37_spill] sm:$0xff]  ;;  %v10680_v29 = vld [vmem:[#allocation20_spill] sm:$0xff] }
 0x467   : > { %5755 = vmatmul.bf16.gmra.mxu3 %v7269_v59  ;;  %v7270_v59 = vld [vmem:[#allocation3 + $0x60] sm:$0xff] }
 0x469   : > { %5671 = vmatmul.bf16.gmra.mxu2 %v10675_v58 }
 0x46a   : > { %v5440_v30 = vpop.f32.mrf.mxu3 }
 0x46b   : > { %v5441_v33 = vadd.f32 %v5440_v30, %v5352_v15  ;;  %v5573_v1 = vpop.f32.mrf.mxu1 }
 0x46c   : > { %v10087_v13 = vadd.f32 %v5573_v1, %v9837_v62  ;;  %v5356_v32 = vpop.f32.mrf.mxu2 }
 0x46d   : > { %v10089_v0 = vadd.f32 %v5529_v61, %v5441_v33  ;;  %v5357_v15 = vadd.f32 %v5356_v32, %v9990_v45 }
 0x46e   : > { %10676 = vst [vmem:[#allocation10_spill] sm:$0xff] %v10087_v13  ;;  %5612 = vmatmul.bf16.gmra.mxu1 %v10677_v55  ;;  %v5539_v33 = vpop.f32.mrf.mxu0 }
 0x471   : > { %5854 = vmatmul.bf16.gmra.mxu0 %v9589_v38 }
 0x472   : > { %v5442_v40 = vpop.f32.mrf.mxu3 }
 0x473   : > { %v5443_v57 = vadd.f32 %v5442_v40, %v5354_v23  ;;  %v5575_v53 = vpop.f32.mrf.mxu1  ;;  %v10682_v40 = vld [vmem:[#allocation21_spill] sm:$0xff] }
 0x474   : > { %v10098_v62 = vadd.f32 %v5575_v53, %v9880_v26  ;;  %v5358_v60 = vpop.f32.mrf.mxu2 }
 0x475   : > { %v10100_v61 = vadd.f32 %v5531_v50, %v5443_v57  ;;  %v5359_v50 = vadd.f32 %v5358_v60, %v10001_v5 }
 0x476   : > { %10678 = vst [vmem:[#allocation13_spill] sm:$0xff] %v10098_v62  ;;  %v5541_v53 = vpop.f32.mrf.mxu0 }
 0x477   : > { %5760 = vmatmul.bf16.gmra.mxu3 %v7270_v59 }
 0x479   : > { %5676 = vmatmul.bf16.gmra.mxu2 %v10679_v20 }
 0x47a   : > { %v5445_v30 = vpop.f32.mrf.mxu3 }
 0x47b   : > { %v5446_v1 = vadd.f32 %v5445_v30, %v5357_v15  ;;  %v5578_v27 = vpop.f32.mrf.mxu1 }
 0x47c   : > { %v10105_v38 = vadd.f32 %v5578_v27, %v10680_v29  ;;  %v5361_v26 = vpop.f32.mrf.mxu2  ;;  %v10685_v27 = vld [vmem:[#allocation39_spill] sm:$0xff]  ;;  %v7271_v29 = vld [vmem:[#allocation3 + $0x6c] sm:$0xff] }
 0x47d   : > { %v10107_v23 = vadd.f32 %v5534_v22, %v5446_v1  ;;  %v4482_v22 = vshll.u32 %v10685_v27, 16  ;;  %v4486_v1 = vshrl.u32 %v10685_v27, 16  ;;  %v5362_v5 = vadd.f32 %v5361_v26, %v10007_v37 }
 0x47e   : > { %10681 = vst [vmem:[#allocation23_spill] sm:$0xff] %v10105_v38  ;;  %5617 = vmatmul.bf16.gmra.mxu1 %v10682_v40  ;;  %v10686_v38 = vld [vmem:[#allocation42_spill] sm:$0xff]  ;;  %v5820_v27 = vpop.f32.mrf.mxu0 }
 0x47f   : > { %v4488_v62 = vrot.slane %v4486_v1, 4 }
 0x481   : > { %5859 = vmatmul.bf16.gmra.mxu0 %v9654_v36  ;;  %v4473_v36 = vshrl.u32 %v10686_v38, 16 }
 0x482   : > { %v5447_v57 = vpop.f32.mrf.mxu3 }
 0x483   : > { %v5448_v45 = vadd.f32 %v5447_v57, %v5359_v50  ;;  %v5580_v32 = vpop.f32.mrf.mxu1  ;;  %v4476_v50 = vshll.u32 %v10686_v38, 16  ;;  %v4484_v57 = vrot.slane %v4482_v22, 5  ;;  %v4475_v13 = vrot.slane %v4473_v36, 4  ;;  %v10688_v22 = vld [vmem:[#allocation12_spill] sm:$0xff] }
 0x484   : > { %v10113_v59 = vadd.f32 %v5580_v32, %v9958_v34  ;;  %v5363_v30 = vpop.f32.mrf.mxu2  ;;  %v10687_v32 = vld [vmem:[#allocation38_spill] sm:$0xff]  ;;  %v4492_v1 = vshll.u32 %v10688_v22, 16  ;;  %v10689_v22 = vld [vmem:[#allocation40_spill] sm:$0xff] }
 0x485   : > { %v10115_v15 = vadd.f32 %v5536_v4, %v5448_v45  ;;  %v4478_v37 = vrot.slane %v4476_v50, 5  ;;  %v4489_v26 = vor.u32 %v4488_v62, %v4484_v57 }
 0x486   : > { %10683 = vst [vmem:[#allocation11_spill] sm:$0xff] %v10113_v59 }
 0x487   : > { %10684 = vst [vmem:[#allocation26_spill] sm:$0xff] %v10115_v15  ;;  %5765 = vmatmul.bf16.gmra.mxu3 %v7271_v29  ;;  %v4490_v15 = vrot.slane %v4489_v26, 4 }
 0x489   : > { %5681 = vmatmul.bf16.gmra.mxu2 %v10687_v32  ;;  %v4479_v32 = vor.u32 %v4478_v37, %v4475_v13  ;;  %v5822_v13 = vpop.f32.mrf.mxu0 }
 0x48a   : > { %v5450_v60 = vpop.f32.mrf.mxu3 }
 0x48b   : > { %v5451_v34 = vadd.f32 %v5450_v60, %v5362_v5  ;;  %v5583_v4 = vpop.f32.mrf.mxu1  ;;  %v5364_v5 = vadd.f32 %v5363_v30, %v10014_v43 }
 0x48c   : > { %v10124_v45 = vadd.f32 %v5583_v4, %v9970_v48  ;;  %v5642_v29 = vpop.f32.mrf.mxu2  ;;  %v4480_v4 = vrot.slane %v4479_v32, 4 }
 0x48d   : > { %v10126_v59 = vadd.f32 %v5539_v33, %v5451_v34  ;;  %v5643_v38 = vadd.f32 %v5642_v29, %v10021_v19  ;;  %v4494_v34 = vrot.slane %v4492_v1, 5  ;;  %v7272_v29 = vld [vmem:[#allocation3 + $0x78] sm:$0xff] }
 0x48e   : > { %5622 = vmatmul.bf16.gmra.mxu1 %v9963_v39 }
 0x48f   : > { %v4495_v19 = vsel %vm7596_vm4, %v4490_v15, %v4494_v34 }
 0x490   : > { %v4737_v30 = vunpack.c.l.b16 %v4495_v19 }
 0x491   : > { %5864 = vmatmul.bf16.gmra.mxu0 %v9723_v10  ;;  %v4485_v10 = vsel %vm7596_vm4, %v4480_v4, %v4484_v57  ;;  %v5825_v57 = vpop.f32.mrf.mxu0 }
 0x492   : > { %v5452_v60 = vpop.f32.mrf.mxu3 }
 0x493   : > { %v5453_v48 = vadd.f32 %v5452_v60, %v5364_v5  ;;  %v5585_v33 = vpop.f32.mrf.mxu1 }
 0x494   : > { %v10134_v36 = vadd.f32 %v5585_v33, %v9985_v7  ;;  %v5644_v50 = vpop.f32.mrf.mxu2  ;;  %v4736_v7 = vunpack.c.l.b16 %v4485_v10 }
 0x495   : > { %v10136_v62 = vadd.f32 %v5541_v53, %v5453_v48  ;;  %v5645_v43 = vadd.f32 %v5644_v50, %v10032_v51  ;;  %v7273_v50 = vld [vmem:[#allocation3 + $0x84] sm:$0xff] }
 0x496   : > { %v10147_v1 = vpack.c.b16 %v4737_v30, %v4736_v7 }
 0x497   : > { %5770 = vmatmul.bf16.gmra.mxu3 %v7272_v29  ;;  %v10690_v29 = vld [vmem:[#allocation14_spill] sm:$0xff] }
 0x499   : > { %5686 = vmatmul.bf16.gmra.mxu2 %v10689_v22 }
 0x49a   : > { %v5731_v37 = vpop.f32.mrf.mxu3 }
 0x49b   : > { %v5732_v26 = vadd.f32 %v5731_v37, %v5643_v38  ;;  %v5588_v53 = vpop.f32.mrf.mxu1 }
 0x49c   : > { %v10145_v32 = vadd.f32 %v5588_v53, %v9993_v35  ;;  %v5647_v5 = vpop.f32.mrf.mxu2 }
 0x49d   : > { %v10149_v15 = vadd.f32 %v5820_v27, %v5732_v26  ;;  %v5648_v51 = vadd.f32 %v5647_v5, %v10039_v31  ;;  %v5827_v31 = vpop.f32.mrf.mxu0  ;;  %v7274_v5 = vld [vmem:[#allocation3 + $0x90] sm:$0xff] }
 0x49e   : > { %5627 = vmatmul.bf16.gmra.mxu1 %v10147_v1 }
 0x4a1   : > { %5869 = vmatmul.bf16.gmra.mxu0 %v9775_v9 }
 0x4a2   : > { %v5733_v60 = vpop.f32.mrf.mxu3 }
 0x4a3   : > { %v5734_v38 = vadd.f32 %v5733_v60, %v5645_v43  ;;  %v5590_v48 = vpop.f32.mrf.mxu1  ;;  %v10691_v60 = vld [vmem:[#allocation16_spill] sm:$0xff] }
 0x4a4   : > { %v10155_v33 = vadd.f32 %v5590_v48, %v10003_v8  ;;  %v5649_v34 = vpop.f32.mrf.mxu2 }
 0x4a5   : > { %v10157_v35 = vadd.f32 %v5822_v13, %v5734_v38  ;;  %v5650_v27 = vadd.f32 %v5649_v34, %v10047_v16  ;;  %v5830_v53 = vpop.f32.mrf.mxu0 }
 0x4a7   : > { %5775 = vmatmul.bf16.gmra.mxu3 %v7273_v50 }
 0x4a9   : > { %5691 = vmatmul.bf16.gmra.mxu2 %v10690_v29 }
 0x4aa   : > { %v5736_v4 = vpop.f32.mrf.mxu3 }
 0x4ab   : > { %v5737_v19 = vadd.f32 %v5736_v4, %v5648_v51  ;;  %v5593_v10 = vpop.f32.mrf.mxu1 }
 0x4ac   : > { %v10162_v9 = vadd.f32 %v5593_v10, %v10009_v46  ;;  %v5652_v8 = vpop.f32.mrf.mxu2 }
 0x4ad   : > { %v10164_v43 = vadd.f32 %v5825_v57, %v5737_v19  ;;  %v5653_v13 = vadd.f32 %v5652_v8, %v10054_v52  ;;  %v5832_v34 = vpop.f32.mrf.mxu0 }
 0x4ae   : > { %5908 = vmatmul.bf16.vlgmr.msra.gmra.mxu1 %v10670_v6 }
 0x4b1   : > { %5874 = vmatmul.bf16.gmra.mxu0 %v10677_v55 }
 0x4b2   : > { %v5738_v30 = vpop.f32.mrf.mxu3 }
 0x4b3   : > { %v5739_v16 = vadd.f32 %v5738_v30, %v5650_v27  ;;  %v5595_v37 = vpop.f32.mrf.mxu1 }
 0x4b4   : > { %v10170_v26 = vadd.f32 %v5595_v37, %v10016_v24  ;;  %v5654_v46 = vpop.f32.mrf.mxu2 }
 0x4b5   : > { %v10172_v7 = vadd.f32 %v5827_v31, %v5739_v16  ;;  %v5655_v51 = vadd.f32 %v5654_v46, %v10065_v12  ;;  %v7275_v31 = vld [vmem:[#allocation3 + $0x9c] sm:$0xff]  ;;  %v5835_v8 = vpop.f32.mrf.mxu0 }
 0x4b7   : > { %5780 = vmatmul.bf16.gmra.mxu3 %v7274_v5 }
 0x4b9   : > { %5696 = vmatmul.bf16.gmra.mxu2 %v10691_v60 }
 0x4ba   : > { %v5741_v57 = vpop.f32.mrf.mxu3 }
 0x4bb   : > { %v5742_v6 = vadd.f32 %v5741_v57, %v5653_v13  ;;  %v5598_v52 = vpop.f32.mrf.mxu1 }
 0x4bc   : > { %v10177_v55 = vadd.f32 %v5598_v52, %v10023_v47  ;;  %v5657_v24 = vpop.f32.mrf.mxu2 }
 0x4bd   : > { %v10179_v38 = vadd.f32 %v5830_v53, %v5742_v6  ;;  %v5658_v48 = vadd.f32 %v5657_v24, %v10072_v63  ;;  %v10692_v63 = vld [vmem:[#allocation19_spill] sm:$0xff]  ;;  %v5837_v53 = vpop.f32.mrf.mxu0  ;;  %v10216_v24 = vld [vmem:[#allocation3 + $0xcc] sm:$0xf] }
 0x4be   : > { %5913 = vmatmul.bf16.gmra.mxu1 %v10671_v49 }
 0x4c1   : > { %5879 = vmatmul.bf16.gmra.mxu0 %v10682_v40 }
 0x4c2   : > { %v5743_v50 = vpop.f32.mrf.mxu3 }
 0x4c3   : > { %v5744_v12 = vadd.f32 %v5743_v50, %v5655_v51  ;;  %v5600_v27 = vpop.f32.mrf.mxu1  ;;  %v7276_v51 = vld [vmem:[#allocation3 + $0xa8] sm:$0xff] }
 0x4c4   : > { %v10185_v4 = vadd.f32 %v5600_v27, %v10034_v28  ;;  %v5659_v47 = vpop.f32.mrf.mxu2 }
 0x4c5   : > { %v10187_v19 = vadd.f32 %v5832_v34, %v5744_v12  ;;  %v5660_v10 = vadd.f32 %v5659_v47, %v10080_v18 }
 0x4c7   : > { %5785 = vmatmul.bf16.gmra.mxu3 %v7275_v31 }
 0x4c9   : > { %5701 = vmatmul.bf16.gmra.mxu2 %v10692_v63 }
 0x4ca   : > { %v5746_v49 = vpop.f32.mrf.mxu3 }
 0x4cb   : > { %v5747_v13 = vadd.f32 %v5746_v49, %v5658_v48  ;;  %v5603_v30 = vpop.f32.mrf.mxu1  ;;  %v10220_v48 = vld [vmem:[#allocation3 + $0xd4] sm:$0x1] }
 0x4cc   : > { %v10192_v40 = vadd.f32 %v5603_v30, %v10041_v11  ;;  %v4526_v50 = vshll.u32 %v10220_v48, 16 }
 0x4cd   : > { %v10194_v16 = vadd.f32 %v5835_v8, %v5747_v13 }
 0x4ce   : > { %5918 = vmatmul.bf16.gmra.mxu1 %v10672_v14  ;;  %v4528_v8 = vrot.slane %v4526_v50, 5  ;;  %v10695_v50 = vld [vmem:[#allocation26_spill] sm:$0xff] }
 0x4d1   : > { %5884 = vmatmul.bf16.gmra.mxu0 %v9963_v39 }
 0x4d2   : > { %v5748_v28 = vpop.f32.mrf.mxu3 }
 0x4d3   : > { %v5749_v37 = vadd.f32 %v5748_v28, %v5660_v10  ;;  %v5605_v46 = vpop.f32.mrf.mxu1 }
 0x4d4   : > { %v10199_v18 = vadd.f32 %v5605_v46, %v10049_v25  ;;  %v7277_v25 = vld [vmem:[#allocation3 + $0xb4] sm:$0xff] }
 0x4d5   : > { %v10201_v5 = vadd.f32 %v5837_v53, %v5749_v37  ;;  %v10693_v53 = vld [vmem:[#allocation22_spill] sm:$0xff] }
 0x4d7   : > { %5790 = vmatmul.bf16.gmra.mxu3 %v7276_v51 }
 0x4d9   : > { %5706 = vmatmul.bf16.gmra.mxu2 %v9955_v21 }
 0x4db   : > { %v5608_v11 = vpop.f32.mrf.mxu1 }
 0x4dc   : > { %v10205_v57 = vadd.f32 %v5608_v11, %v10056_v3  ;;  %v10218_v3 = vld [vmem:[#allocation3 + $0xd0] sm:$0xf] }
 0x4dd   : > { %v4520_v34 = vshrl.u32 %v10218_v3, 16 }
 0x4de   : > { %5923 = vmatmul.bf16.gmra.mxu1 %v10673_v41  ;;  %v4507_v41 = vshrl.u32 %v10216_v24, 16 }
 0x4df   : > { %v4522_v47 = vrot.slane %v4520_v34, 4 }
 0x4e1   : > { %5889 = vmatmul.bf16.gmra.mxu0 %v10147_v1  ;;  %v4510_v1 = vshll.u32 %v10216_v24, 16 }
 0x4e3   : > { %v5610_v39 = vpop.f32.mrf.mxu1  ;;  %v4512_v12 = vrot.slane %v4510_v1, 5 }
 0x4e4   : > { %v10210_v14 = vadd.f32 %v5610_v39, %v10067_v54  ;;  %v4516_v54 = vshll.u32 %v10218_v3, 16  ;;  %v10694_v39 = vld [vmem:[#allocation41_spill] sm:$0xff] }
 0x4e6   : > { %v4518_v27 = vrot.slane %v4516_v54, 5 }
 0x4e7   : > { %5795 = vmatmul.bf16.gmra.mxu3 %v7277_v25 }
 0x4e8   : > { %v4523_v10 = vor.u32 %v4522_v47, %v4518_v27 }
 0x4e9   : > { %5711 = vmatmul.bf16.gmra.mxu2 %v9982_v56 }
 0x4ea   : > { %v4524_v30 = vrot.slane %v4523_v10, 4 }
 0x4eb   : > { %v5613_v6 = vpop.f32.mrf.mxu1 }
 0x4ec   : > { %v10214_v52 = vadd.f32 %v5613_v6, %v10074_v17  ;;  %v4509_v17 = vrot.slane %v4507_v41, 4 }
 0x4ee   : > { %5928 = vmatmul.bf16.gmra.mxu1 %v10674_v2  ;;  %v4513_v31 = vor.u32 %v4512_v12, %v4509_v17  ;;  %v4529_v2 = vsel %vm7596_vm4, %v4524_v30, %v4528_v8  ;;  %v10696_v12 = vld [vmem:[#allocation38_spill] sm:$0xff]  ;;  %v5662_v8 = vpop.f32.mrf.mxu2 }
 0x4ef   : > { %v4749_v51 = vunpack.c.l.b16 %v4529_v2 }
 0x4f0   : > { %v4514_v13 = vrot.slane %v4513_v31, 4 }
 0x4f2   : > { %v4519_v37 = vsel %vm7596_vm4, %v4514_v13, %v4518_v27  ;;  %v5751_v13 = vpop.f32.mrf.mxu3 }
 0x4f3   : > { %v5615_v49 = vpop.f32.mrf.mxu1  ;;  %v4748_v46 = vunpack.c.l.b16 %v4519_v37 }
 0x4f4   : > { %v10229_v28 = vadd.f32 %v5615_v49, %v10082_v44  ;;  %v7151_v44 = vld [vmem:[#allocation3 + $0xcc] sm:$0xff] }
 0x4f5   : > { %v4750_v11 = vpack.c.b16 %v4749_v51, %v4748_v46 }
 0x4f6   : > { %v5664_v51 = vpop.f32.mrf.mxu2 }
 0x4f7   : > { %5800 = vmatmul.bf16.gmra.mxu3 %v10693_v53  ;;  %5894 = vmatmul.bf16.gmra.mxu0 %v4750_v11 }
 0x4f9   : > { %5716 = vmatmul.bf16.gmra.mxu2 %v10694_v39 }
 0x4fb   : > { %v5618_v25 = vpop.f32.mrf.mxu1 }
 0x4fc   : > { %v10238_v6 = vadd.f32 %v5618_v25, %v10089_v0  ;;  %v5753_v25 = vpop.f32.mrf.mxu3 }
 0x4fe   : > { %5933 = vmatmul.bf16.gmra.mxu1 %v10675_v58 }
 0x503   : > { %v5620_v41 = vpop.f32.mrf.mxu1 }
 0x504   : > { %v10242_v42 = vadd.f32 %v5620_v41, %v10100_v61 }
 0x507   : > { %5805 = vmatmul.bf16.gmra.mxu3 %v7151_v44 }
 0x50b   : > { %v5623_v1 = vpop.f32.mrf.mxu1 }
 0x50c   : > { %v10245_v54 = vadd.f32 %v5623_v1, %v10107_v23  ;;  %v10261_v23 = vld [vmem:[%s10454_s5] ss:$0 sm:$0xff] }
 0x50e   : > { %5938 = vmatmul.bf16.gmra.mxu1 %v10679_v20 }
 0x513   : > { %v5625_v34 = vpop.f32.mrf.mxu1 }
 0x514   : > { %v10249_v0 = vadd.f32 %v5625_v34, %v10695_v50 }
 0x51b   : > { %v5628_v17 = vpop.f32.mrf.mxu1 }
 0x51c   : > { %v10252_v58 = vadd.f32 %v5628_v17, %v10126_v59  ;;  %v10268_v59 = vld [vmem:[%s10455_s6] ss:$0 sm:$0xff]  ;;  %v5667_v17 = vpop.f32.mrf.mxu2 }
 0x51e   : > { %5943 = vmatmul.bf16.gmra.mxu1 %v10696_v12  ;;  %v5756_v12 = vpop.f32.mrf.mxu3 }
 0x523   : > { %v5630_v61 = vpop.f32.mrf.mxu1 }
 0x524   : > { %v10256_v27 = vadd.f32 %v5630_v61, %v10136_v62 }
 0x52b   : > { %v5909_v20 = vpop.f32.mrf.mxu1 }
 0x52c   : > { %v5910_v47 = vadd.f32 %v5909_v20, %v10149_v15 }
 0x52e   : > { %v5993_v31 = vmul.f32 %v10261_v23, %v5910_v47  ;;  %5948 = vmatmul.bf16.gmra.mxu1 %v10689_v22  ;;  %v5840_v22 = vpop.f32.mrf.mxu0 }
 0x530   : > { %v6029_v62 = vadd.f32 %v10268_v59, %v5993_v31 }
 0x532   : > { %v6061_v10 = vmax.f32 %v6029_v62, 0.0  ;;  %v5669_v62 = vpop.f32.mrf.mxu2 }
 0x533   : > { %v5911_v49 = vpop.f32.mrf.mxu1 }
 0x534   : > { %6093 = vst [vmem:[%s10275_s29] sm:$0xff] %v6061_v10  ;;  %v5912_v15 = vadd.f32 %v5911_v49, %v10157_v35  ;;  %v5758_v49 = vpop.f32.mrf.mxu3 }
 0x536   : > { %v5994_v30 = vmul.f32 %v10261_v23, %v5912_v15  ;;  %v5842_v34 = vpop.f32.mrf.mxu0 }
 0x538   : > { %v6030_v37 = vadd.f32 %v10268_v59, %v5994_v30 }
 0x53a   : > { %v6062_v2 = vmax.f32 %v6030_v37, 0.0 }
 0x53b   : > { %v5914_v53 = vpop.f32.mrf.mxu1 }
 0x53c   : > { %6094 = vst [vmem:[%s10275_s29 + $0x8] sm:$0xff] %v6062_v2  ;;  %v5915_v46 = vadd.f32 %v5914_v53, %v10164_v43 }
 0x53e   : > { %v5995_v11 = vmul.f32 %v10261_v23, %v5915_v46  ;;  %5953 = vmatmul.bf16.gmra.mxu1 %v10690_v29  ;;  %v5845_v31 = vpop.f32.mrf.mxu0  ;;  %v5672_v46 = vpop.f32.mrf.mxu2 }
 0x540   : > { %v6031_v35 = vadd.f32 %v10268_v59, %v5995_v11 }
 0x542   : > { %v6063_v44 = vmax.f32 %v6031_v35, 0.0  ;;  %v5761_v35 = vpop.f32.mrf.mxu3 }
 0x543   : > { %v5916_v41 = vpop.f32.mrf.mxu1 }
 0x544   : > { %6095 = vst [vmem:[%s10275_s29 + $0x10] sm:$0xff] %v6063_v44  ;;  %v5917_v1 = vadd.f32 %v5916_v41, %v10172_v7 }
 0x546   : > { %v5996_v50 = vmul.f32 %v10261_v23, %v5917_v1  ;;  %v5847_v2 = vpop.f32.mrf.mxu0 }
 0x548   : > { %v6032_v43 = vadd.f32 %v10268_v59, %v5996_v50 }
 0x54a   : > { %v6064_v61 = vmax.f32 %v6032_v43, 0.0  ;;  %v10697_v43 = vld [vmem:[#allocation10_spill] sm:$0xff] }
 0x54b   : > { %v5919_v20 = vpop.f32.mrf.mxu1 }
 0x54c   : > { %6096 = vst [vmem:[%s10275_s29 + $0x18] sm:$0xff] %v6064_v61  ;;  %v5920_v29 = vadd.f32 %v5919_v20, %v10179_v38  ;;  %v5663_v61 = vadd.f32 %v5662_v8, %v10697_v43 }
 0x54e   : > { %v5997_v47 = vmul.f32 %v10261_v23, %v5920_v29  ;;  %5958 = vmatmul.bf16.gmra.mxu1 %v10691_v60  ;;  %v5850_v1 = vpop.f32.mrf.mxu0  ;;  %v5674_v29 = vpop.f32.mrf.mxu2 }
 0x550   : > { %v6033_v7 = vadd.f32 %v10268_v59, %v5997_v47  ;;  %v5752_v47 = vadd.f32 %v5751_v13, %v5663_v61 }
 0x552   : > { %v6065_v10 = vmax.f32 %v6033_v7, 0.0  ;;  %v5763_v7 = vpop.f32.mrf.mxu3 }
 0x553   : > { %v5921_v15 = vpop.f32.mrf.mxu1 }
 0x554   : > { %6097 = vst [vmem:[%s10275_s29 + $0x20] sm:$0xff] %v6065_v10  ;;  %v5922_v30 = vadd.f32 %v5921_v15, %v10187_v19 }
 0x556   : > { %v5998_v37 = vmul.f32 %v10261_v23, %v5922_v30 }
 0x558   : > { %v6034_v38 = vadd.f32 %v10268_v59, %v5998_v37  ;;  %v10698_v37 = vld [vmem:[#allocation13_spill] sm:$0xff] }
 0x55a   : > { %v6066_v53 = vmax.f32 %v6034_v38, 0.0  ;;  %v5665_v38 = vadd.f32 %v5664_v51, %v10698_v37 }
 0x55b   : > { %v5924_v11 = vpop.f32.mrf.mxu1 }
 0x55c   : > { %6098 = vst [vmem:[%s10275_s29 + $0x28] sm:$0xff] %v6066_v53  ;;  %v5925_v60 = vadd.f32 %v5924_v11, %v10194_v16  ;;  %v5852_v11 = vpop.f32.mrf.mxu0  ;;  %v5754_v8 = vadd.f32 %v5753_v25, %v5665_v38 }
 0x55e   : > { %v5999_v44 = vmul.f32 %v10261_v23, %v5925_v60  ;;  %5963 = vmatmul.bf16.gmra.mxu1 %v10692_v63  ;;  %v5841_v63 = vadd.f32 %v5840_v22, %v5752_v47 }
 0x560   : > { %v6035_v41 = vadd.f32 %v10268_v59, %v5999_v44  ;;  %v5766_v44 = vpop.f32.mrf.mxu3 }
 0x562   : > { %v6067_v19 = vmax.f32 %v6035_v41, 0.0 }
 0x563   : > { %v5926_v50 = vpop.f32.mrf.mxu1 }
 0x564   : > { %6099 = vst [vmem:[%s10275_s29 + $0x30] sm:$0xff] %v6067_v19  ;;  %v5927_v20 = vadd.f32 %v5926_v50, %v10201_v5  ;;  %v5677_v5 = vpop.f32.mrf.mxu2  ;;  %v5843_v19 = vadd.f32 %v5842_v34, %v5754_v8  ;;  %v10699_v50 = vld [vmem:[#allocation23_spill] sm:$0xff]  ;;  %v5855_v25 = vpop.f32.mrf.mxu0 }
 0x565   : > { %v5668_v43 = vadd.f32 %v5667_v17, %v10699_v50 }
 0x566   : > { %v6000_v16 = vmul.f32 %v10261_v23, %v5927_v20 }
 0x567   : > { %v5757_v61 = vadd.f32 %v5756_v12, %v5668_v43 }
 0x568   : > { %v6036_v10 = vadd.f32 %v10268_v59, %v6000_v16 }
 0x56a   : > { %v6068_v15 = vmax.f32 %v6036_v10, 0.0  ;;  %v5846_v10 = vadd.f32 %v5845_v31, %v5757_v61 }
 0x56b   : > { %v5929_v30 = vpop.f32.mrf.mxu1 }
 0x56c   : > { %6100 = vst [vmem:[%s10275_s29 + $0x38] sm:$0xff] %v6068_v15  ;;  %v5930_v53 = vadd.f32 %v5929_v30, %v5841_v63  ;;  %v5679_v16 = vpop.f32.mrf.mxu2  ;;  %v5768_v15 = vpop.f32.mrf.mxu3  ;;  %v10700_v30 = vld [vmem:[#allocation11_spill] sm:$0xff] }
 0x56d   : > { %v5670_v37 = vadd.f32 %v5669_v62, %v10700_v30 }
 0x56e   : > { %v6001_v60 = vmul.f32 %v10261_v23, %v5930_v53  ;;  %5968 = vmatmul.bf16.gmra.mxu1 %v9955_v21  ;;  %v5857_v53 = vpop.f32.mrf.mxu0 }
 0x56f   : > { %v5759_v38 = vadd.f32 %v5758_v49, %v5670_v37 }
 0x570   : > { %v6037_v13 = vadd.f32 %v10268_v59, %v6001_v60 }
 0x571   : > { %v5848_v60 = vadd.f32 %v5847_v2, %v5759_v38  ;;  %v5675_v2 = vadd.f32 %v5674_v29, %v10134_v36  ;;  %v5678_v38 = vadd.f32 %v5677_v5, %v10145_v32  ;;  %v5680_v32 = vadd.f32 %v5679_v16, %v10155_v33 }
 0x572   : > { %v6069_v41 = vmax.f32 %v6037_v13, 0.0 }
 0x573   : > { %v5931_v22 = vpop.f32.mrf.mxu1 }
 0x574   : > { %6101 = vst [vmem:[%s10275_s29 + $0x40] sm:$0xff] %v6069_v41  ;;  %v5932_v51 = vadd.f32 %v5931_v22, %v5843_v19  ;;  %v5682_v13 = vpop.f32.mrf.mxu2  ;;  %v5673_v41 = vadd.f32 %v5672_v46, %v10124_v45  ;;  %v5771_v62 = vpop.f32.mrf.mxu3  ;;  %v5764_v46 = vadd.f32 %v5763_v7, %v5675_v2 }
 0x576   : > { %v6002_v20 = vmul.f32 %v10261_v23, %v5932_v51  ;;  %v5762_v22 = vadd.f32 %v5761_v35, %v5673_v41  ;;  %v5860_v51 = vpop.f32.mrf.mxu0  ;;  %v5853_v37 = vadd.f32 %v5852_v11, %v5764_v46  ;;  %v5683_v46 = vadd.f32 %v5682_v13, %v10162_v9 }
 0x578   : > { %v6038_v47 = vadd.f32 %v10268_v59, %v6002_v20  ;;  %v4535_v20 = vrot.slane %v10218_v3, 5  ;;  %v5772_v33 = vadd.f32 %v5771_v62, %v5683_v46 }
 0x57a   : > { %v6070_v21 = vmax.f32 %v6038_v47, 0.0 }
 0x57b   : > { %v5934_v63 = vpop.f32.mrf.mxu1 }
 0x57c   : > { %6102 = vst [vmem:[%s10275_s29 + $0x48] sm:$0xff] %v6070_v21  ;;  %v5935_v34 = vadd.f32 %v5934_v63, %v5846_v10  ;;  %v5684_v45 = vpop.f32.mrf.mxu2  ;;  %v5773_v35 = vpop.f32.mrf.mxu3  ;;  %v6605_v10 = vrot.slane %v10216_v24, 9  ;;  %v4537_v63 = vrot.slane %v4535_v20, 4 }
 0x57e   : > { %v6003_v17 = vmul.f32 %v10261_v23, %v5935_v34  ;;  %5973 = vmatmul.bf16.gmra.mxu1 %v9982_v56  ;;  %v5851_v56 = vadd.f32 %v5850_v1, %v5762_v22  ;;  %v4538_v1 = vrot.slane %v10220_v48, 5  ;;  %v4536_v34 = vsel %vm8129_vm13, %v6605_v10, %v4535_v20  ;;  %v5862_v24 = vpop.f32.mrf.mxu0 }
 0x580   : > { %v6039_v12 = vadd.f32 %v10268_v59, %v6003_v17  ;;  %v4539_v7 = vsel %vm8129_vm13, %v4537_v63, %v4538_v1  ;;  %v5767_v17 = vadd.f32 %v5766_v44, %v5678_v38  ;;  %v5861_v1 = vadd.f32 %v5860_v51, %v5772_v33 }
 0x582   : > { %v6071_v8 = vmax.f32 %v6039_v12, 0.0  ;;  %v4752_v12 = vunpack.c.l.b16 %v4536_v34 }
 0x583   : > { %v5936_v31 = vpop.f32.mrf.mxu1 }
 0x584   : > { %6103 = vst [vmem:[%s10275_s29 + $0x50] sm:$0xff] %v6071_v8  ;;  %v5937_v19 = vadd.f32 %v5936_v31, %v5848_v60  ;;  %v4753_v8 = vunpack.c.l.b16 %v4539_v7  ;;  %v5687_v60 = vpop.f32.mrf.mxu2  ;;  %v5776_v31 = vpop.f32.mrf.mxu3 }
 0x586   : > { %v6004_v49 = vmul.f32 %v10261_v23, %v5937_v19  ;;  %v5856_v19 = vadd.f32 %v5855_v25, %v5767_v17  ;;  %v4754_v22 = vpack.c.b16 %v4753_v8, %v4752_v12 }
 0x588   : > { %v6040_v50 = vadd.f32 %v10268_v59, %v6004_v49 }
 0x58a   : > { %v6072_v43 = vmax.f32 %v6040_v50, 0.0  ;;  %v5769_v50 = vadd.f32 %v5768_v15, %v5680_v32 }
 0x58b   : > { %v5939_v61 = vpop.f32.mrf.mxu1 }
 0x58c   : > { %6104 = vst [vmem:[%s10275_s29 + $0x58] sm:$0xff] %v6072_v43  ;;  %v5940_v47 = vadd.f32 %v5939_v61, %v5851_v56  ;;  %v5865_v43 = vpop.f32.mrf.mxu0  ;;  %v5689_v61 = vpop.f32.mrf.mxu2  ;;  %v5858_v2 = vadd.f32 %v5857_v53, %v5769_v50 }
 0x58e   : > { %v6005_v21 = vmul.f32 %v10261_v23, %v5940_v47  ;;  %5978 = vmatmul.bf16.gmra.mxu1 %v10694_v39  ;;  %v5778_v47 = vpop.f32.mrf.mxu3 }
 0x590   : > { %v6041_v30 = vadd.f32 %v10268_v59, %v6005_v21 }
 0x592   : > { %v6073_v3 = vmax.f32 %v6041_v30, 0.0 }
 0x593   : > { %v5941_v36 = vpop.f32.mrf.mxu1 }
 0x594   : > { %6105 = vst [vmem:[%s10275_s29 + $0x60] sm:$0xff] %v6073_v3  ;;  %v5942_v39 = vadd.f32 %v5941_v36, %v5853_v37  ;;  %v5867_v10 = vpop.f32.mrf.mxu0  ;;  %v5692_v30 = vpop.f32.mrf.mxu2  ;;  %v5685_v37 = vadd.f32 %v5684_v45, %v10170_v26 }
 0x596   : > { %v6006_v48 = vmul.f32 %v10261_v23, %v5942_v39  ;;  %v5781_v36 = vpop.f32.mrf.mxu3  ;;  %v5774_v29 = vadd.f32 %v5773_v35, %v5685_v37  ;;  %v5688_v39 = vadd.f32 %v5687_v60, %v10177_v55 }
 0x598   : > { %v6042_v11 = vadd.f32 %v10268_v59, %v6006_v48  ;;  %v5863_v34 = vadd.f32 %v5862_v24, %v5774_v29  ;;  %v5777_v48 = vadd.f32 %v5776_v31, %v5688_v39 }
 0x59a   : > { %v6074_v41 = vmax.f32 %v6042_v11, 0.0  ;;  %v5866_v8 = vadd.f32 %v5865_v43, %v5777_v48 }
 0x59b   : > { %v5944_v49 = vpop.f32.mrf.mxu1 }
 0x59c   : > { %6106 = vst [vmem:[%s10275_s29 + $0x68] sm:$0xff] %v6074_v41  ;;  %v5945_v5 = vadd.f32 %v5944_v49, %v5856_v19  ;;  %v5870_v7 = vpop.f32.mrf.mxu0  ;;  %v5694_v17 = vpop.f32.mrf.mxu2  ;;  %v5690_v41 = vadd.f32 %v5689_v61, %v10185_v4 }
 0x59d   : > { %v5695_v33 = vadd.f32 %v5694_v17, %v10199_v18 }
 0x59e   : > { %v6007_v44 = vmul.f32 %v10261_v23, %v5945_v5  ;;  %5983 = vmatmul.bf16.gmra.mxu1 %v4754_v22  ;;  %v5783_v45 = vpop.f32.mrf.mxu3  ;;  %v5779_v22 = vadd.f32 %v5778_v47, %v5690_v41 }
 0x5a0   : > { %v6043_v56 = vadd.f32 %v10268_v59, %v6007_v44  ;;  %v5868_v5 = vadd.f32 %v5867_v10, %v5779_v22  ;;  %v5693_v44 = vadd.f32 %v5692_v30, %v10192_v40 }
 0x5a2   : > { %v6075_v20 = vmax.f32 %v6043_v56, 0.0  ;;  %v5782_v56 = vadd.f32 %v5781_v36, %v5693_v44 }
 0x5a3   : > { %v5946_v25 = vpop.f32.mrf.mxu1 }
 0x5a4   : > { %6107 = vst [vmem:[%s10275_s29 + $0x70] sm:$0xff] %v6075_v20  ;;  %v5947_v21 = vadd.f32 %v5946_v25, %v5858_v2  ;;  %v5872_v19 = vpop.f32.mrf.mxu0  ;;  %v5697_v60 = vpop.f32.mrf.mxu2  ;;  %v5871_v25 = vadd.f32 %v5870_v7, %v5782_v56 }
 0x5a6   : > { %v6008_v16 = vmul.f32 %v10261_v23, %v5947_v21  ;;  %v5786_v49 = vpop.f32.mrf.mxu3 }
 0x5a8   : > { %v6044_v15 = vadd.f32 %v10268_v59, %v6008_v16 }
 0x5aa   : > { %v6076_v63 = vmax.f32 %v6044_v15, 0.0  ;;  %v5784_v15 = vadd.f32 %v5783_v45, %v5695_v33 }
 0x5ab   : > { %v5949_v3 = vpop.f32.mrf.mxu1 }
 0x5ac   : > { %6108 = vst [vmem:[%s10275_s29 + $0x78] sm:$0xff] %v6076_v63  ;;  %v5950_v53 = vadd.f32 %v5949_v3, %v5861_v1  ;;  %v5875_v61 = vpop.f32.mrf.mxu0  ;;  %v5699_v2 = vpop.f32.mrf.mxu2  ;;  %v5873_v30 = vadd.f32 %v5872_v19, %v5784_v15 }
 0x5ad   : > { %v5700_v39 = vadd.f32 %v5699_v2, %v10210_v14 }
 0x5ae   : > { %v6009_v9 = vmul.f32 %v10261_v23, %v5950_v53  ;;  %v5788_v46 = vpop.f32.mrf.mxu3  ;;  %v5698_v53 = vadd.f32 %v5697_v60, %v10205_v57 }
 0x5af   : > { %v5789_v48 = vadd.f32 %v5788_v46, %v5700_v39 }
 0x5b0   : > { %v6045_v13 = vadd.f32 %v10268_v59, %v6009_v9  ;;  %v5787_v9 = vadd.f32 %v5786_v49, %v5698_v53 }
 0x5b2   : > { %v6077_v62 = vmax.f32 %v6045_v13, 0.0 }
 0x5b3   : > { %v5951_v38 = vpop.f32.mrf.mxu1 }
 0x5b4   : > { %6109 = vst [vmem:[%s10275_s29 + $0x80] sm:$0xff] %v6077_v62  ;;  %v5952_v51 = vadd.f32 %v5951_v38, %v5863_v34  ;;  %v5877_v63 = vpop.f32.mrf.mxu0  ;;  %v5702_v3 = vpop.f32.mrf.mxu2  ;;  %v5876_v34 = vadd.f32 %v5875_v61, %v5787_v9 }
 0x5b6   : > { %v6010_v26 = vmul.f32 %v10261_v23, %v5952_v51  ;;  %v5791_v29 = vpop.f32.mrf.mxu3 }
 0x5b8   : > { %v6046_v35 = vadd.f32 %v10268_v59, %v6010_v26 }
 0x5ba   : > { %v6078_v12 = vmax.f32 %v6046_v35, 0.0 }
 0x5bb   : > { %v5954_v11 = vpop.f32.mrf.mxu1 }
 0x5bc   : > { %6110 = vst [vmem:[%s10275_s29 + $0x88] sm:$0xff] %v6078_v12  ;;  %v5955_v24 = vadd.f32 %v5954_v11, %v5866_v8  ;;  %v5880_v7 = vpop.f32.mrf.mxu0  ;;  %v5704_v17 = vpop.f32.mrf.mxu2  ;;  %v5878_v12 = vadd.f32 %v5877_v63, %v5789_v48  ;;  %v5703_v11 = vadd.f32 %v5702_v3, %v10214_v52 }
 0x5be   : > { %v6011_v55 = vmul.f32 %v10261_v23, %v5955_v24  ;;  %v5793_v26 = vpop.f32.mrf.mxu3  ;;  %v5792_v19 = vadd.f32 %v5791_v29, %v5703_v11 }
 0x5c0   : > { %v6047_v31 = vadd.f32 %v10268_v59, %v6011_v55  ;;  %v5881_v49 = vadd.f32 %v5880_v7, %v5792_v19 }
 0x5c2   : > { %v6079_v32 = vmax.f32 %v6047_v31, 0.0 }
 0x5c3   : > { %v5956_v50 = vpop.f32.mrf.mxu1 }
 0x5c4   : > { %6111 = vst [vmem:[%s10275_s29 + $0x90] sm:$0xff] %v6079_v32  ;;  %v5957_v43 = vadd.f32 %v5956_v50, %v5868_v5  ;;  %v5882_v24 = vpop.f32.mrf.mxu0  ;;  %v5707_v22 = vpop.f32.mrf.mxu2  ;;  %v5705_v5 = vadd.f32 %v5704_v17, %v10229_v28 }
 0x5c6   : > { %v6012_v4 = vmul.f32 %v10261_v23, %v5957_v43  ;;  %v5796_v60 = vpop.f32.mrf.mxu3  ;;  %v5794_v44 = vadd.f32 %v5793_v26, %v5705_v5 }
 0x5c8   : > { %v6048_v20 = vadd.f32 %v10268_v59, %v6012_v4 }
 0x5ca   : > { %v6080_v47 = vmax.f32 %v6048_v20, 0.0  ;;  %v5883_v20 = vadd.f32 %v5882_v24, %v5794_v44 }
 0x5cb   : > { %v5959_v21 = vpop.f32.mrf.mxu1 }
 0x5cc   : > { %6112 = vst [vmem:[%s10275_s29 + $0x98] sm:$0xff] %v6080_v47  ;;  %v5960_v16 = vadd.f32 %v5959_v21, %v5871_v25  ;;  %v5885_v43 = vpop.f32.mrf.mxu0  ;;  %v5709_v4 = vpop.f32.mrf.mxu2  ;;  %v5708_v25 = vadd.f32 %v5707_v22, %v10238_v6 }
 0x5ce   : > { %v6013_v40 = vmul.f32 %v10261_v23, %v5960_v16  ;;  %v5798_v2 = vpop.f32.mrf.mxu3  ;;  %v5797_v21 = vadd.f32 %v5796_v60, %v5708_v25 }
 0x5d0   : > { %v6049_v10 = vadd.f32 %v10268_v59, %v6013_v40  ;;  %v5886_v40 = vadd.f32 %v5885_v43, %v5797_v21 }
 0x5d2   : > { %v6081_v1 = vmax.f32 %v6049_v10, 0.0 }
 0x5d3   : > { %v5961_v37 = vpop.f32.mrf.mxu1 }
 0x5d4   : > { %6113 = vst [vmem:[%s10275_s29 + $0xa0] sm:$0xff] %v6081_v1  ;;  %v5962_v36 = vadd.f32 %v5961_v37, %v5873_v30  ;;  %v5887_v16 = vpop.f32.mrf.mxu0  ;;  %v5712_v10 = vpop.f32.mrf.mxu2  ;;  %v5710_v1 = vadd.f32 %v5709_v4, %v10242_v42 }
 0x5d6   : > { %v6014_v18 = vmul.f32 %v10261_v23, %v5962_v36  ;;  %v5801_v3 = vpop.f32.mrf.mxu3  ;;  %v5799_v37 = vadd.f32 %v5798_v2, %v5710_v1 }
 0x5d8   : > { %v6050_v13 = vadd.f32 %v10268_v59, %v6014_v18  ;;  %v5888_v29 = vadd.f32 %v5887_v16, %v5799_v37 }
 0x5da   : > { %v6082_v62 = vmax.f32 %v6050_v13, 0.0  ;;  %v5713_v13 = vadd.f32 %v5712_v10, %v10245_v54 }
 0x5db   : > { %v5964_v38 = vpop.f32.mrf.mxu1 }
 0x5dc   : > { %6114 = vst [vmem:[%s10275_s29 + $0xa8] sm:$0xff] %v6082_v62  ;;  %v5965_v51 = vadd.f32 %v5964_v38, %v5876_v34  ;;  %v5890_v9 = vpop.f32.mrf.mxu0  ;;  %v5714_v34 = vpop.f32.mrf.mxu2  ;;  %v5802_v7 = vadd.f32 %v5801_v3, %v5713_v13 }
 0x5de   : > { %v6015_v57 = vmul.f32 %v10261_v23, %v5965_v51  ;;  %v5803_v38 = vpop.f32.mrf.mxu3  ;;  %v5891_v17 = vadd.f32 %v5890_v9, %v5802_v7 }
 0x5e0   : > { %v6051_v45 = vadd.f32 %v10268_v59, %v6015_v57  ;;  %v5715_v57 = vadd.f32 %v5714_v34, %v10249_v0 }
 0x5e2   : > { %v6083_v35 = vmax.f32 %v6051_v45, 0.0 }
 0x5e3   : > { %v5966_v8 = vpop.f32.mrf.mxu1 }
 0x5e4   : > { %6115 = vst [vmem:[%s10275_s29 + $0xb0] sm:$0xff] %v6083_v35  ;;  %v5967_v41 = vadd.f32 %v5966_v8, %v5878_v12  ;;  %v5892_v45 = vpop.f32.mrf.mxu0  ;;  %v5804_v35 = vadd.f32 %v5803_v38, %v5715_v57  ;;  %v5717_v12 = vpop.f32.mrf.mxu2 }
 0x5e6   : > { %v6016_v14 = vmul.f32 %v10261_v23, %v5967_v41  ;;  %v5806_v11 = vpop.f32.mrf.mxu3  ;;  %v5893_v24 = vadd.f32 %v5892_v45, %v5804_v35 }
 0x5e8   : > { %v6052_v55 = vadd.f32 %v10268_v59, %v6016_v14  ;;  %v5718_v14 = vadd.f32 %v5717_v12, %v10252_v58 }
 0x5ea   : > { %v6084_v31 = vmax.f32 %v6052_v55, 0.0  ;;  %v5807_v0 = vadd.f32 %v5806_v11, %v5718_v14 }
 0x5eb   : > { %v5969_v32 = vpop.f32.mrf.mxu1 }
 0x5ec   : > { %6116 = vst [vmem:[%s10275_s29 + $0xb8] sm:$0xff] %v6084_v31  ;;  %v5970_v50 = vadd.f32 %v5969_v32, %v5881_v49  ;;  %v5895_v55 = vpop.f32.mrf.mxu0  ;;  %v5719_v49 = vpop.f32.mrf.mxu2 }
 0x5ed   : > { %v5896_v32 = vadd.f32 %v5895_v55, %v5807_v0 }
 0x5ee   : > { %v6017_v52 = vmul.f32 %v10261_v23, %v5970_v50  ;;  %v5808_v50 = vpop.f32.mrf.mxu3 }
 0x5f0   : > { %v6053_v56 = vadd.f32 %v10268_v59, %v6017_v52  ;;  %v5720_v52 = vadd.f32 %v5719_v49, %v10256_v27 }
 0x5f2   : > { %v6085_v61 = vmax.f32 %v6053_v56, 0.0  ;;  %v5809_v43 = vadd.f32 %v5808_v50, %v5720_v52 }
 0x5f3   : > { %v5971_v47 = vpop.f32.mrf.mxu1 }
 0x5f4   : > { %6117 = vst [vmem:[%s10275_s29 + $0xc0] sm:$0xff] %v6085_v61  ;;  %v5972_v46 = vadd.f32 %v5971_v47, %v5883_v20  ;;  %v5897_v4 = vpop.f32.mrf.mxu0 }
 0x5f5   : > { %v5898_v20 = vadd.f32 %v5897_v4, %v5809_v43 }
 0x5f6   : > { %v6018_v28 = vmul.f32 %v10261_v23, %v5972_v46 }
 0x5f8   : > { %v6054_v33 = vadd.f32 %v10268_v59, %v6018_v28 }
 0x5fa   : > { %v6086_v15 = vmax.f32 %v6054_v33, 0.0 }
 0x5fb   : > { %v5974_v63 = vpop.f32.mrf.mxu1 }
 0x5fc   : > { %6118 = vst [vmem:[%s10275_s29 + $0xc8] sm:$0xff] %v6086_v15  ;;  %v5975_v30 = vadd.f32 %v5974_v63, %v5886_v40 }
 0x5fe   : > { %v6019_v6 = vmul.f32 %v10261_v23, %v5975_v30 }
 0x600   : > { %v6055_v53 = vadd.f32 %v10268_v59, %v6019_v6 }
 0x602   : > { %v6087_v36 = vmax.f32 %v6055_v53, 0.0 }
 0x603   : > { %v5976_v18 = vpop.f32.mrf.mxu1 }
 0x604   : > { %6119 = vst [vmem:[%s10275_s29 + $0xd0] sm:$0xff] %v6087_v36  ;;  %v5977_v62 = vadd.f32 %v5976_v18, %v5888_v29 }
 0x606   : > { %v6020_v42 = vmul.f32 %v10261_v23, %v5977_v62 }
 0x608   : > { %v6056_v39 = vadd.f32 %v10268_v59, %v6020_v42 }
 0x60a   : > { %v6088_v51 = vmax.f32 %v6056_v39, 0.0 }
 0x60b   : > { %v5979_v48 = vpop.f32.mrf.mxu1 }
 0x60c   : > { %6120 = vst [vmem:[%s10275_s29 + $0xd8] sm:$0xff] %v6088_v51  ;;  %v5980_v26 = vadd.f32 %v5979_v48, %v5891_v17 }
 0x60e   : > { %v6021_v54 = vmul.f32 %v10261_v23, %v5980_v26 }
 0x610   : > { %v6057_v8 = vadd.f32 %v10268_v59, %v6021_v54 }
 0x612   : > { %v6089_v41 = vmax.f32 %v6057_v8, 0.0 }
 0x613   : > { %v5981_v19 = vpop.f32.mrf.mxu1 }
 0x614   : > { %6121 = vst [vmem:[%s10275_s29 + $0xe0] sm:$0xff] %v6089_v41  ;;  %v5982_v22 = vadd.f32 %v5981_v19, %v5893_v24 }
 0x616   : > { %v6022_v60 = vmul.f32 %v10261_v23, %v5982_v22 }
 0x618   : > { %v6058_v31 = vadd.f32 %v10268_v59, %v6022_v60 }
 0x61a   : > { %v6090_v5 = vmax.f32 %v6058_v31, 0.0 }
 0x61b   : > { %v5984_v44 = vpop.f32.mrf.mxu1 }
 0x61c   : > { %6122 = vst [vmem:[%s10275_s29 + $0xe8] sm:$0xff] %v6090_v5  ;;  %v5985_v58 = vadd.f32 %v5984_v44, %v5896_v32 }
 0x61e   : > { %v6023_v56 = vmul.f32 %v10261_v23, %v5985_v58 }
 0x620   : > { %v6059_v61 = vadd.f32 %v10268_v59, %v6023_v56 }
 0x622   : > { %v6091_v2 = vmax.f32 %v6059_v61, 0.0 }
 0x623   : > { %v5986_v47 = vpop.f32.mrf.mxu1 }
 0x624   : > { %6123 = vst [vmem:[%s10275_s29 + $0xf0] sm:$0xff] %v6091_v2  ;;  %v5987_v27 = vadd.f32 %v5986_v47, %v5898_v20 }
 0x626   : > { %v6024_v25 = vmul.f32 %v10261_v23, %v5987_v27 }
 0x628   : > { %v6060_v46 = vadd.f32 %v10268_v59, %v6024_v25 }
 0x62a   : > { %v6092_v21 = vmax.f32 %v6060_v46, 0.0 }
 0x62c   : > { %6124 = vst [vmem:[%s10275_s29 + $0xf8] sm:$0xff] %v6092_v21 }
 0x62d   : > { %7305 = shalt.err (!%p7302_p3)
}
 0x62e   : > { %s7343_s20 = smov 128   ;;  %s7344_s29 = smov 8  }
 0x62f   : > { %7169 = dma.vmem_to_hbm [thread:$0]  (%p7423_p5), %s6139_s14, 4096, %s6141_s15, %s6126_s28, %s7343_s20, %s7343_s20, %s7344_s29  }
 0x630 PF: > { %p7175_p4 = scmp.ge.s32.totalorder %s7340_s27, 2  ;;  %s6155_s9 = sand.u32 1, %s7328_s24  }
 0x631   : > { %s6156_s13 = scalar_lea.sflag [#allocation5], %s6155_s9 }
 0x632   : > { %p7172_p7 = pnand %p7175_p4, %p7427_p6 }
 0x634   : > { %p7173_p8 = pneg %p7172_p7 }
 0x636   : > { %7323 = dma.done.wait (%p7173_p8), %s6156_s13, 4096  }
 0x637   : > { %7325 = vsyncadd (%p7173_p8), %s6156_s13, 4294963200  ;;  %p17_p9 = scmp.ge.s32.totalorder %s7410_s30, 4   ;;  %s10702_s24 = smov %s7332_s25 }
 0x638   : > { %s10703_s25 = smov %s7336_s26  ;;  %s10704_s26 = smov %s7421_s10 }
 0x639   : > { %s10705_s27 = smov %s7410_s30  ;;  %19 = sbr.rel (!%p17_p9) target bundleno = 3 (0x3), region = 85 }
 0x63e   :  { %6162 = vsyncpa [#allocation5], 1 }
 0x63f   :  { %6164 = vsyncpa [#allocation5 + $0x1], 1 }

</bundles_post_ra>
